<compile_context>
chip_gen: v5e
topology: v5e:2x2
jax: 0.10.0
libtpu: 0.0.40
codegen_flags: <defaults>
</compile_context>

<pallas_src>
import functools

import jax
import jax.numpy as jnp
from jax.experimental import pallas as pl
from jax.experimental.pallas import tpu as pltpu

LANE = 128      # channel padding target (vreg lane width)
_EPS = 1e-5


def _round_up(x, m):
    return ((x + m - 1) // m) * m


def _pick_tile_h(h, w, cin_p, cout_p, in_item, lhs_item, out_item,
                 vmem_budget_bytes=12 * 1024 * 1024, max_rows=2048):
    """Channel-/dtype-aware row-band size: largest TH whose per-tile working set
    (band in/out double buffers + im2col intermediates + f32 accumulator) fits the
    budget, capped at `max_rows` matmul rows (MXU M)."""
    per_row = (cin_p * (2 * in_item + 3 * 4 + 3 * lhs_item)   # x band x2, a/l/r f32, cols
               + cout_p * (3 * 4 + 2 * out_item))             # acc + stats temps, z out x2
    rows = int(vmem_budget_bytes // max(per_row, 1))
    rows = max(min(rows, max_rows), w)
    return max(1, min(h, rows // w))


def _pick_bn_tile_h(h_pad, w, c, in_item, vmem_budget_bytes=8 * 1024 * 1024):
    """Largest divisor of h_pad whose (input + f32 output) double buffers fit the budget."""
    per_row = w * c * 2 * (in_item + 4)
    max_th = max(1, int(vmem_budget_bytes // max(per_row, 1)))
    best = 1
    for th in range(1, h_pad + 1):
        if h_pad % th == 0 and th <= max_th:
            best = th
    return best


def _conv_vmem_limit(tile_h, w, cin, cout, in_item, lhs_item, out_item):
    band = tile_h * w
    est = (2 * band * cin * in_item                           # input band, double buffered
           + 4 * w * cin * in_item                            # halo rows
           + 2 * 9 * cin * cout * lhs_item                    # packed weights
           + 2 * band * cout * out_item                       # conv output, double buffered
           + (tile_h + 2) * w * cin * (3 * 4 + 3 * lhs_item)  # a/left/right (f32) + cols (bf16)
           + 3 * band * cout * 4)                             # f32 accumulator + stats temps
    est = int(est * 1.5) + (4 << 20)
    return max(32 << 20, min(64 << 20, est))                  # stay <= v7x physical VMEM


# --------------------------------------------------------------------------------- #
# Kernel 1: fused [prev-BN scale/shift (+ReLU)] -> 3x3 conv -> per-tile BN partials  #
# --------------------------------------------------------------------------------- #
def _conv3x3_stats_kernel(scale_ref, shift_ref, xm_ref, xt_ref, xb_ref, w_ref,
                          z_ref, stats_ref, *, input_relu, h_real, needs_row_mask):
    """One (batch, row-band) tile of  z = conv3x3(act),
       act = [relu](prev_scale * x + prev_shift)   (previous stage's BN+ReLU, fused).

    Also writes this tile's per-channel partial (sum, sum_sq) of z (only rows inside
    the real image) so the wrapper can finalise this stage's BatchNorm statistics.

      scale_ref, shift_ref : (1, Cin)            f32 prev-stage BN affine
      xm_ref               : (1, TH, W, Cin)     current row band
      xt_ref / xb_ref      : (1, 1,  W, Cin)     row above / below the band (clamped)
      w_ref                : (3, 3*Cin, Cout)    3x3 weights, one K=3*Cin slab per kh tap
      z_ref                : (1, TH, W, Cout)    raw conv output (pre-BN)
      stats_ref            : (1, 1, 2, Cout)     [sum, sum_sq] over this tile's valid rows
    """
    _, th, wd, cin = xm_ref.shape
    cout = z_ref.shape[-1]
    lhs_dt = w_ref.dtype

    i = pl.program_id(1)
    row0 = i * th                                    # global image row of the band's first row

    scale = scale_ref[...]                           # (1, Cin) f32
    shift = shift_ref[...]

    def prologue(v):                                 # previous stage's BN (+ReLU); f32 VPU math
        v = v.astype(jnp.float32) * scale + shift
        return jnp.maximum(v, 0.0) if input_relu else v

    mid = prologue(xm_ref[0])                        # (TH, W, Cin) f32
    # Halo rows: the BlockSpec index is clamped at the (padded) image border; zero them
    # whenever they fall outside the REAL image so they act as the conv's "SAME" zero
    # padding.  Zeroing happens AFTER the prologue on purpose.
    top = prologue(xt_ref[0]) * jnp.where(row0 >= 1, 1.0, 0.0)             # row row0-1
    bot = prologue(xb_ref[0]) * jnp.where(row0 + th < h_real, 1.0, 0.0)    # row row0+th

    if needs_row_mask:
        # H was padded to a multiple of TH: zero in-band rows beyond the real image so
        # they cannot leak into row H-1's bottom neighbourhood (matters for stage 2).
        rmask = (jax.lax.broadcasted_iota(jnp.int32, (th, 1, 1), 0)
                 < (h_real - row0)).astype(jnp.float32)
        mid = mid * rmask

    a = jnp.concatenate([top, mid, bot], axis=0)     # (TH+2, W, Cin) f32

    # Width halo via XLU sublane rotations + edge masks (no misaligned W slices).
    wi = jax.lax.broadcasted_iota(jnp.int32, (1, wd, 1), 1)
    not_first = (wi != 0).astype(jnp.float32)
    not_last = (wi != wd - 1).astype(jnp.float32)
    left = pltpu.roll(a, shift=1, axis=1) * not_first        # x[., w-1]  (kw = 0 tap)
    right = pltpu.roll(a, shift=wd - 1, axis=1) * not_last   # x[., w+1]  (kw = 2 tap)

    # kw-tap packing, K = 3*Cin.  Cast to the MXU dtype BEFORE the big 3x copy.
    cols = jnp.concatenate(
        [left.astype(lhs_dt), a.astype(lhs_dt), right.astype(lhs_dt)],
        axis=-1)                                     # (TH+2, W, 3*Cin) in MXU dtype

    # 3 accumulating MXU matmuls over the kh taps (row-shifted views of `cols`)
    # instead of materialising a 9x-replicated (TH*W, 9*Cin) LHS.
    acc = jnp.dot(cols[0:th].reshape(th * wd, 3 * cin), w_ref[0],
                  preferred_element_type=jnp.float32)
    for kh in (1, 2):
        acc = acc + jnp.dot(cols[kh:kh + th].reshape(th * wd, 3 * cin), w_ref[kh],
                            preferred_element_type=jnp.float32)

    # Quantise to the storage dtype FIRST so the BN statistics match exactly what the
    # next stage / the epilogue will read back from HBM.
    zq = acc.astype(z_ref.dtype)                     # (TH*W, Cout)
    z_ref[...] = zq.reshape(1, th, wd, cout)

    # TODO(synk): single-pass (sum, sum_sq) can cancel catastrophically if |mean| >> std;
    # a shifted/Welford variant would be safer for extreme activations.
    zs = zq.astype(jnp.float32)
    if needs_row_mask:
        smask = (jax.lax.broadcasted_iota(jnp.int32, (th * wd, 1), 0)
                 < (h_real - row0) * wd).astype(jnp.float32)
        zs = zs * smask
    s1 = jnp.sum(zs, axis=0, keepdims=True)          # (1, Cout)
    s2 = jnp.sum(zs * zs, axis=0, keepdims=True)
    stats_ref[...] = jnp.concatenate([s1, s2], axis=0).reshape(1, 1, 2, cout)


# --------------------------------------------------------------------------------- #
# Kernel 2: thin final pass  o = relu(scale * z + shift)                             #
# --------------------------------------------------------------------------------- #
def _bn_relu_kernel(scale_ref, shift_ref, z_ref, o_ref):
    y = z_ref[...].astype(jnp.float32) * scale_ref[...] + shift_ref[...]
    o_ref[...] = jnp.maximum(y, 0.0)


# --------------------------------------------------------------------------------- #
# Stage wrappers                                                                     #
# --------------------------------------------------------------------------------- #
def _conv3x3_stage(x, w_packed, scale, shift, *, input_relu, tile_h, h_real,
                   compute_dtype):
    """x: (N, H_pad, W, Cin_p); w_packed: (3, 3*Cin_p, Cout_p); scale/shift: (1, Cin_p).
    Returns the raw conv output z (N, H_pad, W, Cout_p) in `compute_dtype` and the
    per-channel (sum, sum_sq) of z over the N*H_real*W valid positions (f32)."""
    n, h_pad, wd, cin = x.shape
    cout = w_packed.shape[-1]
    assert h_pad % tile_h == 0, (h_pad, tile_h)
    nb = h_pad // tile_h

    idx_band = lambda b, i: (b, i, 0, 0)
    idx_top = lambda b, i: (b, jnp.maximum(i * tile_h - 1, 0), 0, 0)
    idx_bot = lambda b, i: (b, jnp.minimum(i * tile_h + tile_h, h_pad - 1), 0, 0)
    idx_rep2 = lambda b, i: (0, 0)
    idx_rep3 = lambda b, i: (0, 0, 0)

    in_item = x.dtype.itemsize
    lhs_item = w_packed.dtype.itemsize
    out_item = jnp.dtype(compute_dtype).itemsize

    flops = 2 * n * h_pad * wd * 9 * cin * cout
    bytes_accessed = (x.size * in_item + w_packed.size * lhs_item
                      + n * h_pad * wd * cout * out_item + n * nb * 2 * cout * 4)

    z, stats = pl.pallas_call(
        functools.partial(_conv3x3_stats_kernel, input_relu=input_relu,
                          h_real=h_real, needs_row_mask=(h_pad != h_real)),
        grid=(n, nb),
        in_specs=[
            pl.BlockSpec((1, cin), idx_rep2),                 # prev-BN scale
            pl.BlockSpec((1, cin), idx_rep2),                 # prev-BN shift
            pl.BlockSpec((1, tile_h, wd, cin), idx_band),     # current row band
            pl.BlockSpec((1, 1, wd, cin), idx_top),           # halo row above (clamped)
            pl.BlockSpec((1, 1, wd, cin), idx_bot),           # halo row below (clamped)
            pl.BlockSpec((3, 3 * cin, cout), idx_rep3),       # packed 3x3 weights (resident)
        ],
        out_specs=[
            pl.BlockSpec((1, tile_h, wd, cout), idx_band),
            pl.BlockSpec((1, 1, 2, cout), lambda b, i: (b, i, 0, 0)),
        ],
        out_shape=[
            jax.ShapeDtypeStruct((n, h_pad, wd, cout), compute_dtype),
            jax.ShapeDtypeStruct((n, nb, 2, cout), jnp.float32),
        ],
        compiler_params=pltpu.CompilerParams(
            # Each (batch, band) step writes its own output + stats block -> no carries.
            dimension_semantics=("parallel", "parallel"),
            vmem_limit_bytes=_conv_vmem_limit(tile_h, wd, cin, cout,
                                              in_item, lhs_item, out_item)),
        cost_estimate=pl.CostEstimate(flops=flops, transcendentals=0,
                                      bytes_accessed=bytes_accessed),
    )(scale, shift, x, x, x, w_packed)

    s = jnp.sum(stats[:, :, 0, :], axis=(0, 1))       # (Cout_p,)
    q = jnp.sum(stats[:, :, 1, :], axis=(0, 1))       # (Cout_p,)
    return z, s, q


def _bn_relu(z, scale, shift, *, tile_h):
    n, h_pad, wd, c = z.shape
    assert h_pad % tile_h == 0, (h_pad, tile_h)
    nb = h_pad // tile_h
    idx_band = lambda b, i: (b, i, 0, 0)
    idx_rep = lambda b, i: (0, 0)
    limit = max(32 << 20,
                min(64 << 20, int(6 * tile_h * wd * c * (z.dtype.itemsize + 4))))
    return pl.pallas_call(
        _bn_relu_kernel,
        grid=(n, nb),
        in_specs=[pl.BlockSpec((1, c), idx_rep),
                  pl.BlockSpec((1, c), idx_rep),
                  pl.BlockSpec((1, tile_h, wd, c), idx_band)],
        out_specs=pl.BlockSpec((1, tile_h, wd, c), idx_band),
        out_shape=jax.ShapeDtypeStruct((n, h_pad, wd, c), jnp.float32),
        compiler_params=pltpu.CompilerParams(
            dimension_semantics=("parallel", "parallel"),
            vmem_limit_bytes=limit),
    )(scale, shift, z)


def _bn_affine(s, q, count, gamma, beta, eps):
    """Fold training-mode BatchNorm (batch mean, biased var) into per-channel scale/shift."""
    mean = s / count
    var = jnp.maximum(q / count - mean * mean, 0.0)
    scale = gamma * jax.lax.rsqrt(var + eps)
    shift = beta - mean * scale
    return (scale.reshape(1, -1).astype(jnp.float32),
            shift.reshape(1, -1).astype(jnp.float32))


@functools.partial(jax.jit, static_argnames=("compute_dtype", "tile_h"))
def unet_decoder_block(x_nchw, params, *, compute_dtype=jnp.bfloat16, tile_h=None,
                       eps=_EPS):
    """x = relu(bn1(conv1(x))); x = relu(bn2(conv2(x)))   (NCHW in / NCHW out)."""
    n, cin, h, wd = x_nchw.shape
    cout = params["w1"].shape[-1]
    cin_p, cout_p = _round_up(cin, LANE), _round_up(cout, LANE)
    item = jnp.dtype(compute_dtype).itemsize
    if tile_h is None:
        tile_h = _pick_tile_h(h, wd, max(cin_p, cout_p), cout_p, item, item, item)
    h_pad = _round_up(h, tile_h)      # rows padded to a multiple of the band height
    count = n * h * wd                # BN normalisation count uses the REAL image size

    # NCHW -> NHWC; pad channels to the lane width and rows to a multiple of tile_h.
    x = jnp.transpose(x_nchw, (0, 2, 3, 1)).astype(compute_dtype)
    x = jnp.pad(x, ((0, 0), (0, h_pad - h), (0, 0), (0, cin_p - cin)))

    # Pack conv weights once: (3,3,Cin,Cout) HWIO -> (3, 3*Cin_p, Cout_p); one K=3*Cin_p
    # slab per kh tap, K ordered [kw, cin] to match the kernel's `cols` packing.
    def pack_w(wk, ci, ci_p):
        wk = jnp.pad(wk, ((0, 0), (0, 0), (0, ci_p - ci), (0, cout_p - cout)))
        return wk.reshape(3, 3 * ci_p, cout_p).astype(compute_dtype)

    w1p = pack_w(params["w1"], cin, cin_p)
    w2p = pack_w(params["w2"], cout, cout_p)
    g1 = jnp.pad(params["g1"], (0, cout_p - cout))
    bt1 = jnp.pad(params["beta1"], (0, cout_p - cout))
    g2 = jnp.pad(params["g2"], (0, cout_p - cout))
    bt2 = jnp.pad(params["beta2"], (0, cout_p - cout))
    # NOTE: conv biases params["b1"] / params["b2"] are deliberately unused: a
    # per-channel constant added before training-mode BatchNorm is exactly cancelled
    # by the batch-mean subtraction, so the bias add is a pure no-op.

    ident_scale = jnp.ones((1, cin_p), jnp.float32)
    ident_shift = jnp.zeros((1, cin_p), jnp.float32)

    # Stage 1: conv1 + per-channel stats (BN1 finalised below in plain JAX).
    z1, s1, q1 = _conv3x3_stage(x, w1p, ident_scale, ident_shift, input_relu=False,
                                tile_h=tile_h, h_real=h, compute_dtype=compute_dtype)
    sc1, sh1 = _bn_affine(s1, q1, count, g1, bt1, eps)

    # Stage 2: BN1 + ReLU fused into conv2's input prologue; conv2 + stats.
    z2, s2, q2 = _conv3x3_stage(z1, w2p, sc1, sh1, input_relu=True,
                                tile_h=tile_h, h_real=h, compute_dtype=compute_dtype)
    sc2, sh2 = _bn_affine(s2, q2, count, g2, bt2, eps)

    # Thin final pass: BN2 + ReLU, lane-dense, with its own (large) row tile.
    bn_tile_h = _pick_bn_tile_h(h_pad, wd, cout_p, item)
    y = _bn_relu(z2, sc2, sh2, tile_h=bn_tile_h)

    # TODO(synk): the NHWC->NCHW transpose + slice below costs one extra f32 HBM round
    # trip in XLA; exposing an NHWC output (or fusing the transpose into the epilogue)
    # would remove it, at the price of lane-sparse stores for small W.
    return jnp.transpose(y[:, :h, :, :cout], (0, 3, 1, 2))


# --------------------------------------------------------------------------------- #
# Pure-JAX reference + params                                                        #
# --------------------------------------------------------------------------------- #
def _reference_block(x_nchw, params, eps=_EPS):
    def cbr(x, w, b, g, bt):
        y = jax.lax.conv_general_dilated(
            x, w, window_strides=(1, 1), padding="SAME",
            dimension_numbers=("NHWC", "HWIO", "NHWC"),
            precision=jax.lax.Precision.HIGHEST) + b.reshape(1, 1, 1, -1)
        m = jnp.mean(y, axis=(0, 1, 2), keepdims=True)
        v = jnp.mean((y - m) ** 2, axis=(0, 1, 2), keepdims=True)
        y = (y - m) * jax.lax.rsqrt(v + eps) * g.reshape(1, 1, 1, -1) + bt.reshape(1, 1, 1, -1)
        return jnp.maximum(y, 0.0)

    x = jnp.transpose(x_nchw, (0, 2, 3, 1))
    x = cbr(x, params["w1"], params["b1"], params["g1"], params["beta1"])
    x = cbr(x, params["w2"], params["b2"], params["g2"], params["beta2"])
    return jnp.transpose(x, (0, 3, 1, 2))


def init_params(key, in_channels, out_channels):
    k1, k2, k3, k4 = jax.random.split(key, 4)
    scale1 = 1.0 / jnp.sqrt(in_channels * 9.0)
    scale2 = 1.0 / jnp.sqrt(out_channels * 9.0)
    return {
        # conv weights stored HWIO (3, 3, Cin, Cout)
        "w1": jax.random.uniform(k1, (3, 3, in_channels, out_channels),
                                 jnp.float32, -scale1, scale1),
        "b1": jax.random.uniform(k2, (out_channels,), jnp.float32, -scale1, scale1),
        "g1": jnp.ones((out_channels,), jnp.float32),       # BN weight init = 1
        "beta1": jnp.zeros((out_channels,), jnp.float32),   # BN bias init = 0
        "w2": jax.random.uniform(k3, (3, 3, out_channels, out_channels),
                                 jnp.float32, -scale2, scale2),
        "b2": jax.random.uniform(k4, (out_channels,), jnp.float32, -scale2, scale2),
        "g2": jnp.ones((out_channels,), jnp.float32),
        "beta2": jnp.zeros((out_channels,), jnp.float32),
    }


if __name__ == "__main__":
    key = jax.random.PRNGKey(0)
    kx, kp = jax.random.split(key)

    N, Cin, Cout, H, W = 2, 4, 8, 16, 16
    x = jax.random.normal(kx, (N, Cin, H, W), jnp.float32)   # NCHW like PyTorch
    params = init_params(kp, Cin, Cout)

    ref = _reference_block(x, params)

    # Fast path: bf16 MXU operands / bf16 inter-stage activation (loose tolerance
    # reflects bf16 rounding vs the f32-highest reference).
    out_bf16 = jax.block_until_ready(
        unet_decoder_block(x, params, compute_dtype=jnp.bfloat16, tile_h=8))
    assert out_bf16.shape == (N, Cout, H, W), out_bf16.shape
    assert jnp.allclose(out_bf16, ref, atol=5e-2, rtol=5e-2), \
        "bf16 kernel mismatch vs pure-JAX reference"

    # f32 path with auto tile sizing: validates the tiling / halo / two-phase-BN
    # structure more tightly.
    out_f32 = jax.block_until_ready(
        unet_decoder_block(x, params, compute_dtype=jnp.float32))
    assert jnp.allclose(out_f32, ref, atol=1e-2, rtol=1e-2), \
        "f32 kernel mismatch vs pure-JAX reference"

    # Non-divisible H exercises the padded-band + in-kernel row-mask path.
    N2, C2i, C2o, H2, W2 = 1, 3, 8, 10, 16
    x2 = jax.random.normal(jax.random.PRNGKey(1), (N2, C2i, H2, W2), jnp.float32)
    p2 = init_params(jax.random.PRNGKey(2), C2i, C2o)
    ref2 = _reference_block(x2, p2)
    out2 = jax.block_until_ready(
        unet_decoder_block(x2, p2, compute_dtype=jnp.float32, tile_h=4))
    assert out2.shape == (N2, C2o, H2, W2), out2.shape
    assert jnp.allclose(out2, ref2, atol=1e-2, rtol=1e-2), \
        "non-divisible-H kernel mismatch vs pure-JAX reference"

    print("KERNEL_OK")
</pallas_src>

<mosaic_0001>
module attributes {stable_mosaic.version = 11 : i64} {
  func.func @_conv3x3_stats_kernel(%arg0: i32, %arg1: i32, %arg2: memref<1x128xf32, #tpu.memory_space<vmem>>, %arg3: memref<1x128xf32, #tpu.memory_space<vmem>>, %arg4: memref<1x8x16x128xbf16, #tpu.memory_space<vmem>>, %arg5: memref<1x1x16x128xbf16, #tpu.memory_space<vmem>>, %arg6: memref<1x1x16x128xbf16, #tpu.memory_space<vmem>>, %arg7: memref<3x384x128xbf16, #tpu.memory_space<vmem>>, %arg8: memref<1x8x16x128xbf16, #tpu.memory_space<vmem>>, %arg9: memref<1x1x2x128xf32, #tpu.memory_space<vmem>>) attributes {dimension_semantics = [#tpu.dimension_semantics<parallel>, #tpu.dimension_semantics<parallel>], iteration_bounds = array<i64: 2, 2>, scalar_prefetch = 0 : i64, scratch_operands = 0 : i64, tpu.core_type = #tpu.core_type<tc>, window_params = [{pipeline_mode = #tpu.pipeline_mode<synchronous>, transform_indices = @transform_0, window_bounds = array<i64: 1, 128>}, {pipeline_mode = #tpu.pipeline_mode<synchronous>, transform_indices = @transform_1, window_bounds = array<i64: 1, 128>}, {transform_indices = @transform_2, window_bounds = array<i64: 1, 8, 16, 128>}, {transform_indices = @transform_3, window_bounds = array<i64: 1, 1, 16, 128>}, {transform_indices = @transform_4, window_bounds = array<i64: 1, 1, 16, 128>}, {pipeline_mode = #tpu.pipeline_mode<synchronous>, transform_indices = @transform_5, window_bounds = array<i64: 3, 384, 128>}, {transform_indices = @transform_6, window_bounds = array<i64: 1, 8, 16, 128>}, {transform_indices = @transform_7, window_bounds = array<i64: 1, 1, 2, 128>}]} {
    %c8_i32 = arith.constant 8 : i32
    %0 = arith.muli %arg1, %c8_i32 : i32
    %c0 = arith.constant 0 : index
    %c0_0 = arith.constant 0 : index
    %1 = vector.load %arg2[%c0, %c0_0] : memref<1x128xf32, #tpu.memory_space<vmem>>, vector<1x128xf32>
    %c0_1 = arith.constant 0 : index
    %c0_2 = arith.constant 0 : index
    %2 = vector.load %arg3[%c0_1, %c0_2] : memref<1x128xf32, #tpu.memory_space<vmem>>, vector<1x128xf32>
    %c0_3 = arith.constant 0 : index
    %c0_4 = arith.constant 0 : index
    %c0_5 = arith.constant 0 : index
    %c0_6 = arith.constant 0 : index
    %3 = vector.load %arg4[%c0_3, %c0_4, %c0_5, %c0_6] : memref<1x8x16x128xbf16, #tpu.memory_space<vmem>>, vector<1x8x16x128xbf16>
    %4 = vector.shape_cast %3 : vector<1x8x16x128xbf16> to vector<8x16x128xbf16>
    %5 = arith.extf %4 : vector<8x16x128xbf16> to vector<8x16x128xf32>
    %6 = vector.shape_cast %1 : vector<1x128xf32> to vector<1x1x128xf32>
    %7 = vector.broadcast %6 : vector<1x1x128xf32> to vector<8x16x128xf32>
    %8 = arith.mulf %5, %7 : vector<8x16x128xf32>
    %9 = vector.shape_cast %2 : vector<1x128xf32> to vector<1x1x128xf32>
    %10 = vector.broadcast %9 : vector<1x1x128xf32> to vector<8x16x128xf32>
    %11 = arith.addf %8, %10 : vector<8x16x128xf32>
    %c0_7 = arith.constant 0 : index
    %c0_8 = arith.constant 0 : index
    %c0_9 = arith.constant 0 : index
    %c0_10 = arith.constant 0 : index
    %12 = vector.load %arg5[%c0_7, %c0_8, %c0_9, %c0_10] : memref<1x1x16x128xbf16, #tpu.memory_space<vmem>>, vector<1x1x16x128xbf16>
    %13 = vector.shape_cast %12 : vector<1x1x16x128xbf16> to vector<1x16x128xbf16>
    %14 = arith.extf %13 : vector<1x16x128xbf16> to vector<1x16x128xf32>
    %15 = vector.shape_cast %1 : vector<1x128xf32> to vector<1x1x128xf32>
    %16 = vector.broadcast %15 : vector<1x1x128xf32> to vector<1x16x128xf32>
    %17 = arith.mulf %14, %16 : vector<1x16x128xf32>
    %18 = vector.shape_cast %2 : vector<1x128xf32> to vector<1x1x128xf32>
    %19 = vector.broadcast %18 : vector<1x1x128xf32> to vector<1x16x128xf32>
    %20 = arith.addf %17, %19 : vector<1x16x128xf32>
    %c1_i32 = arith.constant 1 : i32
    %21 = arith.cmpi sge, %0, %c1_i32 : i32
    %cst = arith.constant 1.000000e+00 : f32
    %cst_11 = arith.constant 0.000000e+00 : f32
    %22 = arith.select %21, %cst, %cst_11 : f32
    %23 = vector.broadcast %22 : f32 to vector<1x16x128xf32>
    %24 = arith.mulf %20, %23 : vector<1x16x128xf32>
    %c0_12 = arith.constant 0 : index
    %c0_13 = arith.constant 0 : index
    %c0_14 = arith.constant 0 : index
    %c0_15 = arith.constant 0 : index
    %25 = vector.load %arg6[%c0_12, %c0_13, %c0_14, %c0_15] : memref<1x1x16x128xbf16, #tpu.memory_space<vmem>>, vector<1x1x16x128xbf16>
    %26 = vector.shape_cast %25 : vector<1x1x16x128xbf16> to vector<1x16x128xbf16>
    %27 = arith.extf %26 : vector<1x16x128xbf16> to vector<1x16x128xf32>
    %28 = vector.shape_cast %1 : vector<1x128xf32> to vector<1x1x128xf32>
    %29 = vector.broadcast %28 : vector<1x1x128xf32> to vector<1x16x128xf32>
    %30 = arith.mulf %27, %29 : vector<1x16x128xf32>
    %31 = vector.shape_cast %2 : vector<1x128xf32> to vector<1x1x128xf32>
    %32 = vector.broadcast %31 : vector<1x1x128xf32> to vector<1x16x128xf32>
    %33 = arith.addf %30, %32 : vector<1x16x128xf32>
    %c8_i32_16 = arith.constant 8 : i32
    %34 = arith.addi %0, %c8_i32_16 : i32
    %c16_i32 = arith.constant 16 : i32
    %35 = arith.cmpi slt, %34, %c16_i32 : i32
    %cst_17 = arith.constant 1.000000e+00 : f32
    %cst_18 = arith.constant 0.000000e+00 : f32
    %36 = arith.select %35, %cst_17, %cst_18 : f32
    %37 = vector.broadcast %36 : f32 to vector<1x16x128xf32>
    %38 = arith.mulf %33, %37 : vector<1x16x128xf32>
    %39 = tpu.concatenate %24, %11, %38 in 0 : vector<1x16x128xf32>, vector<8x16x128xf32>, vector<1x16x128xf32> -> vector<10x16x128xf32>
    %40 = tpu.iota {dimensions = array<i32: 1>} : vector<1x16x1xi32>
    %c0_i32 = arith.constant 0 : i32
    %41 = vector.broadcast %c0_i32 : i32 to vector<1x16x1xi32>
    %42 = arith.cmpi ne, %40, %41 : vector<1x16x1xi32>
    %43 = arith.extui %42 : vector<1x16x1xi1> to vector<1x16x1xi32>
    %44 = arith.sitofp %43 : vector<1x16x1xi32> to vector<1x16x1xf32>
    %c15_i32 = arith.constant 15 : i32
    %45 = vector.broadcast %c15_i32 : i32 to vector<1x16x1xi32>
    %46 = arith.cmpi ne, %40, %45 : vector<1x16x1xi32>
    %47 = arith.extui %46 : vector<1x16x1xi1> to vector<1x16x1xi32>
    %48 = arith.sitofp %47 : vector<1x16x1xi32> to vector<1x16x1xf32>
    %c1_i32_19 = arith.constant 1 : i32
    %49 = tpu.dynamic_rotate %39 by %c1_i32_19 dim 1 : vector<10x16x128xf32>, i32 -> vector<10x16x128xf32>
    %50 = vector.broadcast %44 : vector<1x16x1xf32> to vector<10x16x128xf32>
    %51 = arith.mulf %49, %50 : vector<10x16x128xf32>
    %c15_i32_20 = arith.constant 15 : i32
    %52 = tpu.dynamic_rotate %39 by %c15_i32_20 dim 1 : vector<10x16x128xf32>, i32 -> vector<10x16x128xf32>
    %53 = vector.broadcast %48 : vector<1x16x1xf32> to vector<10x16x128xf32>
    %54 = arith.mulf %52, %53 : vector<10x16x128xf32>
    %55 = arith.truncf %51 : vector<10x16x128xf32> to vector<10x16x128xbf16>
    %56 = arith.truncf %39 : vector<10x16x128xf32> to vector<10x16x128xbf16>
    %57 = arith.truncf %54 : vector<10x16x128xf32> to vector<10x16x128xbf16>
    %58 = tpu.concatenate %55, %56, %57 in 2 : vector<10x16x128xbf16>, vector<10x16x128xbf16>, vector<10x16x128xbf16> -> vector<10x16x384xbf16>
    %59 = vector.extract_strided_slice %58 {offsets = [0, 0, 0], sizes = [8, 16, 384], strides = [1, 1, 1]} : vector<10x16x384xbf16> to vector<8x16x384xbf16>
    %60 = vector.shape_cast %59 : vector<8x16x384xbf16> to vector<128x384xbf16>
    %c0_21 = arith.constant 0 : index
    %c0_22 = arith.constant 0 : index
    %c0_23 = arith.constant 0 : index
    %61 = vector.load %arg7[%c0_21, %c0_22, %c0_23] : memref<3x384x128xbf16, #tpu.memory_space<vmem>>, vector<1x384x128xbf16>
    %62 = vector.shape_cast %61 : vector<1x384x128xbf16> to vector<384x128xbf16>
    %cst_24 = arith.constant dense<0.000000e+00> : vector<128x128xf32>
    %63 = tpu.matmul %60, %62, %cst_24 {dimension_numbers = #tpu.dot_dimension_numbers<[1], [0], [0], [1], [0, 0, 1, 1], [], []>} : vector<128x384xbf16>, vector<384x128xbf16>, vector<128x128xf32> -> vector<128x128xf32>
    %64 = vector.extract_strided_slice %58 {offsets = [1, 0, 0], sizes = [8, 16, 384], strides = [1, 1, 1]} : vector<10x16x384xbf16> to vector<8x16x384xbf16>
    %65 = vector.shape_cast %64 : vector<8x16x384xbf16> to vector<128x384xbf16>
    %c1 = arith.constant 1 : index
    %c0_25 = arith.constant 0 : index
    %c0_26 = arith.constant 0 : index
    %66 = vector.load %arg7[%c1, %c0_25, %c0_26] : memref<3x384x128xbf16, #tpu.memory_space<vmem>>, vector<1x384x128xbf16>
    %67 = vector.shape_cast %66 : vector<1x384x128xbf16> to vector<384x128xbf16>
    %cst_27 = arith.constant dense<0.000000e+00> : vector<128x128xf32>
    %68 = tpu.matmul %65, %67, %cst_27 {dimension_numbers = #tpu.dot_dimension_numbers<[1], [0], [0], [1], [0, 0, 1, 1], [], []>} : vector<128x384xbf16>, vector<384x128xbf16>, vector<128x128xf32> -> vector<128x128xf32>
    %69 = arith.addf %63, %68 : vector<128x128xf32>
    %70 = vector.extract_strided_slice %58 {offsets = [2, 0, 0], sizes = [8, 16, 384], strides = [1, 1, 1]} : vector<10x16x384xbf16> to vector<8x16x384xbf16>
    %71 = vector.shape_cast %70 : vector<8x16x384xbf16> to vector<128x384xbf16>
    %c2 = arith.constant 2 : index
    %c0_28 = arith.constant 0 : index
    %c0_29 = arith.constant 0 : index
    %72 = vector.load %arg7[%c2, %c0_28, %c0_29] : memref<3x384x128xbf16, #tpu.memory_space<vmem>>, vector<1x384x128xbf16>
    %73 = vector.shape_cast %72 : vector<1x384x128xbf16> to vector<384x128xbf16>
    %cst_30 = arith.constant dense<0.000000e+00> : vector<128x128xf32>
    %74 = tpu.matmul %71, %73, %cst_30 {dimension_numbers = #tpu.dot_dimension_numbers<[1], [0], [0], [1], [0, 0, 1, 1], [], []>} : vector<128x384xbf16>, vector<384x128xbf16>, vector<128x128xf32> -> vector<128x128xf32>
    %75 = arith.addf %69, %74 : vector<128x128xf32>
    %76 = arith.truncf %75 : vector<128x128xf32> to vector<128x128xbf16>
    %77 = vector.shape_cast %76 : vector<128x128xbf16> to vector<1x8x16x128xbf16>
    %c0_31 = arith.constant 0 : index
    %c0_32 = arith.constant 0 : index
    %c0_33 = arith.constant 0 : index
    %c0_34 = arith.constant 0 : index
    %78 = vector.load %arg8[%c0_31, %c0_32, %c0_33, %c0_34] : memref<1x8x16x128xbf16, #tpu.memory_space<vmem>>, vector<1x8x16x128xbf16>
    tpu.vector_store %arg8[%c0_31, %c0_32, %c0_33, %c0_34], %77 {strides = array<i32>} : memref<1x8x16x128xbf16, #tpu.memory_space<vmem>>, vector<1x8x16x128xbf16>,
    %79 = arith.extf %76 : vector<128x128xbf16> to vector<128x128xf32>
    %cst_35 = arith.constant dense<0.000000e+00> : vector<128xf32>
    %80 = vector.multi_reduction <add>, %79, %cst_35 [0] : vector<128x128xf32> to vector<128xf32>
    %81 = vector.shape_cast %80 : vector<128xf32> to vector<1x128xf32>
    %82 = arith.mulf %79, %79 : vector<128x128xf32>
    %cst_36 = arith.constant dense<0.000000e+00> : vector<128xf32>
    %83 = vector.multi_reduction <add>, %82, %cst_36 [0] : vector<128x128xf32> to vector<128xf32>
    %84 = vector.shape_cast %83 : vector<128xf32> to vector<1x128xf32>
    %85 = tpu.concatenate %81, %84 in 0 : vector<1x128xf32>, vector<1x128xf32> -> vector<2x128xf32>
    %86 = vector.shape_cast %85 : vector<2x128xf32> to vector<1x1x2x128xf32>
    %c0_37 = arith.constant 0 : index
    %c0_38 = arith.constant 0 : index
    %c0_39 = arith.constant 0 : index
    %c0_40 = arith.constant 0 : index
    %87 = vector.load %arg9[%c0_37, %c0_38, %c0_39, %c0_40] : memref<1x1x2x128xf32, #tpu.memory_space<vmem>>, vector<1x1x2x128xf32>
    tpu.vector_store %arg9[%c0_37, %c0_38, %c0_39, %c0_40], %86 {strides = array<i32>} : memref<1x1x2x128xf32, #tpu.memory_space<vmem>>, vector<1x1x2x128xf32>,
    return
  }
  func.func @transform_0(%arg0: i32, %arg1: i32) -> (i32, i32) {
    %c0_i32 = arith.constant 0 : i32
    %c0_i32_0 = arith.constant 0 : i32
    %c0_i32_1 = arith.constant 0 : i32
    return %c0_i32, %c0_i32_0 : i32, i32
  }
  func.func @transform_1(%arg0: i32, %arg1: i32) -> (i32, i32) {
    %c0_i32 = arith.constant 0 : i32
    %c0_i32_0 = arith.constant 0 : i32
    %c0_i32_1 = arith.constant 0 : i32
    return %c0_i32, %c0_i32_0 : i32, i32
  }
  func.func @transform_2(%arg0: i32, %arg1: i32) -> (i32, i32, i32, i32) {
    %c0_i32 = arith.constant 0 : i32
    %c0_i32_0 = arith.constant 0 : i32
    %c0_i32_1 = arith.constant 0 : i32
    return %arg0, %arg1, %c0_i32, %c0_i32_0 : i32, i32, i32, i32
  }
  func.func @transform_3(%arg0: i32, %arg1: i32) -> (i32, i32, i32, i32) {
    %c8_i32 = arith.constant 8 : i32
    %0 = arith.muli %arg1, %c8_i32 : i32
    %c1_i32 = arith.constant 1 : i32
    %1 = arith.subi %0, %c1_i32 : i32
    %c0_i32 = arith.constant 0 : i32
    %2 = arith.maxsi %1, %c0_i32 : i32
    %c0_i32_0 = arith.constant 0 : i32
    %c0_i32_1 = arith.constant 0 : i32
    %c0_i32_2 = arith.constant 0 : i32
    return %arg0, %2, %c0_i32_0, %c0_i32_1 : i32, i32, i32, i32
  }
  func.func @transform_4(%arg0: i32, %arg1: i32) -> (i32, i32, i32, i32) {
    %c8_i32 = arith.constant 8 : i32
    %0 = arith.muli %arg1, %c8_i32 : i32
    %c8_i32_0 = arith.constant 8 : i32
    %1 = arith.addi %0, %c8_i32_0 : i32
    %c15_i32 = arith.constant 15 : i32
    %2 = arith.minsi %1, %c15_i32 : i32
    %c0_i32 = arith.constant 0 : i32
    %c0_i32_1 = arith.constant 0 : i32
    %c0_i32_2 = arith.constant 0 : i32
    return %arg0, %2, %c0_i32, %c0_i32_1 : i32, i32, i32, i32
  }
  func.func @transform_5(%arg0: i32, %arg1: i32) -> (i32, i32, i32) {
    %c0_i32 = arith.constant 0 : i32
    %c0_i32_0 = arith.constant 0 : i32
    %c0_i32_1 = arith.constant 0 : i32
    %c0_i32_2 = arith.constant 0 : i32
    return %c0_i32, %c0_i32_0, %c0_i32_1 : i32, i32, i32
  }
  func.func @transform_6(%arg0: i32, %arg1: i32) -> (i32, i32, i32, i32) {
    %c0_i32 = arith.constant 0 : i32
    %c0_i32_0 = arith.constant 0 : i32
    %c0_i32_1 = arith.constant 0 : i32
    return %arg0, %arg1, %c0_i32, %c0_i32_0 : i32, i32, i32, i32
  }
  func.func @transform_7(%arg0: i32, %arg1: i32) -> (i32, i32, i32, i32) {
    %c0_i32 = arith.constant 0 : i32
    %c0_i32_0 = arith.constant 0 : i32
    %c0_i32_1 = arith.constant 0 : i32
    return %arg0, %arg1, %c0_i32, %c0_i32_0 : i32, i32, i32, i32
  }
}

module attributes {stable_mosaic.version = 11 : i64} {
  func.func @_bn_relu_kernel(%arg0: i32, %arg1: i32, %arg2: memref<1x128xf32, #tpu.memory_space<vmem>>, %arg3: memref<1x128xf32, #tpu.memory_space<vmem>>, %arg4: memref<1x16x16x128xbf16, #tpu.memory_space<vmem>>, %arg5: memref<1x16x16x128xf32, #tpu.memory_space<vmem>>) attributes {dimension_semantics = [#tpu.dimension_semantics<parallel>, #tpu.dimension_semantics<parallel>], iteration_bounds = array<i64: 2, 1>, scalar_prefetch = 0 : i64, scratch_operands = 0 : i64, tpu.core_type = #tpu.core_type<tc>, window_params = [{pipeline_mode = #tpu.pipeline_mode<synchronous>, transform_indices = @transform_0, window_bounds = array<i64: 1, 128>}, {pipeline_mode = #tpu.pipeline_mode<synchronous>, transform_indices = @transform_1, window_bounds = array<i64: 1, 128>}, {transform_indices = @transform_2, window_bounds = array<i64: 1, 16, 16, 128>}, {transform_indices = @transform_3, window_bounds = array<i64: 1, 16, 16, 128>}]} {
    %c0 = arith.constant 0 : index
    %c0_0 = arith.constant 0 : index
    %c0_1 = arith.constant 0 : index
    %c0_2 = arith.constant 0 : index
    %0 = vector.load %arg4[%c0, %c0_0, %c0_1, %c0_2] : memref<1x16x16x128xbf16, #tpu.memory_space<vmem>>, vector<1x16x16x128xbf16>
    %1 = arith.extf %0 : vector<1x16x16x128xbf16> to vector<1x16x16x128xf32>
    %c0_3 = arith.constant 0 : index
    %c0_4 = arith.constant 0 : index
    %2 = vector.load %arg2[%c0_3, %c0_4] : memref<1x128xf32, #tpu.memory_space<vmem>>, vector<1x128xf32>
    %3 = vector.shape_cast %2 : vector<1x128xf32> to vector<1x1x1x128xf32>
    %4 = vector.broadcast %3 : vector<1x1x1x128xf32> to vector<1x16x16x128xf32>
    %5 = arith.mulf %1, %4 : vector<1x16x16x128xf32>
    %c0_5 = arith.constant 0 : index
    %c0_6 = arith.constant 0 : index
    %6 = vector.load %arg3[%c0_5, %c0_6] : memref<1x128xf32, #tpu.memory_space<vmem>>, vector<1x128xf32>
    %7 = vector.shape_cast %6 : vector<1x128xf32> to vector<1x1x1x128xf32>
    %8 = vector.broadcast %7 : vector<1x1x1x128xf32> to vector<1x16x16x128xf32>
    %9 = arith.addf %5, %8 : vector<1x16x16x128xf32>
    %cst = arith.constant 0.000000e+00 : f32
    %10 = vector.broadcast %cst : f32 to vector<1x16x16x128xf32>
    %11 = arith.maximumf %9, %10 : vector<1x16x16x128xf32>
    %c0_7 = arith.constant 0 : index
    %c0_8 = arith.constant 0 : index
    %c0_9 = arith.constant 0 : index
    %c0_10 = arith.constant 0 : index
    %12 = vector.load %arg5[%c0_7, %c0_8, %c0_9, %c0_10] : memref<1x16x16x128xf32, #tpu.memory_space<vmem>>, vector<1x16x16x128xf32>
    tpu.vector_store %arg5[%c0_7, %c0_8, %c0_9, %c0_10], %11 {strides = array<i32>} : memref<1x16x16x128xf32, #tpu.memory_space<vmem>>, vector<1x16x16x128xf32>,
    return
  }
  func.func @transform_0(%arg0: i32, %arg1: i32) -> (i32, i32) {
    %c0_i32 = arith.constant 0 : i32
    %c0_i32_0 = arith.constant 0 : i32
    %c0_i32_1 = arith.constant 0 : i32
    return %c0_i32, %c0_i32_0 : i32, i32
  }
  func.func @transform_1(%arg0: i32, %arg1: i32) -> (i32, i32) {
    %c0_i32 = arith.constant 0 : i32
    %c0_i32_0 = arith.constant 0 : i32
    %c0_i32_1 = arith.constant 0 : i32
    return %c0_i32, %c0_i32_0 : i32, i32
  }
  func.func @transform_2(%arg0: i32, %arg1: i32) -> (i32, i32, i32, i32) {
    %c0_i32 = arith.constant 0 : i32
    %c0_i32_0 = arith.constant 0 : i32
    %c0_i32_1 = arith.constant 0 : i32
    return %arg0, %arg1, %c0_i32, %c0_i32_0 : i32, i32, i32, i32
  }
  func.func @transform_3(%arg0: i32, %arg1: i32) -> (i32, i32, i32, i32) {
    %c0_i32 = arith.constant 0 : i32
    %c0_i32_0 = arith.constant 0 : i32
    %c0_i32_1 = arith.constant 0 : i32
    return %arg0, %arg1, %c0_i32, %c0_i32_0 : i32, i32, i32, i32
  }
}

module attributes {stable_mosaic.version = 11 : i64} {
  func.func @_conv3x3_stats_kernel(%arg0: i32, %arg1: i32, %arg2: memref<1x128xf32, #tpu.memory_space<vmem>>, %arg3: memref<1x128xf32, #tpu.memory_space<vmem>>, %arg4: memref<1x8x16x128xbf16, #tpu.memory_space<vmem>>, %arg5: memref<1x1x16x128xbf16, #tpu.memory_space<vmem>>, %arg6: memref<1x1x16x128xbf16, #tpu.memory_space<vmem>>, %arg7: memref<3x384x128xbf16, #tpu.memory_space<vmem>>, %arg8: memref<1x8x16x128xbf16, #tpu.memory_space<vmem>>, %arg9: memref<1x1x2x128xf32, #tpu.memory_space<vmem>>) attributes {dimension_semantics = [#tpu.dimension_semantics<parallel>, #tpu.dimension_semantics<parallel>], iteration_bounds = array<i64: 2, 2>, scalar_prefetch = 0 : i64, scratch_operands = 0 : i64, tpu.core_type = #tpu.core_type<tc>, window_params = [{pipeline_mode = #tpu.pipeline_mode<synchronous>, transform_indices = @transform_0, window_bounds = array<i64: 1, 128>}, {pipeline_mode = #tpu.pipeline_mode<synchronous>, transform_indices = @transform_1, window_bounds = array<i64: 1, 128>}, {transform_indices = @transform_2, window_bounds = array<i64: 1, 8, 16, 128>}, {transform_indices = @transform_3, window_bounds = array<i64: 1, 1, 16, 128>}, {transform_indices = @transform_4, window_bounds = array<i64: 1, 1, 16, 128>}, {pipeline_mode = #tpu.pipeline_mode<synchronous>, transform_indices = @transform_5, window_bounds = array<i64: 3, 384, 128>}, {transform_indices = @transform_6, window_bounds = array<i64: 1, 8, 16, 128>}, {transform_indices = @transform_7, window_bounds = array<i64: 1, 1, 2, 128>}]} {
    %c8_i32 = arith.constant 8 : i32
    %0 = arith.muli %arg1, %c8_i32 : i32
    %c0 = arith.constant 0 : index
    %c0_0 = arith.constant 0 : index
    %1 = vector.load %arg2[%c0, %c0_0] : memref<1x128xf32, #tpu.memory_space<vmem>>, vector<1x128xf32>
    %c0_1 = arith.constant 0 : index
    %c0_2 = arith.constant 0 : index
    %2 = vector.load %arg3[%c0_1, %c0_2] : memref<1x128xf32, #tpu.memory_space<vmem>>, vector<1x128xf32>
    %c0_3 = arith.constant 0 : index
    %c0_4 = arith.constant 0 : index
    %c0_5 = arith.constant 0 : index
    %c0_6 = arith.constant 0 : index
    %3 = vector.load %arg4[%c0_3, %c0_4, %c0_5, %c0_6] : memref<1x8x16x128xbf16, #tpu.memory_space<vmem>>, vector<1x8x16x128xbf16>
    %4 = vector.shape_cast %3 : vector<1x8x16x128xbf16> to vector<8x16x128xbf16>
    %5 = arith.extf %4 : vector<8x16x128xbf16> to vector<8x16x128xf32>
    %6 = vector.shape_cast %1 : vector<1x128xf32> to vector<1x1x128xf32>
    %7 = vector.broadcast %6 : vector<1x1x128xf32> to vector<8x16x128xf32>
    %8 = arith.mulf %5, %7 : vector<8x16x128xf32>
    %9 = vector.shape_cast %2 : vector<1x128xf32> to vector<1x1x128xf32>
    %10 = vector.broadcast %9 : vector<1x1x128xf32> to vector<8x16x128xf32>
    %11 = arith.addf %8, %10 : vector<8x16x128xf32>
    %cst = arith.constant 0.000000e+00 : f32
    %12 = vector.broadcast %cst : f32 to vector<8x16x128xf32>
    %13 = arith.maximumf %11, %12 : vector<8x16x128xf32>
    %c0_7 = arith.constant 0 : index
    %c0_8 = arith.constant 0 : index
    %c0_9 = arith.constant 0 : index
    %c0_10 = arith.constant 0 : index
    %14 = vector.load %arg5[%c0_7, %c0_8, %c0_9, %c0_10] : memref<1x1x16x128xbf16, #tpu.memory_space<vmem>>, vector<1x1x16x128xbf16>
    %15 = vector.shape_cast %14 : vector<1x1x16x128xbf16> to vector<1x16x128xbf16>
    %16 = arith.extf %15 : vector<1x16x128xbf16> to vector<1x16x128xf32>
    %17 = vector.shape_cast %1 : vector<1x128xf32> to vector<1x1x128xf32>
    %18 = vector.broadcast %17 : vector<1x1x128xf32> to vector<1x16x128xf32>
    %19 = arith.mulf %16, %18 : vector<1x16x128xf32>
    %20 = vector.shape_cast %2 : vector<1x128xf32> to vector<1x1x128xf32>
    %21 = vector.broadcast %20 : vector<1x1x128xf32> to vector<1x16x128xf32>
    %22 = arith.addf %19, %21 : vector<1x16x128xf32>
    %cst_11 = arith.constant 0.000000e+00 : f32
    %23 = vector.broadcast %cst_11 : f32 to vector<1x16x128xf32>
    %24 = arith.maximumf %22, %23 : vector<1x16x128xf32>
    %c1_i32 = arith.constant 1 : i32
    %25 = arith.cmpi sge, %0, %c1_i32 : i32
    %cst_12 = arith.constant 1.000000e+00 : f32
    %cst_13 = arith.constant 0.000000e+00 : f32
    %26 = arith.select %25, %cst_12, %cst_13 : f32
    %27 = vector.broadcast %26 : f32 to vector<1x16x128xf32>
    %28 = arith.mulf %24, %27 : vector<1x16x128xf32>
    %c0_14 = arith.constant 0 : index
    %c0_15 = arith.constant 0 : index
    %c0_16 = arith.constant 0 : index
    %c0_17 = arith.constant 0 : index
    %29 = vector.load %arg6[%c0_14, %c0_15, %c0_16, %c0_17] : memref<1x1x16x128xbf16, #tpu.memory_space<vmem>>, vector<1x1x16x128xbf16>
    %30 = vector.shape_cast %29 : vector<1x1x16x128xbf16> to vector<1x16x128xbf16>
    %31 = arith.extf %30 : vector<1x16x128xbf16> to vector<1x16x128xf32>
    %32 = vector.shape_cast %1 : vector<1x128xf32> to vector<1x1x128xf32>
    %33 = vector.broadcast %32 : vector<1x1x128xf32> to vector<1x16x128xf32>
    %34 = arith.mulf %31, %33 : vector<1x16x128xf32>
    %35 = vector.shape_cast %2 : vector<1x128xf32> to vector<1x1x128xf32>
    %36 = vector.broadcast %35 : vector<1x1x128xf32> to vector<1x16x128xf32>
    %37 = arith.addf %34, %36 : vector<1x16x128xf32>
    %cst_18 = arith.constant 0.000000e+00 : f32
    %38 = vector.broadcast %cst_18 : f32 to vector<1x16x128xf32>
    %39 = arith.maximumf %37, %38 : vector<1x16x128xf32>
    %c8_i32_19 = arith.constant 8 : i32
    %40 = arith.addi %0, %c8_i32_19 : i32
    %c16_i32 = arith.constant 16 : i32
    %41 = arith.cmpi slt, %40, %c16_i32 : i32
    %cst_20 = arith.constant 1.000000e+00 : f32
    %cst_21 = arith.constant 0.000000e+00 : f32
    %42 = arith.select %41, %cst_20, %cst_21 : f32
    %43 = vector.broadcast %42 : f32 to vector<1x16x128xf32>
    %44 = arith.mulf %39, %43 : vector<1x16x128xf32>
    %45 = tpu.concatenate %28, %13, %44 in 0 : vector<1x16x128xf32>, vector<8x16x128xf32>, vector<1x16x128xf32> -> vector<10x16x128xf32>
    %46 = tpu.iota {dimensions = array<i32: 1>} : vector<1x16x1xi32>
    %c0_i32 = arith.constant 0 : i32
    %47 = vector.broadcast %c0_i32 : i32 to vector<1x16x1xi32>
    %48 = arith.cmpi ne, %46, %47 : vector<1x16x1xi32>
    %49 = arith.extui %48 : vector<1x16x1xi1> to vector<1x16x1xi32>
    %50 = arith.sitofp %49 : vector<1x16x1xi32> to vector<1x16x1xf32>
    %c15_i32 = arith.constant 15 : i32
    %51 = vector.broadcast %c15_i32 : i32 to vector<1x16x1xi32>
    %52 = arith.cmpi ne, %46, %51 : vector<1x16x1xi32>
    %53 = arith.extui %52 : vector<1x16x1xi1> to vector<1x16x1xi32>
    %54 = arith.sitofp %53 : vector<1x16x1xi32> to vector<1x16x1xf32>
    %c1_i32_22 = arith.constant 1 : i32
    %55 = tpu.dynamic_rotate %45 by %c1_i32_22 dim 1 : vector<10x16x128xf32>, i32 -> vector<10x16x128xf32>
    %56 = vector.broadcast %50 : vector<1x16x1xf32> to vector<10x16x128xf32>
    %57 = arith.mulf %55, %56 : vector<10x16x128xf32>
    %c15_i32_23 = arith.constant 15 : i32
    %58 = tpu.dynamic_rotate %45 by %c15_i32_23 dim 1 : vector<10x16x128xf32>, i32 -> vector<10x16x128xf32>
    %59 = vector.broadcast %54 : vector<1x16x1xf32> to vector<10x16x128xf32>
    %60 = arith.mulf %58, %59 : vector<10x16x128xf32>
    %61 = arith.truncf %57 : vector<10x16x128xf32> to vector<10x16x128xbf16>
    %62 = arith.truncf %45 : vector<10x16x128xf32> to vector<10x16x128xbf16>
    %63 = arith.truncf %60 : vector<10x16x128xf32> to vector<10x16x128xbf16>
    %64 = tpu.concatenate %61, %62, %63 in 2 : vector<10x16x128xbf16>, vector<10x16x128xbf16>, vector<10x16x128xbf16> -> vector<10x16x384xbf16>
    %65 = vector.extract_strided_slice %64 {offsets = [0, 0, 0], sizes = [8, 16, 384], strides = [1, 1, 1]} : vector<10x16x384xbf16> to vector<8x16x384xbf16>
    %66 = vector.shape_cast %65 : vector<8x16x384xbf16> to vector<128x384xbf16>
    %c0_24 = arith.constant 0 : index
    %c0_25 = arith.constant 0 : index
    %c0_26 = arith.constant 0 : index
    %67 = vector.load %arg7[%c0_24, %c0_25, %c0_26] : memref<3x384x128xbf16, #tpu.memory_space<vmem>>, vector<1x384x128xbf16>
    %68 = vector.shape_cast %67 : vector<1x384x128xbf16> to vector<384x128xbf16>
    %cst_27 = arith.constant dense<0.000000e+00> : vector<128x128xf32>
    %69 = tpu.matmul %66, %68, %cst_27 {dimension_numbers = #tpu.dot_dimension_numbers<[1], [0], [0], [1], [0, 0, 1, 1], [], []>} : vector<128x384xbf16>, vector<384x128xbf16>, vector<128x128xf32> -> vector<128x128xf32>
    %70 = vector.extract_strided_slice %64 {offsets = [1, 0, 0], sizes = [8, 16, 384], strides = [1, 1, 1]} : vector<10x16x384xbf16> to vector<8x16x384xbf16>
    %71 = vector.shape_cast %70 : vector<8x16x384xbf16> to vector<128x384xbf16>
    %c1 = arith.constant 1 : index
    %c0_28 = arith.constant 0 : index
    %c0_29 = arith.constant 0 : index
    %72 = vector.load %arg7[%c1, %c0_28, %c0_29] : memref<3x384x128xbf16, #tpu.memory_space<vmem>>, vector<1x384x128xbf16>
    %73 = vector.shape_cast %72 : vector<1x384x128xbf16> to vector<384x128xbf16>
    %cst_30 = arith.constant dense<0.000000e+00> : vector<128x128xf32>
    %74 = tpu.matmul %71, %73, %cst_30 {dimension_numbers = #tpu.dot_dimension_numbers<[1], [0], [0], [1], [0, 0, 1, 1], [], []>} : vector<128x384xbf16>, vector<384x128xbf16>, vector<128x128xf32> -> vector<128x128xf32>
    %75 = arith.addf %69, %74 : vector<128x128xf32>
    %76 = vector.extract_strided_slice %64 {offsets = [2, 0, 0], sizes = [8, 16, 384], strides = [1, 1, 1]} : vector<10x16x384xbf16> to vector<8x16x384xbf16>
    %77 = vector.shape_cast %76 : vector<8x16x384xbf16> to vector<128x384xbf16>
    %c2 = arith.constant 2 : index
    %c0_31 = arith.constant 0 : index
    %c0_32 = arith.constant 0 : index
    %78 = vector.load %arg7[%c2, %c0_31, %c0_32] : memref<3x384x128xbf16, #tpu.memory_space<vmem>>, vector<1x384x128xbf16>
    %79 = vector.shape_cast %78 : vector<1x384x128xbf16> to vector<384x128xbf16>
    %cst_33 = arith.constant dense<0.000000e+00> : vector<128x128xf32>
    %80 = tpu.matmul %77, %79, %cst_33 {dimension_numbers = #tpu.dot_dimension_numbers<[1], [0], [0], [1], [0, 0, 1, 1], [], []>} : vector<128x384xbf16>, vector<384x128xbf16>, vector<128x128xf32> -> vector<128x128xf32>
    %81 = arith.addf %75, %80 : vector<128x128xf32>
    %82 = arith.truncf %81 : vector<128x128xf32> to vector<128x128xbf16>
    %83 = vector.shape_cast %82 : vector<128x128xbf16> to vector<1x8x16x128xbf16>
    %c0_34 = arith.constant 0 : index
    %c0_35 = arith.constant 0 : index
    %c0_36 = arith.constant 0 : index
    %c0_37 = arith.constant 0 : index
    %84 = vector.load %arg8[%c0_34, %c0_35, %c0_36, %c0_37] : memref<1x8x16x128xbf16, #tpu.memory_space<vmem>>, vector<1x8x16x128xbf16>
    tpu.vector_store %arg8[%c0_34, %c0_35, %c0_36, %c0_37], %83 {strides = array<i32>} : memref<1x8x16x128xbf16, #tpu.memory_space<vmem>>, vector<1x8x16x128xbf16>,
    %85 = arith.extf %82 : vector<128x128xbf16> to vector<128x128xf32>
    %cst_38 = arith.constant dense<0.000000e+00> : vector<128xf32>
    %86 = vector.multi_reduction <add>, %85, %cst_38 [0] : vector<128x128xf32> to vector<128xf32>
    %87 = vector.shape_cast %86 : vector<128xf32> to vector<1x128xf32>
    %88 = arith.mulf %85, %85 : vector<128x128xf32>
    %cst_39 = arith.constant dense<0.000000e+00> : vector<128xf32>
    %89 = vector.multi_reduction <add>, %88, %cst_39 [0] : vector<128x128xf32> to vector<128xf32>
    %90 = vector.shape_cast %89 : vector<128xf32> to vector<1x128xf32>
    %91 = tpu.concatenate %87, %90 in 0 : vector<1x128xf32>, vector<1x128xf32> -> vector<2x128xf32>
    %92 = vector.shape_cast %91 : vector<2x128xf32> to vector<1x1x2x128xf32>
    %c0_40 = arith.constant 0 : index
    %c0_41 = arith.constant 0 : index
    %c0_42 = arith.constant 0 : index
    %c0_43 = arith.constant 0 : index
    %93 = vector.load %arg9[%c0_40, %c0_41, %c0_42, %c0_43] : memref<1x1x2x128xf32, #tpu.memory_space<vmem>>, vector<1x1x2x128xf32>
    tpu.vector_store %arg9[%c0_40, %c0_41, %c0_42, %c0_43], %92 {strides = array<i32>} : memref<1x1x2x128xf32, #tpu.memory_space<vmem>>, vector<1x1x2x128xf32>,
    return
  }
  func.func @transform_0(%arg0: i32, %arg1: i32) -> (i32, i32) {
    %c0_i32 = arith.constant 0 : i32
    %c0_i32_0 = arith.constant 0 : i32
    %c0_i32_1 = arith.constant 0 : i32
    return %c0_i32, %c0_i32_0 : i32, i32
  }
  func.func @transform_1(%arg0: i32, %arg1: i32) -> (i32, i32) {
    %c0_i32 = arith.constant 0 : i32
    %c0_i32_0 = arith.constant 0 : i32
    %c0_i32_1 = arith.constant 0 : i32
    return %c0_i32, %c0_i32_0 : i32, i32
  }
  func.func @transform_2(%arg0: i32, %arg1: i32) -> (i32, i32, i32, i32) {
    %c0_i32 = arith.constant 0 : i32
    %c0_i32_0 = arith.constant 0 : i32
    %c0_i32_1 = arith.constant 0 : i32
    return %arg0, %arg1, %c0_i32, %c0_i32_0 : i32, i32, i32, i32
  }
  func.func @transform_3(%arg0: i32, %arg1: i32) -> (i32, i32, i32, i32) {
    %c8_i32 = arith.constant 8 : i32
    %0 = arith.muli %arg1, %c8_i32 : i32
    %c1_i32 = arith.constant 1 : i32
    %1 = arith.subi %0, %c1_i32 : i32
    %c0_i32 = arith.constant 0 : i32
    %2 = arith.maxsi %1, %c0_i32 : i32
    %c0_i32_0 = arith.constant 0 : i32
    %c0_i32_1 = arith.constant 0 : i32
    %c0_i32_2 = arith.constant 0 : i32
    return %arg0, %2, %c0_i32_0, %c0_i32_1 : i32, i32, i32, i32
  }
  func.func @transform_4(%arg0: i32, %arg1: i32) -> (i32, i32, i32, i32) {
    %c8_i32 = arith.constant 8 : i32
    %0 = arith.muli %arg1, %c8_i32 : i32
    %c8_i32_0 = arith.constant 8 : i32
    %1 = arith.addi %0, %c8_i32_0 : i32
    %c15_i32 = arith.constant 15 : i32
    %2 = arith.minsi %1, %c15_i32 : i32
    %c0_i32 = arith.constant 0 : i32
    %c0_i32_1 = arith.constant 0 : i32
    %c0_i32_2 = arith.constant 0 : i32
    return %arg0, %2, %c0_i32, %c0_i32_1 : i32, i32, i32, i32
  }
  func.func @transform_5(%arg0: i32, %arg1: i32) -> (i32, i32, i32) {
    %c0_i32 = arith.constant 0 : i32
    %c0_i32_0 = arith.constant 0 : i32
    %c0_i32_1 = arith.constant 0 : i32
    %c0_i32_2 = arith.constant 0 : i32
    return %c0_i32, %c0_i32_0, %c0_i32_1 : i32, i32, i32
  }
  func.func @transform_6(%arg0: i32, %arg1: i32) -> (i32, i32, i32, i32) {
    %c0_i32 = arith.constant 0 : i32
    %c0_i32_0 = arith.constant 0 : i32
    %c0_i32_1 = arith.constant 0 : i32
    return %arg0, %arg1, %c0_i32, %c0_i32_0 : i32, i32, i32, i32
  }
  func.func @transform_7(%arg0: i32, %arg1: i32) -> (i32, i32, i32, i32) {
    %c0_i32 = arith.constant 0 : i32
    %c0_i32_0 = arith.constant 0 : i32
    %c0_i32_1 = arith.constant 0 : i32
    return %arg0, %arg1, %c0_i32, %c0_i32_0 : i32, i32, i32, i32
  }
}

</mosaic_0001>

<bundles_post_ra>
// kernel: unet_decoder_block.5
= control target key start
LH: loop header
LB: loop body
LE: loop exit
PB: predicated region body
PF: predicated region fallthrough
CT: control target
= control target key end

     0   :  { %s673_s12 = smov 0   ;;  %s675_s13 = smov 0   ;;  %s836_s0 = inlined_call_operand.vmem [shape: f32[1,128], index: 0, kind: input, shape index: {}]   ;;  %s837_s1 = inlined_call_operand.vmem [shape: f32[1,128], index: 1, kind: input, shape index: {}]   ;;  %s838_s2 = inlined_call_operand.vmem [shape: bf16[2,16,16,128], index: 2, kind: input, shape index: {}]   ;;  %s839_s3 = inlined_call_operand.vmem [shape: f32[2,16,16,128], index: 3, kind: output, shape index: {}]  }
   0x1   :  { %s677_s14 = smov 0  }
   0x2 LB: > { %s25_s15 = sadd.s32 1, %s647_s13  ;;  %p515_p0 = scmp.ge.s32.totalorder %s651_s14, 1  ;;  %s651_s14 = sphi %s677_s14, %s13_s14   ;;  %s647_s13 = sphi %s675_s13, %s841_s13   ;;  %s643_s12 = sphi %s673_s12, %s840_s12  }
   0x3   : > { %p27_p1 = scmp.ge.s32.totalorder %s25_s15, 2  ;;  %p159_p2 = scmp.lt.s32.totalorder %s651_s14, 3 }
   0x5   : > { %s843_s15 = smov (%p27_p1, %s25_s15), 0  ;;  %p160_p3 = pnand %p515_p0, %p159_p2 }
   0x6   : > { %p194_p4 = scmp.lt.s32.totalorder (!%p160_p3), %s643_s12, 1 }
   0x7   : > { %163 = sbr.rel (%p160_p3) target bundleno = 56 (0x38), region = 32 }
   0xc   : > { %s845_s12 = smov (!%p194_p4, %s643_s12), 1  ;;  %v702_v0 = vld [vmem:[%s836_s0] ss:$0 sm:$0xff] }
   0xd   : > { %s522_s16 = sshll.u32 %s845_s12, 7  ;;  %v710_v5 = vld [vmem:[%s837_s1] ss:$0 sm:$0xff]  ;;  %s523_s24 = sshll.u32 %s845_s12, 8 }
   0xe   : > { %s697_s19 = scalar_lea.vmem %s838_s2, %s522_s16  ;;  %s729_s27 = scalar_lea.vmem %s839_s3, %s523_s24 }
   0xf   : > { %v525_v1 = vld [vmem:[%s697_s19] sm:$0xff]   ;;  %v588_v2 = vld [vmem:[%s697_s19 + $0x8] sm:$0xff]   ;;  %v589_v3 = vld [vmem:[%s697_s19 + $0x10] sm:$0xff]  }
  0x10   : > { %v526_v4 = vunpack.c.l.bf16 %v525_v1  ;;  %v527_v6 = vunpack.c.h.bf16 %v525_v1  ;;  %v530_v7 = vunpack.c.l.bf16 %v588_v2  ;;  %v531_v8 = vunpack.c.h.bf16 %v588_v2  ;;  %v590_v9 = vld [vmem:[%s697_s19 + $0x18] sm:$0xff]   ;;  %v591_v30 = vld [vmem:[%s697_s19 + $0x20] sm:$0xff]   ;;  %v592_v31 = vld [vmem:[%s697_s19 + $0x28] sm:$0xff]  }
  0x11   : > { %v534_v10 = vunpack.c.l.bf16 %v589_v3  ;;  %v535_v11 = vunpack.c.h.bf16 %v589_v3  ;;  %v538_v12 = vunpack.c.l.bf16 %v590_v9  ;;  %v539_v13 = vunpack.c.h.bf16 %v590_v9  ;;  %v593_v36 = vld [vmem:[%s697_s19 + $0x30] sm:$0xff]   ;;  %v594_v37 = vld [vmem:[%s697_s19 + $0x38] sm:$0xff]   ;;  %v595_v3 = vld [vmem:[%s697_s19 + $0x40] sm:$0xff]  }
  0x12   : > { %v283_v14 = vmul.f32 %v702_v0, %v526_v4  ;;  %v284_v15 = vmul.f32 %v702_v0, %v527_v6  ;;  %v285_v16 = vmul.f32 %v702_v0, %v530_v7  ;;  %v286_v17 = vmul.f32 %v702_v0, %v531_v8  ;;  %v596_v4 = vld [vmem:[%s697_s19 + $0x48] sm:$0xff]   ;;  %v597_v6 = vld [vmem:[%s697_s19 + $0x50] sm:$0xff]  }
  0x13   : > { %v287_v18 = vmul.f32 %v702_v0, %v534_v10  ;;  %v288_v19 = vmul.f32 %v702_v0, %v535_v11  ;;  %v289_v20 = vmul.f32 %v702_v0, %v538_v12  ;;  %v290_v21 = vmul.f32 %v702_v0, %v539_v13  ;;  %v598_v11 = vld [vmem:[%s697_s19 + $0x58] sm:$0xff]  }
  0x14   : > { %v319_v22 = vadd.f32 %v710_v5, %v283_v14  ;;  %v320_v23 = vadd.f32 %v710_v5, %v284_v15  ;;  %v321_v24 = vadd.f32 %v710_v5, %v285_v16  ;;  %v322_v25 = vadd.f32 %v710_v5, %v286_v17 }
  0x15   : > { %v323_v26 = vadd.f32 %v710_v5, %v287_v18  ;;  %v324_v27 = vadd.f32 %v710_v5, %v288_v19  ;;  %v325_v28 = vadd.f32 %v710_v5, %v289_v20  ;;  %v326_v29 = vadd.f32 %v710_v5, %v290_v21 }
  0x16   : > { %v351_v32 = vmax.f32 %v319_v22, 0.0  ;;  %v352_v33 = vmax.f32 %v320_v23, 0.0  ;;  %v353_v34 = vmax.f32 %v321_v24, 0.0  ;;  %v354_v35 = vmax.f32 %v322_v25, 0.0 }
  0x17   : > { %v355_v38 = vmax.f32 %v323_v26, 0.0  ;;  %v356_v39 = vmax.f32 %v324_v27, 0.0  ;;  %v357_v40 = vmax.f32 %v325_v28, 0.0  ;;  %v358_v41 = vmax.f32 %v326_v29, 0.0 }
  0x18   : > { %383 = vst [vmem:[%s729_s27] sm:$0xff] %v351_v32  ;;  %v542_v42 = vunpack.c.l.bf16 %v591_v30  ;;  %v543_v43 = vunpack.c.h.bf16 %v591_v30  ;;  %v546_v44 = vunpack.c.l.bf16 %v592_v31  ;;  %v547_v45 = vunpack.c.h.bf16 %v592_v31 }
  0x19   : > { %384 = vst [vmem:[%s729_s27 + $0x8] sm:$0xff] %v352_v33  ;;  %v550_v46 = vunpack.c.l.bf16 %v593_v36  ;;  %v551_v47 = vunpack.c.h.bf16 %v593_v36  ;;  %v554_v48 = vunpack.c.l.bf16 %v594_v37  ;;  %v555_v49 = vunpack.c.h.bf16 %v594_v37 }
  0x1a   : > { %385 = vst [vmem:[%s729_s27 + $0x10] sm:$0xff] %v353_v34  ;;  %v291_v50 = vmul.f32 %v702_v0, %v542_v42  ;;  %v292_v51 = vmul.f32 %v702_v0, %v543_v43  ;;  %v293_v52 = vmul.f32 %v702_v0, %v546_v44  ;;  %v294_v53 = vmul.f32 %v702_v0, %v547_v45  ;;  %v601_v42 = vld [vmem:[%s697_s19 + $0x70] sm:$0xff]  }
  0x1b   : > { %386 = vst [vmem:[%s729_s27 + $0x18] sm:$0xff] %v354_v35  ;;  %v295_v54 = vmul.f32 %v702_v0, %v550_v46  ;;  %v296_v55 = vmul.f32 %v702_v0, %v551_v47  ;;  %v297_v56 = vmul.f32 %v702_v0, %v554_v48  ;;  %v298_v57 = vmul.f32 %v702_v0, %v555_v49  ;;  %v602_v47 = vld [vmem:[%s697_s19 + $0x78] sm:$0xff]  }
  0x1c   : > { %387 = vst [vmem:[%s729_s27 + $0x20] sm:$0xff] %v355_v38  ;;  %v327_v58 = vadd.f32 %v710_v5, %v291_v50  ;;  %v328_v59 = vadd.f32 %v710_v5, %v292_v51  ;;  %v329_v60 = vadd.f32 %v710_v5, %v293_v52  ;;  %v330_v61 = vadd.f32 %v710_v5, %v294_v53 }
  0x1d   : > { %388 = vst [vmem:[%s729_s27 + $0x28] sm:$0xff] %v356_v39  ;;  %v331_v62 = vadd.f32 %v710_v5, %v295_v54  ;;  %v332_v63 = vadd.f32 %v710_v5, %v296_v55  ;;  %v333_v1 = vadd.f32 %v710_v5, %v297_v56  ;;  %v334_v2 = vadd.f32 %v710_v5, %v298_v57 }
  0x1e   : > { %389 = vst [vmem:[%s729_s27 + $0x30] sm:$0xff] %v357_v40  ;;  %v359_v7 = vmax.f32 %v327_v58, 0.0  ;;  %v360_v8 = vmax.f32 %v328_v59, 0.0  ;;  %v361_v9 = vmax.f32 %v329_v60, 0.0  ;;  %v362_v10 = vmax.f32 %v330_v61, 0.0  ;;  %v599_v40 = vld [vmem:[%s697_s19 + $0x60] sm:$0xff]  }
  0x1f   : > { %390 = vst [vmem:[%s729_s27 + $0x38] sm:$0xff] %v358_v41  ;;  %v363_v12 = vmax.f32 %v331_v62, 0.0  ;;  %v364_v13 = vmax.f32 %v332_v63, 0.0  ;;  %v365_v14 = vmax.f32 %v333_v1, 0.0  ;;  %v366_v15 = vmax.f32 %v334_v2, 0.0  ;;  %v600_v41 = vld [vmem:[%s697_s19 + $0x68] sm:$0xff]  }
  0x20   : > { %391 = vst [vmem:[%s729_s27 + $0x40] sm:$0xff] %v359_v7  ;;  %v558_v16 = vunpack.c.l.bf16 %v595_v3  ;;  %v559_v17 = vunpack.c.h.bf16 %v595_v3  ;;  %v562_v18 = vunpack.c.l.bf16 %v596_v4  ;;  %v563_v19 = vunpack.c.h.bf16 %v596_v4 }
  0x21   : > { %392 = vst [vmem:[%s729_s27 + $0x48] sm:$0xff] %v360_v8  ;;  %v566_v20 = vunpack.c.l.bf16 %v597_v6  ;;  %v567_v21 = vunpack.c.h.bf16 %v597_v6  ;;  %v570_v22 = vunpack.c.l.bf16 %v598_v11  ;;  %v571_v23 = vunpack.c.h.bf16 %v598_v11 }
  0x22   : > { %393 = vst [vmem:[%s729_s27 + $0x50] sm:$0xff] %v361_v9  ;;  %v299_v24 = vmul.f32 %v702_v0, %v558_v16  ;;  %v300_v25 = vmul.f32 %v702_v0, %v559_v17  ;;  %v301_v26 = vmul.f32 %v702_v0, %v562_v18  ;;  %v302_v27 = vmul.f32 %v702_v0, %v563_v19 }
  0x23   : > { %394 = vst [vmem:[%s729_s27 + $0x58] sm:$0xff] %v362_v10  ;;  %v303_v28 = vmul.f32 %v702_v0, %v566_v20  ;;  %v304_v29 = vmul.f32 %v702_v0, %v567_v21  ;;  %v305_v30 = vmul.f32 %v702_v0, %v570_v22  ;;  %v306_v31 = vmul.f32 %v702_v0, %v571_v23 }
  0x24   : > { %395 = vst [vmem:[%s729_s27 + $0x60] sm:$0xff] %v363_v12  ;;  %v335_v32 = vadd.f32 %v710_v5, %v299_v24  ;;  %v336_v33 = vadd.f32 %v710_v5, %v300_v25  ;;  %v337_v34 = vadd.f32 %v710_v5, %v301_v26  ;;  %v338_v35 = vadd.f32 %v710_v5, %v302_v27 }
  0x25   : > { %396 = vst [vmem:[%s729_s27 + $0x68] sm:$0xff] %v364_v13  ;;  %v339_v36 = vadd.f32 %v710_v5, %v303_v28  ;;  %v340_v37 = vadd.f32 %v710_v5, %v304_v29  ;;  %v341_v38 = vadd.f32 %v710_v5, %v305_v30  ;;  %v342_v39 = vadd.f32 %v710_v5, %v306_v31 }
  0x26   : > { %397 = vst [vmem:[%s729_s27 + $0x70] sm:$0xff] %v365_v14  ;;  %v367_v43 = vmax.f32 %v335_v32, 0.0  ;;  %v368_v44 = vmax.f32 %v336_v33, 0.0  ;;  %v369_v45 = vmax.f32 %v337_v34, 0.0  ;;  %v370_v46 = vmax.f32 %v338_v35, 0.0 }
  0x27   : > { %398 = vst [vmem:[%s729_s27 + $0x78] sm:$0xff] %v366_v15  ;;  %v371_v48 = vmax.f32 %v339_v36, 0.0  ;;  %v372_v49 = vmax.f32 %v340_v37, 0.0  ;;  %v373_v50 = vmax.f32 %v341_v38, 0.0  ;;  %v374_v51 = vmax.f32 %v342_v39, 0.0 }
  0x28   : > { %399 = vst [vmem:[%s729_s27 + $0x80] sm:$0xff] %v367_v43  ;;  %v574_v52 = vunpack.c.l.bf16 %v599_v40  ;;  %v575_v53 = vunpack.c.h.bf16 %v599_v40  ;;  %v578_v54 = vunpack.c.l.bf16 %v600_v41  ;;  %v579_v55 = vunpack.c.h.bf16 %v600_v41 }
  0x29   : > { %400 = vst [vmem:[%s729_s27 + $0x88] sm:$0xff] %v368_v44  ;;  %v582_v56 = vunpack.c.l.bf16 %v601_v42  ;;  %v583_v57 = vunpack.c.h.bf16 %v601_v42  ;;  %v586_v58 = vunpack.c.l.bf16 %v602_v47  ;;  %v587_v59 = vunpack.c.h.bf16 %v602_v47 }
  0x2a   : > { %401 = vst [vmem:[%s729_s27 + $0x90] sm:$0xff] %v369_v45  ;;  %v307_v60 = vmul.f32 %v702_v0, %v574_v52  ;;  %v308_v61 = vmul.f32 %v702_v0, %v575_v53  ;;  %v309_v62 = vmul.f32 %v702_v0, %v578_v54  ;;  %v310_v63 = vmul.f32 %v702_v0, %v579_v55 }
  0x2b   : > { %402 = vst [vmem:[%s729_s27 + $0x98] sm:$0xff] %v370_v46  ;;  %v311_v1 = vmul.f32 %v702_v0, %v582_v56  ;;  %v312_v2 = vmul.f32 %v702_v0, %v583_v57  ;;  %v313_v3 = vmul.f32 %v702_v0, %v586_v58  ;;  %v314_v4 = vmul.f32 %v702_v0, %v587_v59 }
  0x2c   : > { %403 = vst [vmem:[%s729_s27 + $0xa0] sm:$0xff] %v371_v48  ;;  %v343_v6 = vadd.f32 %v710_v5, %v307_v60  ;;  %v344_v7 = vadd.f32 %v710_v5, %v308_v61  ;;  %v345_v8 = vadd.f32 %v710_v5, %v309_v62  ;;  %v346_v9 = vadd.f32 %v710_v5, %v310_v63 }
  0x2d   : > { %404 = vst [vmem:[%s729_s27 + $0xa8] sm:$0xff] %v372_v49  ;;  %v347_v10 = vadd.f32 %v710_v5, %v311_v1  ;;  %v348_v11 = vadd.f32 %v710_v5, %v312_v2  ;;  %v349_v14 = vadd.f32 %v710_v5, %v313_v3  ;;  %v350_v16 = vadd.f32 %v710_v5, %v314_v4 }
  0x2e   : > { %405 = vst [vmem:[%s729_s27 + $0xb0] sm:$0xff] %v373_v50  ;;  %v375_v0 = vmax.f32 %v343_v6, 0.0  ;;  %v376_v12 = vmax.f32 %v344_v7, 0.0  ;;  %v377_v13 = vmax.f32 %v345_v8, 0.0  ;;  %v378_v15 = vmax.f32 %v346_v9, 0.0 }
  0x2f   : > { %406 = vst [vmem:[%s729_s27 + $0xb8] sm:$0xff] %v374_v51  ;;  %v379_v17 = vmax.f32 %v347_v10, 0.0  ;;  %v380_v18 = vmax.f32 %v348_v11, 0.0  ;;  %v381_v19 = vmax.f32 %v349_v14, 0.0  ;;  %v382_v20 = vmax.f32 %v350_v16, 0.0 }
  0x30   : > { %407 = vst [vmem:[%s729_s27 + $0xc0] sm:$0xff] %v375_v0 }
  0x31   : > { %408 = vst [vmem:[%s729_s27 + $0xc8] sm:$0xff] %v376_v12 }
  0x32   : > { %409 = vst [vmem:[%s729_s27 + $0xd0] sm:$0xff] %v377_v13 }
  0x33   : > { %410 = vst [vmem:[%s729_s27 + $0xd8] sm:$0xff] %v378_v15 }
  0x34   : > { %411 = vst [vmem:[%s729_s27 + $0xe0] sm:$0xff] %v379_v17 }
  0x35   : > { %412 = vst [vmem:[%s729_s27 + $0xe8] sm:$0xff] %v380_v18 }
  0x36   : > { %413 = vst [vmem:[%s729_s27 + $0xf0] sm:$0xff] %v381_v19 }
  0x37   : > { %414 = vst [vmem:[%s729_s27 + $0xf8] sm:$0xff] %v382_v20 }
  0x38 PF: > { %s13_s14 = sadd.s32 1, %s651_s14   ;;  %s840_s12 = smov %s647_s13 }
  0x39   : > { %p10_p5 = scmp.ge.s32.totalorder %s13_s14, 4   ;;  %s841_s13 = smov %s843_s15 }
  0x3b   :  { %12 = sbr.rel (!%p10_p5) target bundleno = 2 (0x2), region = 62 }

// kernel: unet_decoder_block.3
= control target key start
LH: loop header
LB: loop body
LE: loop exit
PB: predicated region body
PF: predicated region fallthrough
CT: control target
= control target key end

     0   :  { %s3022_s24 = smov 0   ;;  %s3024_s25 = smov 0   ;;  %s3850_s0 = inlined_call_operand.vmem [shape: f32[1,128], index: 0, kind: input, shape index: {}]   ;;  %s3851_s1 = inlined_call_operand.vmem [shape: f32[1,128], index: 1, kind: input, shape index: {}]   ;;  %s3852_s2 = inlined_call_operand.vmem [shape: bf16[2,16,16,128], index: 2, kind: input, shape index: {}, may-alias: {2,3,4}]   ;;  %s3853_s3 = inlined_call_operand.vmem [shape: bf16[2,16,16,128], index: 3, kind: input, shape index: {}, may-alias: {2,3,4}]   ;;  %s3854_s4 = inlined_call_operand.vmem [shape: bf16[2,16,16,128], index: 4, kind: input, shape index: {}, may-alias: {2,3,4}]   ;;  %s3855_s5 = inlined_call_operand.vmem [shape: bf16[3,384,128], index: 5, kind: input, shape index: {}]   ;;  %s3856_s6 = inlined_call_operand.vmem [shape: bf16[2,16,16,128], index: 6, kind: output, shape index: {0}]   ;;  %s3857_s7 = inlined_call_operand.vmem [shape: f32[2,2,2,128], index: 7, kind: output, shape index: {1}]  }
   0x1   :  { %s3026_s26 = smov 0   ;;  %s3028_s27 = smov 0  }
   0x2   :  { %s3030_s28 = smov 0  }
   0x3 LB: > { %s27_s29 = sadd.s32 1, %s2971_s26  ;;  %s30_s30 = sadd.s32 1, %s2975_s27  ;;  %s2979_s28 = sphi %s3030_s28, %s18_s28   ;;  %s2975_s27 = sphi %s3028_s27, %s3861_s27   ;;  %s2971_s26 = sphi %s3026_s26, %s3860_s26   ;;  %s2967_s25 = sphi %s3024_s25, %s3859_s25   ;;  %s2963_s24 = sphi %s3022_s24, %s3858_s24  }
   0x4   : > { %p28_p0 = scmp.ge.s32.totalorder %s27_s29, 2  ;;  %p2287_p1 = scmp.ge.s32.totalorder %s2979_s28, 1 }
   0x5   : > { %p328_p2 = scmp.lt.s32.totalorder %s2979_s28, 5 }
   0x6   : > { %s3863_s29 = smov (%p28_p0, %s27_s29), 0  ;;  %s3865_s30 = smov (!%p28_p0, %s30_s30), %s2975_s27 }
   0x7   : > { %p329_p3 = pnand %p2287_p1, %p328_p2  ;;  %p32_p4 = scmp.ge.s32.totalorder %s3865_s30, 2 }
   0x8   : > { %s3058_s10 = sshll.u32 (!%p329_p3), %s2963_s24, 3  ;;  %p405_p5 = scmp.lt.s32.totalorder (!%p329_p3), %s2967_s25, 1 }
   0x9   : > { %s3867_s30 = smov (%p32_p4, %s3865_s30), 0  ;;  %332 = sbr.rel (%p329_p3) target bundleno = 487 (0x1e7), region = 44 }
   0xa   : > { %p407_p6 = scmp.lt.s32.totalorder (!%p329_p3), %s3058_s10, 15  ;;  %p549_p9 = scmp.ge.s32.totalorder (!%p329_p3), %s3058_s10, 1 }
   0xb   : > { %s3720_s17 = sadd.s32 (!%p329_p3), 8, %s3058_s10  ;;  %p462_p12 = scmp.lt.s32.totalorder (!%p329_p3), %s2963_s24, 1 }
   0xc   : > { %p434_p10 = scmp.lt.s32.totalorder (!%p329_p3), %s3720_s17, 15  ;;  %p563_p11 = scmp.lt.s32.totalorder (!%p329_p3), %s3720_s17, 16 }
   0xe   : > { %v2737_v0 = vld [vmem:[%s3855_s5 + $0xf8] sm:$0xff]  ;;  %v568_v1 = vlaneseq  ;;  %v2736_v2 = vld [vmem:[%s3855_s5 + $0xf0] sm:$0xff]  ;;  %s3869_s25 = smov (!%p405_p5, %s2967_s25), 1  ;;  %v2735_v4 = vld [vmem:[%s3855_s5 + $0xe8] sm:$0xff]  ;;  %v2981_v7 = vmov 0.0   ;;  %s3875_s24 = smov (!%p462_p12, %s2963_s24), 1 }
   0xf   : > { %1186 = vmatpush.bf16.msra.mxu0 %v2737_v0  ;;  %2872 = vmatpush.bf16.msra.mxu1 %v2737_v0  ;;  %s408_s13 = scalar_select %p407_p6, %s3058_s10, 15  ;;  %v3090_v5 = vld [vmem:[%s3850_s0] ss:$0 sm:$0xff]  ;;  %v2733_v31 = vld [vmem:[%s3855_s5 + $0xd8] sm:$0xff]  ;;  %v2732_v48 = vld [vmem:[%s3855_s5 + $0xd0] sm:$0xff]  ;;  %vm2086_vm4 = vcmask 1040384  }
  0x10   : > { %v3066_v3 = vshrl.u32 %v568_v1, 7  ;;  %2873 = vmatpush.bf16.msra.mxu2 %v2737_v0  ;;  %2874 = vmatpush.bf16.msra.mxu3 %v2737_v0  ;;  %s3070_s14 = sshll.u32 %s3869_s25, 5  ;;  %v2734_v11 = vld [vmem:[%s3855_s5 + $0xe0] sm:$0xff]  ;;  %v2731_v1 = vld [vmem:[%s3855_s5 + $0xc8] sm:$0xff] }
  0x11   : > { %s2289_s15 = sshll.u32 %s408_s13, 1  ;;  %v3105_v14 = vld [vmem:[%s3851_s1] ss:$0 sm:$0xff] }
  0x12   : > { %s3076_s18 = sadd.s32 %s3070_s14, %s2289_s15  ;;  %vm571_vm0 = vcmp.ne.s32.totalorder %v3066_v3, 0  ;;  %vm603_vm1 = vcmp.lt.s32.totalorder %v3066_v3, 1  ;;  %s3109_s15 = sadd.s32 4294967295, %s3058_s10  ;;  %vm664_vm3 = vcmp.lt.s32.totalorder %v3066_v3, 7 }
  0x13   : > { %1187 = vmatpush.bf16.msra.mxu0 %v2736_v2  ;;  %2875 = vmatpush.bf16.msra.mxu1 %v2736_v2  ;;  %s2291_s19 = sshll.u32 %s3076_s18, 2  ;;  %v3094_v8 = vsel %vm571_vm0, 1.0, %v2981_v7  ;;  %p417_p7 = scmp.gt.s32.totalorder %s3109_s15, 0 }
  0x14   : > { %2876 = vmatpush.bf16.msra.mxu2 %v2736_v2  ;;  %2877 = vmatpush.bf16.msra.mxu3 %v2736_v2  ;;  %s3085_s22 = scalar_lea.vmem %s3852_s2, %s2291_s19  ;;  %p2294_p8 = scmp.lt.s32.totalorder %s3109_s15, 15 }
  0x15   : > { %v2779_v6 = vld [vmem:[%s3085_s22] sm:$0xff]   ;;  %v2859_v9 = vld [vmem:[%s3085_s22 + $0x10] sm:$0xff]   ;;  %v3112_v22 = vld [vmem:[%s3085_s22 + $0x8] sm:$0xff]   ;;  %s418_s20 = scalar_select %p417_p7, %s3109_s15, 0 }
  0x16   : > { %v2861_v10 = vld [vmem:[%s3085_s22 + $0x20] sm:$0xff]   ;;  %v2780_v12 = vunpack.c.l.bf16 %v2779_v6  ;;  %v2781_v13 = vunpack.c.h.bf16 %v2779_v6  ;;  %v2788_v15 = vunpack.c.l.bf16 %v2859_v9  ;;  %v2789_v16 = vunpack.c.h.bf16 %v2859_v9  ;;  %v2863_v17 = vld [vmem:[%s3085_s22 + $0x30] sm:$0xff]   ;;  %s435_s10 = scalar_select %p434_p10, %s3720_s17, 15 }
  0x17   : > { %1188 = vmatpush.bf16.msra.mxu0 %v2735_v4  ;;  %2878 = vmatpush.bf16.msra.mxu1 %v2735_v4  ;;  %v2796_v18 = vunpack.c.l.bf16 %v2861_v10  ;;  %v2797_v19 = vunpack.c.h.bf16 %v2861_v10  ;;  %v2804_v20 = vunpack.c.l.bf16 %v2863_v17  ;;  %v2805_v21 = vunpack.c.h.bf16 %v2863_v17  ;;  %s3871_s20 = smov (!%p2294_p8, %s418_s20), 15  ;;  %s2313_s18 = sshll.u32 %s3869_s25, 1 }
  0x18   : > { %2879 = vmatpush.bf16.msra.mxu2 %v2735_v4  ;;  %2880 = vmatpush.bf16.msra.mxu3 %v2735_v4  ;;  %v506_v23 = vmul.f32 %v3090_v5, %v2780_v12  ;;  %v507_v24 = vmul.f32 %v3090_v5, %v2781_v13  ;;  %v510_v25 = vmul.f32 %v3090_v5, %v2788_v15  ;;  %v2784_v35 = vunpack.c.l.bf16 %v3112_v22  ;;  %v2860_v15 = vld [vmem:[%s3085_s22 + $0x18] sm:$0xff]   ;;  %s2299_s11 = sshll.u32 %s3871_s20, 1  ;;  %s3873_s10 = smov (!%p434_p10, %s435_s10), 15 }
  0x19   : > { %v511_v26 = vmul.f32 %v3090_v5, %v2789_v16  ;;  %v514_v27 = vmul.f32 %v3090_v5, %v2796_v18  ;;  %v515_v28 = vmul.f32 %v3090_v5, %v2797_v19  ;;  %v518_v29 = vmul.f32 %v3090_v5, %v2804_v20  ;;  %s2306_s20 = sshll.u32 %s3873_s10, 1  ;;  %s3805_s10 = scalar_lea.vmem %s3856_s6, %s2291_s19 }
  0x1a   : > { %v519_v30 = vmul.f32 %v3090_v5, %v2805_v21  ;;  %v3127_v32 = vadd.f32 %v3105_v14, %v506_v23  ;;  %v3130_v33 = vadd.f32 %v3105_v14, %v507_v24  ;;  %v3133_v34 = vadd.f32 %v3105_v14, %v510_v25  ;;  %v2862_v24 = vld [vmem:[%s3085_s22 + $0x28] sm:$0xff]   ;;  %v2730_v25 = vld [vmem:[%s3855_s5 + $0xc0] sm:$0xff]  ;;  %s442_s21 = sadd.s32 %s2306_s20, %s3070_s14  ;;  %s465_s19 = sadd.s32 %s2313_s18, %s3875_s24 }
  0x1b   : > { %1189 = vmatpush.bf16.msra.mxu0 %v2734_v11  ;;  %2881 = vmatpush.bf16.msra.mxu1 %v2734_v11  ;;  %v3137_v36 = vadd.f32 %v3105_v14, %v511_v26  ;;  %v3140_v37 = vadd.f32 %v3105_v14, %v514_v27  ;;  %v3143_v38 = vadd.f32 %v3105_v14, %v515_v28  ;;  %v2785_v39 = vunpack.c.h.bf16 %v3112_v22  ;;  %s2314_s20 = sshll.u32 %s465_s19, 1 }
  0x1c   : > { %2882 = vmatpush.bf16.msra.mxu2 %v2734_v11  ;;  %2883 = vmatpush.bf16.msra.mxu3 %v2734_v11  ;;  %v584_v40 = vrot.slane %v3127_v32, 7  ;;  %v594_v41 = vrot.slane %v3130_v33, 7  ;;  %v586_v42 = vrot.slane %v3133_v34, 7  ;;  %v3150_v43 = vadd.f32 %v3105_v14, %v518_v29  ;;  %s467_s23 = scalar_lea.vmem %s3857_s7, %s2314_s20 }
  0x1d   : > { %v596_v44 = vrot.slane %v3137_v36, 7  ;;  %v588_v45 = vrot.slane %v3140_v37, 7  ;;  %v598_v46 = vrot.slane %v3143_v38, 7  ;;  %v3157_v47 = vadd.f32 %v3105_v14, %v519_v30  ;;  %v2864_v30 = vld [vmem:[%s3085_s22 + $0x38] sm:$0xff]   ;;  %s3225_s22 = sadd.s32 %s2299_s11, %s3070_s14 }
  0x1e   : > { %v605_v49 = vsel %vm603_vm1, %v584_v40, %v594_v41  ;;  %v615_v50 = vsel %vm603_vm1, %v594_v41, %v584_v40  ;;  %v590_v51 = vrot.slane %v3150_v43, 7  ;;  %v508_v52 = vmul.f32 %v3090_v5, %v2784_v35  ;;  %v2753_v41 = vld [vmem:[%s3855_s5 + $0x178] sm:$0xff]  ;;  %s2301_s11 = sshll.u32 %s3225_s22, 2 }
  0x1f   : > { %1190 = vmatpush.bf16.msra.mxu0 %v2733_v31  ;;  %2884 = vmatpush.bf16.msra.mxu1 %v2733_v31  ;;  %v626_v53 = vmul.f32 %v3094_v8, %v615_v50  ;;  %v708_v54 = vpack.c.bf16 %v605_v49, %v605_v49  ;;  %v607_v55 = vsel %vm603_vm1, %v586_v42, %v596_v44  ;;  %v600_v56 = vrot.slane %v3157_v47, 7  ;;  %s427_s22 = scalar_lea.vmem %s3853_s3, %s2301_s11 }
  0x20   : > { %2885 = vmatpush.bf16.msra.mxu2 %v2733_v31  ;;  %2886 = vmatpush.bf16.msra.mxu3 %v2733_v31  ;;  %v617_v57 = vsel %vm603_vm1, %v596_v44, %v586_v42  ;;  %v712_v58 = vpack.c.bf16 %v607_v55, %v607_v55  ;;  %v609_v59 = vsel %vm603_vm1, %v588_v45, %v598_v46  ;;  %v2792_v29 = vunpack.c.l.bf16 %v2860_v15  ;;  %v2713_v42 = vld [vmem:[%s3855_s5 + $0x38] sm:$0xff]  ;;  %s3329_s11 = scalar_select %p549_p9, 1.0, 0.0 }
  0x21   : > { %v619_v60 = vsel %vm603_vm1, %v598_v46, %v588_v45  ;;  %v707_v61 = vpack.c.bf16 %v626_v53, %v626_v53  ;;  %v788_v62 = vunpack.c.l.b16 %v708_v54  ;;  %v630_v63 = vmul.f32 %v3094_v8, %v617_v57  ;;  %v2721_v57 = vld [vmem:[%s3855_s5 + $0x78] sm:$0xff] }
  0x22   : > { %v634_v0 = vmul.f32 %v3094_v8, %v619_v60  ;;  %v792_v2 = vunpack.c.l.b16 %v712_v58  ;;  %v716_v4 = vpack.c.bf16 %v609_v59, %v609_v59  ;;  %v611_v6 = vsel %vm603_vm1, %v590_v51, %v600_v56  ;;  %v2752_v60 = vld [vmem:[%s3855_s5 + $0x170] sm:$0xff] }
  0x23   : > { %1191 = vmatpush.bf16.msra.mxu0 %v2732_v48  ;;  %2887 = vmatpush.bf16.msra.mxu1 %v2732_v48  ;;  %v621_v9 = vsel %vm603_vm1, %v600_v56, %v590_v51  ;;  %v787_v10 = vunpack.c.l.b16 %v707_v61  ;;  %v711_v11 = vpack.c.bf16 %v630_v63, %v630_v63  ;;  %v720_v17 = vpack.c.bf16 %v611_v6, %v611_v6  ;;  %v2745_v56 = vld [vmem:[%s3855_s5 + $0x138] sm:$0xff]  ;;  %v2712_v61 = vld [vmem:[%s3855_s5 + $0x30] sm:$0xff] }
  0x24   : > { %2888 = vmatpush.bf16.msra.mxu2 %v2732_v48  ;;  %2889 = vmatpush.bf16.msra.mxu3 %v2732_v48  ;;  %v715_v12 = vpack.c.bf16 %v634_v0, %v634_v0  ;;  %v638_v13 = vmul.f32 %v3094_v8, %v621_v9  ;;  %v796_v16 = vunpack.c.l.b16 %v716_v4  ;;  %v509_v18 = vmul.f32 %v3090_v5, %v2785_v39 }
  0x25   : > { %v3198_v19 = vadd.f32 %v3105_v14, %v508_v52  ;;  %v3200_v20 = vpack.c.b16 %v788_v62, %v787_v10  ;;  %v791_v21 = vunpack.c.l.b16 %v711_v11  ;;  %v800_v26 = vunpack.c.l.b16 %v720_v17 }
  0x26   : > { %v795_v22 = vunpack.c.l.b16 %v715_v12  ;;  %v719_v23 = vpack.c.bf16 %v638_v13, %v638_v13  ;;  %v3208_v27 = vadd.f32 %v3105_v14, %v509_v18  ;;  %v2793_v40 = vunpack.c.h.bf16 %v2860_v15  ;;  %v2744_v13 = vld [vmem:[%s3855_s5 + $0x130] sm:$0xff] }
  0x27   : > { %1192 = vmatpush.bf16.msra.mxu0 %v2731_v1  ;;  %2890 = vmatpush.bf16.msra.mxu1 %v2731_v1  ;;  %v585_v28 = vrot.slane %v3198_v19, 7  ;;  %v3212_v31 = vpack.c.b16 %v792_v2, %v791_v21  ;;  %v512_v45 = vmul.f32 %v3090_v5, %v2792_v29  ;;  %v2800_v46 = vunpack.c.l.bf16 %v2862_v24  ;;  %v2720_v15 = vld [vmem:[%s3855_s5 + $0x70] sm:$0xff]  ;;  %v2751_v21 = vld [vmem:[%s3855_s5 + $0x168] sm:$0xff] }
  0x28   : > { %2891 = vmatpush.bf16.msra.mxu2 %v2731_v1  ;;  %2892 = vmatpush.bf16.msra.mxu3 %v2731_v1  ;;  %v3214_v35 = vpack.c.b16 %v796_v16, %v795_v22  ;;  %v799_v39 = vunpack.c.l.b16 %v719_v23  ;;  %v595_v44 = vrot.slane %v3208_v27, 7  ;;  %v2801_v48 = vunpack.c.h.bf16 %v2862_v24  ;;  %v2711_v22 = vld [vmem:[%s3855_s5 + $0x28] sm:$0xff] }
  0x29   : > { %v513_v50 = vmul.f32 %v3090_v5, %v2793_v40  ;;  %v2808_v51 = vunpack.c.l.bf16 %v2864_v30  ;;  %v2809_v52 = vunpack.c.h.bf16 %v2864_v30  ;;  %v3235_v55 = vadd.f32 %v3105_v14, %v512_v45  ;;  %v2719_v45 = vld [vmem:[%s3855_s5 + $0x68] sm:$0xff] }
  0x2a   : > { %v3227_v49 = vpack.c.b16 %v800_v26, %v799_v39  ;;  %v606_v53 = vsel %vm603_vm1, %v585_v28, %v595_v44  ;;  %v616_v54 = vsel %vm603_vm1, %v595_v44, %v585_v28  ;;  %v516_v63 = vmul.f32 %v3090_v5, %v2800_v46  ;;  %v2811_v39 = vld [vmem:[%s427_s22] sm:$0xff]   ;;  %v2743_v44 = vld [vmem:[%s3855_s5 + $0x128] sm:$0xff]  ;;  %s2308_s22 = sshll.u32 %s442_s21, 2 }
  0x2b   : > { %1193 = vmatpush.bf16.msra.mxu0 %v2730_v25  ;;  %2893 = vmatpush.bf16.msra.mxu1 %v2730_v25  ;;  %v628_v58 = vmul.f32 %v3094_v8, %v616_v54  ;;  %v3245_v59 = vadd.f32 %v3105_v14, %v513_v50  ;;  %v587_v62 = vrot.slane %v3235_v55, 7  ;;  %v517_v0 = vmul.f32 %v3090_v5, %v2801_v48  ;;  %s444_s14 = scalar_lea.vmem %s3854_s4, %s2308_s22 }
  0x2c   : > { %2894 = vmatpush.bf16.msra.mxu2 %v2730_v25  ;;  %2895 = vmatpush.bf16.msra.mxu3 %v2730_v25  ;;  %v520_v1 = vmul.f32 %v3090_v5, %v2808_v51  ;;  %v710_v2 = vpack.c.bf16 %v606_v53, %v606_v53  ;;  %v521_v6 = vmul.f32 %v3090_v5, %v2809_v52  ;;  %v3263_v9 = vadd.s32 8, %v3066_v3  ;;  %v2750_v52 = vld [vmem:[%s3855_s5 + $0x160] sm:$0xff] }
  0x2d   : > { %v597_v4 = vrot.slane %v3245_v59, 7  ;;  %v3268_v10 = vadd.f32 %v3105_v14, %v516_v63  ;;  %v3271_v11 = vadd.f32 %v3105_v14, %v517_v0  ;;  %v709_v23 = vpack.c.bf16 %v628_v58, %v628_v58  ;;  %v2710_v53 = vld [vmem:[%s3855_s5 + $0x20] sm:$0xff] }
  0x2e   : > { %1194 = vmatmul.bf16.vlgmr.msra.gmra.mxu0 %v3200_v20  ;;  %1204 = vmatmul.bf16.vlgmr.msra.gmra.mxu1 %v3212_v31  ;;  %v3274_v12 = vadd.f32 %v3105_v14, %v520_v1  ;;  %v3290_v18 = vadd.f32 %v3105_v14, %v521_v6  ;;  %vm578_vm2 = vcmp.ne.s32.totalorder %v3263_v9, 15  ;;  %v790_v46 = vunpack.c.l.b16 %v710_v2  ;;  %v2718_v6 = vld [vmem:[%s3855_s5 + $0x60] sm:$0xff] }
  0x2f   : > { %1214 = vmatmul.bf16.vlgmr.msra.gmra.mxu2 %v3214_v35  ;;  %1224 = vmatmul.bf16.vlgmr.msra.gmra.mxu3 %v3227_v49  ;;  %v608_v16 = vsel %vm603_vm1, %v587_v62, %v597_v4  ;;  %v618_v17 = vsel %vm603_vm1, %v597_v4, %v587_v62  ;;  %v589_v25 = vrot.slane %v3268_v10, 7  ;;  %v599_v26 = vrot.slane %v3271_v11, 7  ;;  %v2742_v4 = vld [vmem:[%s3855_s5 + $0x120] sm:$0xff] }
  0x30   : > { %1284 = vmatpush.bf16.msrb.mxu2 %v2753_v41  ;;  %1477 = vmatpush.bf16.msrb.mxu3 %v2713_v42  ;;  %v632_v24 = vmul.f32 %v3094_v8, %v618_v17  ;;  %v714_v28 = vpack.c.bf16 %v608_v16, %v608_v16  ;;  %v591_v29 = vrot.slane %v3274_v12, 7  ;;  %v601_v30 = vrot.slane %v3290_v18, 7 }
  0x31   : > { %1235 = vmatpush.bf16.msrb.mxu1 %v2745_v56  ;;  %1526 = vmatpush.bf16.msrb.mxu0 %v2721_v57  ;;  %v610_v41 = vsel %vm603_vm1, %v589_v25, %v599_v26  ;;  %v620_v42 = vsel %vm603_vm1, %v599_v26, %v589_v25  ;;  %v789_v54 = vunpack.c.l.b16 %v709_v23  ;;  %v2812_v58 = vunpack.c.l.bf16 %v2811_v39 }
  0x32   : > { %v713_v40 = vpack.c.bf16 %v632_v24, %v632_v24  ;;  %v636_v48 = vmul.f32 %v3094_v8, %v620_v42  ;;  %v718_v50 = vpack.c.bf16 %v610_v41, %v610_v41  ;;  %v612_v51 = vsel %vm603_vm1, %v591_v29, %v601_v30  ;;  %v2741_v41 = vld [vmem:[%s3855_s5 + $0x118] sm:$0xff] }
  0x33   : > { %v622_v56 = vsel %vm603_vm1, %v601_v30, %v591_v29  ;;  %v722_v57 = vpack.c.bf16 %v612_v51, %v612_v51  ;;  %v645_v1 = vrot.slane %v3127_v32, 1  ;;  %v655_v2 = vrot.slane %v3130_v33, 1  ;;  %v2717_v42 = vld [vmem:[%s3855_s5 + $0x58] sm:$0xff] }
  0x34   : > { %1285 = vmatpush.bf16.msrb.mxu2 %v2752_v60  ;;  %1478 = vmatpush.bf16.msrb.mxu3 %v2712_v61  ;;  %v793_v60 = vunpack.c.l.b16 %v713_v40  ;;  %v794_v61 = vunpack.c.l.b16 %v714_v28  ;;  %v717_v62 = vpack.c.bf16 %v636_v48, %v636_v48  ;;  %v640_v63 = vmul.f32 %v3094_v8, %v622_v56  ;;  %v2747_v56 = vld [vmem:[%s3855_s5 + $0x148] sm:$0xff] }
  0x35   : > { %1236 = vmatpush.bf16.msrb.mxu1 %v2744_v13  ;;  %1527 = vmatpush.bf16.msrb.mxu0 %v2720_v15  ;;  %v798_v0 = vunpack.c.l.b16 %v718_v50  ;;  %v802_v16 = vunpack.c.l.b16 %v722_v57  ;;  %v3343_v17 = vsel %vm578_vm2, 1.0, %v2981_v7  ;;  %v2813_v23 = vunpack.c.h.bf16 %v2811_v39  ;;  %v2707_v57 = vld [vmem:[%s3855_s5 + $0x8] sm:$0xff] }
  0x36   : > { %v797_v13 = vunpack.c.l.b16 %v717_v62  ;;  %v721_v15 = vpack.c.bf16 %v640_v63, %v640_v63  ;;  %v545_v24 = vmul.f32 %v3090_v5, %v2812_v58  ;;  %v3352_v25 = vpack.c.b16 %v790_v46, %v789_v54 }
  0x37   : > { %v3354_v26 = vpack.c.b16 %v794_v61, %v793_v60  ;;  %v551_v7 = vstv %s3329_s11  ;;  %v676_v29 = vsel %vm664_vm3, %v655_v2, %v645_v1  ;;  %v546_v30 = vmul.f32 %v3090_v5, %v2813_v23  ;;  %v2748_v5 = vld [vmem:[%s3855_s5 + $0x150] sm:$0xff]  ;;  %v2706_v23 = vld [vmem:[%s3855_s5] sm:$0xff]  ;;  %s564_s11 = scalar_select %p563_p11, 1.0, 0.0 }
  0x38   : > { %1286 = vmatpush.bf16.msrb.mxu2 %v2751_v21  ;;  %1479 = vmatpush.bf16.msrb.mxu3 %v2711_v22  ;;  %v2749_v21 = vld [vmem:[%s3855_s5 + $0x158] sm:$0xff]  ;;  %v801_v9 = vunpack.c.l.b16 %v721_v15  ;;  %v3357_v28 = vpack.c.b16 %v798_v0, %v797_v13  ;;  %v547_v40 = vadd.f32 %v3105_v14, %v545_v24  ;;  %v688_v48 = vmul.f32 %v3343_v17, %v676_v29  ;;  %v2739_v13 = vld [vmem:[%s3855_s5 + $0x108] sm:$0xff] }
  0x39   : > { %1237 = vmatpush.bf16.msrb.mxu1 %v2743_v44  ;;  %1528 = vmatpush.bf16.msrb.mxu0 %v2719_v45  ;;  %v2709_v22 = vld [vmem:[%s3855_s5 + $0x18] sm:$0xff]  ;;  %v2708_v44 = vld [vmem:[%s3855_s5 + $0x10] sm:$0xff]  ;;  %v548_v45 = vadd.f32 %v3105_v14, %v546_v30  ;;  %v666_v50 = vsel %vm664_vm3, %v645_v1, %v655_v2  ;;  %v731_v54 = vpack.c.bf16 %v3133_v34, %v3133_v34  ;;  %v657_v29 = vrot.slane %v3137_v36, 1 }
  0x3a   : > { %v3363_v39 = vpack.c.b16 %v802_v16, %v801_v9  ;;  %v3378_v46 = vmul.f32 %v551_v7, %v547_v40  ;;  %v2740_v14 = vld [vmem:[%s3855_s5 + $0x110] sm:$0xff]  ;;  %v727_v58 = vpack.c.bf16 %v3127_v32, %v3127_v32  ;;  %v732_v61 = vpack.c.bf16 %v3137_v36, %v3137_v36  ;;  %v2738_v36 = vld [vmem:[%s3855_s5 + $0x100] sm:$0xff] }
  0x3b   : > { %v3387_v51 = vmul.f32 %v551_v7, %v548_v45  ;;  %v728_v62 = vpack.c.bf16 %v3130_v33, %v3130_v33  ;;  %v747_v63 = vpack.c.bf16 %v666_v50, %v666_v50  ;;  %v748_v0 = vpack.c.bf16 %v688_v48, %v688_v48  ;;  %v2715_v33 = vld [vmem:[%s3855_s5 + $0x48] sm:$0xff] }
  0x3c   : > { %1287 = vmatpush.bf16.msrb.mxu2 %v2750_v52  ;;  %1480 = vmatpush.bf16.msrb.mxu3 %v2710_v53  ;;  %v583_v52 = vrot.slane %v3378_v46, 7  ;;  %v2716_v53 = vld [vmem:[%s3855_s5 + $0x50] sm:$0xff]  ;;  %v851_v1 = vunpack.c.l.b16 %v731_v54  ;;  %v725_v32 = vpack.c.bf16 %v3378_v46, %v3378_v46  ;;  %v847_v24 = vunpack.c.l.b16 %v727_v58  ;;  %v2777_v58 = vld [vmem:[%s3855_s5 + $0x238] sm:$0xff] }
  0x3d   : > { %1238 = vmatpush.bf16.msrb.mxu1 %v2742_v4  ;;  %1529 = vmatpush.bf16.msrb.mxu0 %v2718_v6  ;;  %v593_v60 = vrot.slane %v3387_v51, 7  ;;  %v852_v6 = vunpack.c.l.b16 %v732_v61  ;;  %v647_v7 = vrot.slane %v3133_v34, 1  ;;  %v848_v30 = vunpack.c.l.b16 %v728_v62  ;;  %v2760_v61 = vld [vmem:[%s3855_s5 + $0x1b0] sm:$0xff] }
  0x3e   : > { %1199 = vmatmul.bf16.gmra.mxu0 %v3352_v25  ;;  %1209 = vmatmul.bf16.gmra.mxu1 %v3354_v26  ;;  %v907_v40 = vunpack.c.l.b16 %v747_v63  ;;  %v845_v45 = vunpack.c.l.b16 %v725_v32  ;;  %v646_v48 = vrot.slane %v3198_v19, 1  ;;  %v656_v50 = vrot.slane %v3208_v27, 1  ;;  %v2768_v62 = vld [vmem:[%s3855_s5 + $0x1f0] sm:$0xff] }
  0x3f   : > { %1219 = vmatmul.bf16.gmra.mxu2 %v3357_v28  ;;  %1229 = vmatmul.bf16.gmra.mxu3 %v3363_v39  ;;  %v604_v2 = vsel %vm603_vm1, %v583_v52, %v593_v60  ;;  %v614_v4 = vsel %vm603_vm1, %v593_v60, %v583_v52  ;;  %v3432_v9 = vpack.c.b16 %v852_v6, %v851_v1  ;;  %v2714_v52 = vld [vmem:[%s3855_s5 + $0x40] sm:$0xff] }
  0x40   : > { %1288 = vmatpush.bf16.msrb.mxu2 %v2749_v21  ;;  %1481 = vmatpush.bf16.msrb.mxu3 %v2709_v22  ;;  %v624_v15 = vmul.f32 %v3094_v8, %v614_v4  ;;  %v706_v16 = vpack.c.bf16 %v604_v2, %v604_v2  ;;  %v726_v21 = vpack.c.bf16 %v3387_v51, %v3387_v51  ;;  %v2746_v22 = vld [vmem:[%s3855_s5 + $0x140] sm:$0xff] }
  0x41   : > { %1239 = vmatpush.bf16.msrb.mxu1 %v2741_v41  ;;  %1530 = vmatpush.bf16.msrb.mxu0 %v2717_v42  ;;  %v908_v41 = vunpack.c.l.b16 %v748_v0  ;;  %v678_v34 = vsel %vm664_vm3, %v657_v29, %v647_v7  ;;  %v668_v60 = vsel %vm664_vm3, %v647_v7, %v657_v29  ;;  %v866_v1 = vpack.c.b16 %v848_v30, %v847_v24  ;;  %v2759_v24 = vld [vmem:[%s3855_s5 + $0x1a8] sm:$0xff] }
  0x42   : > { %v705_v42 = vpack.c.bf16 %v624_v15, %v624_v15  ;;  %v846_v54 = vunpack.c.l.b16 %v726_v21  ;;  %v751_v63 = vpack.c.bf16 %v668_v60, %v668_v60  ;;  %v677_v4 = vsel %vm664_vm3, %v656_v50, %v646_v48  ;;  %v2728_v15 = vld [vmem:[%s3855_s5 + $0xb0] sm:$0xff]  ;;  %v2767_v7 = vld [vmem:[%s3855_s5 + $0x1e8] sm:$0xff] }
  0x43   : > { %v3467_v2 = vpack.c.b16 %v908_v41, %v907_v40  ;;  %v733_v29 = vpack.c.bf16 %v3235_v55, %v3235_v55  ;;  %v734_v30 = vpack.c.bf16 %v3245_v59, %v3245_v59  ;;  %v2727_v40 = vld [vmem:[%s3855_s5 + $0xa8] sm:$0xff] }
  0x44   : > { %1289 = vmatpush.bf16.msrb.mxu2 %v2748_v5  ;;  %1482 = vmatpush.bf16.msrb.mxu3 %v2708_v44  ;;  %v2761_v5 = vld [vmem:[%s3855_s5 + $0x1b8] sm:$0xff]  ;;  %v865_v6 = vpack.c.b16 %v846_v54, %v845_v45  ;;  %v2775_v41 = vld [vmem:[%s3855_s5 + $0x228] sm:$0xff]  ;;  %v730_v45 = vpack.c.bf16 %v3208_v27, %v3208_v27 }
  0x45   : > { %1240 = vmatpush.bf16.msrb.mxu1 %v2740_v14  ;;  %1531 = vmatpush.bf16.msrb.mxu0 %v2716_v53  ;;  %v2769_v44 = vld [vmem:[%s3855_s5 + $0x1f8] sm:$0xff]  ;;  %v785_v14 = vunpack.c.l.b16 %v705_v42  ;;  %v786_v53 = vunpack.c.l.b16 %v706_v16  ;;  %v2776_v16 = vld [vmem:[%s3855_s5 + $0x230] sm:$0xff]  ;;  %v729_v42 = vpack.c.bf16 %v3198_v19, %v3198_v19 }
  0x47   : > { %v805_v32 = vpack.c.b16 %v786_v53, %v785_v14  ;;  %v849_v14 = vunpack.c.l.b16 %v729_v42  ;;  %v850_v53 = vunpack.c.l.b16 %v730_v45  ;;  %v736_v42 = vpack.c.bf16 %v3143_v38, %v3143_v38 }
  0x48   : > { %1290 = vmatpush.bf16.msrb.mxu2 %v2747_v56  ;;  %1483 = vmatpush.bf16.msrb.mxu3 %v2707_v57  ;;  %v692_v56 = vmul.f32 %v3343_v17, %v678_v34  ;;  %v2729_v57 = vld [vmem:[%s3855_s5 + $0xb8] sm:$0xff] }
  0x49   : > { %1241 = vmatpush.bf16.msrb.mxu1 %v2739_v13  ;;  %1532 = vmatpush.bf16.msrb.mxu0 %v2715_v33  ;;  %v911_v13 = vunpack.c.l.b16 %v751_v63 }
  0x4a   : > { %v752_v0 = vpack.c.bf16 %v692_v56, %v692_v56 }
  0x4c   : > { %1291 = vmatpush.bf16.msrb.mxu2 %v2746_v22  ;;  %1484 = vmatpush.bf16.msrb.mxu3 %v2706_v23  ;;  %v912_v33 = vunpack.c.l.b16 %v752_v0  ;;  %v690_v22 = vmul.f32 %v3343_v17, %v677_v4  ;;  %v667_v23 = vsel %vm664_vm3, %v646_v48, %v656_v50  ;;  %v2758_v0 = vld [vmem:[%s3855_s5 + $0x1a0] sm:$0xff] }
  0x4d   : > { %1242 = vmatpush.bf16.msrb.mxu1 %v2738_v36  ;;  %1533 = vmatpush.bf16.msrb.mxu0 %v2714_v52  ;;  %v749_v48 = vpack.c.bf16 %v667_v23, %v667_v23  ;;  %v648_v36 = vrot.slane %v3235_v55, 1  ;;  %v658_v52 = vrot.slane %v3245_v59, 1  ;;  %v2766_v4 = vld [vmem:[%s3855_s5 + $0x1e0] sm:$0xff] }
  0x4e   : > { %v3477_v21 = vpack.c.b16 %v912_v33, %v911_v13  ;;  %v750_v50 = vpack.c.bf16 %v690_v22, %v690_v22  ;;  %v2725_v13 = vld [vmem:[%s3855_s5 + $0x98] sm:$0xff] }
  0x4f   : > { %1292 = vmatmul.bf16.vlgmr.msrb.gmra.mxu2 %v3467_v2  ;;  %1485 = vmatmul.bf16.vlgmr.msrb.gmra.mxu3 %v805_v32  ;;  %v909_v19 = vunpack.c.l.b16 %v749_v48  ;;  %v679_v56 = vsel %vm664_vm3, %v658_v52, %v648_v36  ;;  %v669_v27 = vsel %vm664_vm3, %v648_v36, %v658_v52  ;;  %v2726_v32 = vld [vmem:[%s3855_s5 + $0xa0] sm:$0xff]  ;;  %v2773_v33 = vld [vmem:[%s3855_s5 + $0x218] sm:$0xff]  ;;  %v856_v48 = vunpack.c.l.b16 %v736_v42 }
  0x50   : > { %1817 = vmatpush.bf16.msra.mxu2 %v2761_v5  ;;  %1866 = vmatpush.bf16.msra.mxu3 %v2769_v44  ;;  %v853_v5 = vunpack.c.l.b16 %v733_v29  ;;  %v854_v44 = vunpack.c.l.b16 %v734_v30  ;;  %v910_v54 = vunpack.c.l.b16 %v750_v50  ;;  %v2764_v29 = vld [vmem:[%s3855_s5 + $0x1d0] sm:$0xff]  ;;  %v650_v52 = vrot.slane %v3268_v10, 1 }
  0x51   : > { %1575 = vmatpush.bf16.msra.mxu1 %v2729_v57  ;;  %1915 = vmatpush.bf16.msra.mxu0 %v2777_v58  ;;  %v694_v57 = vmul.f32 %v3343_v17, %v679_v56  ;;  %v753_v58 = vpack.c.bf16 %v669_v27, %v669_v27  ;;  %v2724_v30 = vld [vmem:[%s3855_s5 + $0x90] sm:$0xff]  ;;  %v2755_v56 = vld [vmem:[%s3855_s5 + $0x188] sm:$0xff]  ;;  %v737_v27 = vpack.c.bf16 %v3268_v10, %v3268_v10  ;;  %v651_v10 = vrot.slane %v3150_v43, 1 }
  0x52   : > { %1243 = vmatmul.bf16.vlgmr.msrb.gmra.mxu1 %v866_v1  ;;  %1534 = vmatmul.bf16.vlgmr.msrb.gmra.mxu0 %v865_v6  ;;  %v3503_v34 = vpack.c.b16 %v854_v44, %v853_v5  ;;  %v2774_v6 = vld [vmem:[%s3855_s5 + $0x220] sm:$0xff] }
  0x53   : > { %v754_v60 = vpack.c.bf16 %v694_v57, %v694_v57  ;;  %v913_v55 = vunpack.c.l.b16 %v753_v58  ;;  %v2763_v57 = vld [vmem:[%s3855_s5 + $0x1c8] sm:$0xff]  ;;  %v738_v58 = vpack.c.bf16 %v3271_v11, %v3271_v11 }
  0x54   : > { %1818 = vmatpush.bf16.msra.mxu2 %v2760_v61  ;;  %1867 = vmatpush.bf16.msra.mxu3 %v2768_v62  ;;  %v3512_v61 = vpack.c.b16 %v850_v53, %v849_v14  ;;  %v3514_v62 = vpack.c.b16 %v910_v54, %v909_v19  ;;  %v660_v14 = vrot.slane %v3271_v11, 1  ;;  %v661_v11 = vrot.slane %v3157_v47, 1 }
  0x55   : > { %1576 = vmatpush.bf16.msra.mxu1 %v2728_v15  ;;  %1916 = vmatpush.bf16.msra.mxu0 %v2776_v16  ;;  %v914_v59 = vunpack.c.l.b16 %v754_v60  ;;  %v649_v15 = vrot.slane %v3140_v37, 1  ;;  %v659_v16 = vrot.slane %v3143_v38, 1 }
  0x56   : > { %v681_v19 = vsel %vm664_vm3, %v660_v14, %v650_v52  ;;  %v671_v54 = vsel %vm664_vm3, %v650_v52, %v660_v14 }
  0x57   : > { %v3516_v63 = vpack.c.b16 %v914_v59, %v913_v55  ;;  %v680_v22 = vsel %vm664_vm3, %v659_v16, %v649_v15  ;;  %v698_v38 = vmul.f32 %v3343_v17, %v681_v19  ;;  %v757_v60 = vpack.c.bf16 %v671_v54, %v671_v54  ;;  %v2723_v59 = vld [vmem:[%s3855_s5 + $0x88] sm:$0xff] }
  0x58   : > { %1819 = vmatpush.bf16.msra.mxu2 %v2759_v24  ;;  %1868 = vmatpush.bf16.msra.mxu3 %v2767_v7  ;;  %v696_v23 = vmul.f32 %v3343_v17, %v680_v22  ;;  %v670_v24 = vsel %vm664_vm3, %v649_v15, %v659_v16  ;;  %v2756_v7 = vld [vmem:[%s3855_s5 + $0x190] sm:$0xff]  ;;  %v672_v16 = vsel %vm664_vm3, %v651_v10, %v661_v11  ;;  %v2754_v22 = vld [vmem:[%s3855_s5 + $0x180] sm:$0xff] }
  0x59   : > { %1577 = vmatpush.bf16.msra.mxu1 %v2727_v40  ;;  %1917 = vmatpush.bf16.msra.mxu0 %v2775_v41  ;;  %v2772_v40 = vld [vmem:[%s3855_s5 + $0x210] sm:$0xff]  ;;  %v735_v41 = vpack.c.bf16 %v3140_v37, %v3140_v37  ;;  %v755_v5 = vpack.c.bf16 %v670_v24, %v670_v24  ;;  %v758_v55 = vpack.c.bf16 %v698_v38, %v698_v38 }
  0x5a   : > { %v756_v44 = vpack.c.bf16 %v696_v23, %v696_v23  ;;  %v2762_v23 = vld [vmem:[%s3855_s5 + $0x1c0] sm:$0xff]  ;;  %v739_v24 = vpack.c.bf16 %v3150_v43, %v3150_v43  ;;  %v652_v43 = vrot.slane %v3274_v12, 1 }
  0x5b   : > { %v855_v45 = vunpack.c.l.b16 %v735_v41  ;;  %v915_v50 = vunpack.c.l.b16 %v755_v5  ;;  %v2770_v41 = vld [vmem:[%s3855_s5 + $0x200] sm:$0xff] }
  0x5c   : > { %1820 = vmatpush.bf16.msra.mxu2 %v2758_v0  ;;  %1869 = vmatpush.bf16.msra.mxu3 %v2766_v4  ;;  %v916_v36 = vunpack.c.l.b16 %v756_v44  ;;  %v2771_v0 = vld [vmem:[%s3855_s5 + $0x208] sm:$0xff]  ;;  %v857_v4 = vunpack.c.l.b16 %v737_v27  ;;  %v859_v42 = vunpack.c.l.b16 %v739_v24 }
  0x5d   : > { %1578 = vmatpush.bf16.msra.mxu1 %v2726_v32  ;;  %1918 = vmatpush.bf16.msra.mxu0 %v2774_v6  ;;  %v3578_v53 = vpack.c.b16 %v856_v48, %v855_v45  ;;  %v858_v32 = vunpack.c.l.b16 %v738_v58  ;;  %v917_v6 = vunpack.c.l.b16 %v757_v60  ;;  %v741_v58 = vpack.c.bf16 %v3274_v12, %v3274_v12 }
  0x5e   : > { %v3580_v37 = vpack.c.b16 %v916_v36, %v915_v50  ;;  %v742_v60 = vpack.c.bf16 %v3290_v18, %v3290_v18 }
  0x5f   : > { %1297 = vmatmul.bf16.gmra.mxu2 %v3514_v62  ;;  %1490 = vmatmul.bf16.gmra.mxu3 %v3200_v20  ;;  %v2757_v20 = vld [vmem:[%s3855_s5 + $0x198] sm:$0xff] }
  0x60   : > { %1821 = vmatpush.bf16.msra.mxu2 %v2757_v20  ;;  %v918_v20 = vunpack.c.l.b16 %v758_v55 }
  0x61   : > { %1579 = vmatpush.bf16.msra.mxu1 %v2725_v13  ;;  %1919 = vmatpush.bf16.msra.mxu0 %v2773_v33  ;;  %v682_v33 = vsel %vm664_vm3, %v661_v11, %v651_v10  ;;  %v654_v10 = vrot.slane %v3387_v51, 1 }
  0x62   : > { %1248 = vmatmul.bf16.gmra.mxu1 %v3512_v61  ;;  %1539 = vmatmul.bf16.gmra.mxu0 %v866_v1  ;;  %v2765_v1 = vld [vmem:[%s3855_s5 + $0x1d8] sm:$0xff]  ;;  %v3611_v13 = vpack.c.b16 %v918_v20, %v917_v6  ;;  %v700_v15 = vmul.f32 %v3343_v17, %v682_v33  ;;  %v644_v20 = vrot.slane %v3378_v46, 1 }
  0x63   : > { %1870 = vmatpush.bf16.msra.mxu3 %v2765_v1  ;;  %v3609_v1 = vpack.c.b16 %v858_v32, %v857_v4  ;;  %v862_v4 = vunpack.c.l.b16 %v742_v60 }
  0x64   : > { %1822 = vmatpush.bf16.msra.mxu2 %v2756_v7  ;;  %v740_v7 = vpack.c.bf16 %v3157_v47, %v3157_v47  ;;  %v662_v47 = vrot.slane %v3290_v18, 1  ;;  %v665_v51 = vsel %vm664_vm3, %v644_v20, %v654_v10 }
  0x65   : > { %1580 = vmatpush.bf16.msra.mxu1 %v2724_v30  ;;  %1920 = vmatpush.bf16.msra.mxu0 %v2772_v40  ;;  %v760_v30 = vpack.c.bf16 %v700_v15, %v700_v15  ;;  %v2722_v40 = vld [vmem:[%s3855_s5 + $0x80] sm:$0xff] }
  0x66   : > { %v860_v5 = vunpack.c.l.b16 %v740_v7  ;;  %v683_v14 = vsel %vm664_vm3, %v662_v47, %v652_v43  ;;  %v673_v38 = vsel %vm664_vm3, %v652_v43, %v662_v47 }
  0x67   : > { %1871 = vmatpush.bf16.msra.mxu3 %v2764_v29  ;;  %v759_v29 = vpack.c.bf16 %v672_v16, %v672_v16  ;;  %v920_v45 = vunpack.c.l.b16 %v760_v30  ;;  %v702_v19 = vmul.f32 %v3343_v17, %v683_v14  ;;  %v761_v55 = vpack.c.bf16 %v673_v38, %v673_v38 }
  0x68   : > { %1823 = vmatpush.bf16.msra.mxu2 %v2755_v56  ;;  %v3642_v36 = vpack.c.b16 %v860_v5, %v859_v42  ;;  %v745_v30 = vpack.c.bf16 %v665_v51, %v665_v51 }
  0x69   : > { %1581 = vmatpush.bf16.msra.mxu1 %v2723_v59  ;;  %1921 = vmatpush.bf16.msra.mxu0 %v2771_v0  ;;  %v919_v44 = vunpack.c.l.b16 %v759_v29  ;;  %v762_v59 = vpack.c.bf16 %v702_v19, %v702_v19  ;;  %v861_v0 = vunpack.c.l.b16 %v741_v58  ;;  %v921_v32 = vunpack.c.l.b16 %v761_v55 }
  0x6b   : > { %1872 = vmatpush.bf16.msra.mxu3 %v2763_v57  ;;  %v3644_v52 = vpack.c.b16 %v920_v45, %v919_v44  ;;  %v922_v6 = vunpack.c.l.b16 %v762_v59  ;;  %v3673_v12 = vpack.c.b16 %v862_v4, %v861_v0 }
  0x6c   : > { %1824 = vmatpush.bf16.msra.mxu2 %v2754_v22  ;;  %v675_v22 = vsel %vm664_vm3, %v654_v10, %v644_v20 }
  0x6d   : > { %1582 = vmatpush.bf16.msra.mxu1 %v2722_v40  ;;  %1922 = vmatpush.bf16.msra.mxu0 %v2770_v41  ;;  %v3675_v18 = vpack.c.b16 %v922_v6, %v921_v32  ;;  %v686_v46 = vmul.f32 %v3343_v17, %v675_v22  ;;  %v905_v41 = vunpack.c.l.b16 %v745_v30 }
  0x6f   : > { %1302 = vmatmul.bf16.gmra.mxu2 %v3477_v21  ;;  %1495 = vmatmul.bf16.gmra.mxu3 %v3352_v25  ;;  %v746_v40 = vpack.c.bf16 %v686_v46, %v686_v46 }
  0x70   : > { %1873 = vmatpush.bf16.msra.mxu3 %v2762_v23 }
  0x71   : > { %v906_v42 = vunpack.c.l.b16 %v746_v40 }
  0x72   : > { %1253 = vmatmul.bf16.gmra.mxu1 %v3432_v9  ;;  %1544 = vmatmul.bf16.gmra.mxu0 %v3512_v61 }
  0x73   : > { %v925_v45 = vpack.c.b16 %v906_v42, %v905_v41 }
  0x7f   : > { %1307 = vmatmul.bf16.gmra.mxu2 %v3516_v63  ;;  %1500 = vmatmul.bf16.gmra.mxu3 %v3212_v31 }
  0x82   : > { %1258 = vmatmul.bf16.gmra.mxu1 %v3503_v34  ;;  %1549 = vmatmul.bf16.gmra.mxu0 %v3432_v9 }
  0x8f   : > { %1312 = vmatmul.bf16.gmra.mxu2 %v3580_v37  ;;  %1505 = vmatmul.bf16.gmra.mxu3 %v3354_v26 }
  0x92   : > { %1263 = vmatmul.bf16.gmra.mxu1 %v3578_v53  ;;  %1554 = vmatmul.bf16.gmra.mxu0 %v3503_v34 }
  0x9f   : > { %1317 = vmatmul.bf16.gmra.mxu2 %v3611_v13  ;;  %1510 = vmatmul.bf16.gmra.mxu3 %v3214_v35 }
  0xa2   : > { %1268 = vmatmul.bf16.gmra.mxu1 %v3609_v1  ;;  %1559 = vmatmul.bf16.gmra.mxu0 %v3578_v53 }
  0xab   : > { %v1195_v48 = vpop.f32.mrf.mxu0  ;;  %v3640_v50 = vpop.f32.mrf.mxu1 }
  0xaf   : > { %1322 = vmatmul.bf16.gmra.mxu2 %v3644_v52  ;;  %1515 = vmatmul.bf16.gmra.mxu3 %v3357_v28 }
  0xb2   : > { %1273 = vmatmul.bf16.gmra.mxu1 %v3642_v36  ;;  %1564 = vmatmul.bf16.gmra.mxu0 %v3609_v1  ;;  %v3655_v54 = vpop.f32.mrf.mxu2  ;;  %v3657_v56 = vpop.f32.mrf.mxu3 }
  0xb3   : > { %v1197_v57 = vpop.f32.mrf.mxu0  ;;  %v3659_v27 = vpop.f32.mrf.mxu1 }
  0xba   : > { %v3667_v11 = vpop.f32.mrf.mxu2  ;;  %v3669_v33 = vpop.f32.mrf.mxu3 }
  0xbb   : > { %v1200_v15 = vpop.f32.mrf.mxu0  ;;  %v3671_v16 = vpop.f32.mrf.mxu1 }
  0xbf   : > { %1327 = vmatmul.bf16.gmra.mxu2 %v3675_v18  ;;  %1520 = vmatmul.bf16.gmra.mxu3 %v3227_v49 }
  0xc2   : > { %1278 = vmatmul.bf16.gmra.mxu1 %v3673_v12  ;;  %1569 = vmatmul.bf16.gmra.mxu0 %v3642_v36  ;;  %v3686_v23 = vpop.f32.mrf.mxu2  ;;  %v3688_v24 = vpop.f32.mrf.mxu3 }
  0xc3   : > { %v1202_v7 = vpop.f32.mrf.mxu0  ;;  %v3690_v29 = vpop.f32.mrf.mxu1 }
  0xca   : > { %v3692_v5 = vpop.f32.mrf.mxu2  ;;  %v3694_v44 = vpop.f32.mrf.mxu3 }
  0xcf   : > { %v1244_v43 = vpop.f32.mrf.mxu1  ;;  %v1535_v14 = vpop.f32.mrf.mxu0  ;;  %1825 = vmatmul.bf16.vlgmr.msra.gmra.mxu2 %v3352_v25  ;;  %1874 = vmatmul.bf16.vlgmr.msra.gmra.mxu3 %v3512_v61 }
  0xd0   : > { %v1245_v47 = vadd.f32 %v1244_v43, %v1195_v48 }
  0xd2   : > { %1583 = vmatmul.bf16.vlgmr.msra.gmra.mxu1 %v925_v45  ;;  %1923 = vmatmul.bf16.vlgmr.msra.gmra.mxu0 %v3514_v62  ;;  %v1293_v19 = vpop.f32.mrf.mxu2  ;;  %v1486_v58 = vpop.f32.mrf.mxu3 }
  0xd3   : > { %v1294_v38 = vadd.f32 %v1293_v19, %v1245_v47 }
  0xd5   : > { %v1487_v55 = vadd.f32 %v1486_v58, %v1294_v38 }
  0xd7   : > { %v1246_v60 = vpop.f32.mrf.mxu1  ;;  %v1537_v0 = vpop.f32.mrf.mxu0  ;;  %v3699_v4 = vadd.f32 %v1535_v14, %v1487_v55 }
  0xd8   : > { %v1247_v59 = vadd.f32 %v1246_v60, %v1197_v57 }
  0xda   : > { %v1295_v32 = vpop.f32.mrf.mxu2  ;;  %v1488_v48 = vpop.f32.mrf.mxu3 }
  0xdb   : > { %v1296_v6 = vadd.f32 %v1295_v32, %v1247_v59 }
  0xdd   : > { %v1489_v10 = vadd.f32 %v1488_v48, %v1296_v6 }
  0xdf   : > { %v1249_v20 = vpop.f32.mrf.mxu1  ;;  %v1540_v25 = vpop.f32.mrf.mxu0  ;;  %1830 = vmatmul.bf16.gmra.mxu2 %v3212_v31  ;;  %v3703_v61 = vadd.f32 %v1537_v0, %v1489_v10  ;;  %1879 = vmatmul.bf16.gmra.mxu3 %v3432_v9 }
  0xe0   : > { %v1250_v22 = vadd.f32 %v1249_v20, %v1200_v15 }
  0xe2   : > { %1588 = vmatmul.bf16.gmra.mxu1 %v3467_v2  ;;  %1928 = vmatmul.bf16.gmra.mxu0 %v3477_v21  ;;  %v1298_v57 = vpop.f32.mrf.mxu2  ;;  %v1491_v51 = vpop.f32.mrf.mxu3 }
  0xe3   : > { %v1299_v46 = vadd.f32 %v1298_v57, %v1250_v22 }
  0xe5   : > { %v1492_v40 = vadd.f32 %v1491_v51, %v1299_v46 }
  0xe7   : > { %v1251_v30 = vpop.f32.mrf.mxu1  ;;  %v1542_v42 = vpop.f32.mrf.mxu0  ;;  %v3707_v45 = vadd.f32 %v1540_v25, %v1492_v40 }
  0xe8   : > { %v1252_v41 = vadd.f32 %v1251_v30, %v1202_v7 }
  0xea   : > { %v1300_v15 = vpop.f32.mrf.mxu2  ;;  %v1493_v2 = vpop.f32.mrf.mxu3 }
  0xeb   : > { %v1301_v43 = vadd.f32 %v1300_v15, %v1252_v41 }
  0xed   : > { %v1494_v31 = vadd.f32 %v1493_v2, %v1301_v43 }
  0xef   : > { %v1254_v47 = vpop.f32.mrf.mxu1  ;;  %v1545_v9 = vpop.f32.mrf.mxu0  ;;  %1835 = vmatmul.bf16.gmra.mxu2 %v3354_v26  ;;  %v3712_v19 = vadd.f32 %v1542_v42, %v1494_v31  ;;  %1884 = vmatmul.bf16.gmra.mxu3 %v3503_v34 }
  0xf0   : > { %v1255_v14 = vadd.f32 %v1254_v47, %v3640_v50 }
  0xf2   : > { %1593 = vmatmul.bf16.gmra.mxu1 %v3514_v62  ;;  %1933 = vmatmul.bf16.gmra.mxu0 %v3516_v63  ;;  %v1303_v7 = vpop.f32.mrf.mxu2  ;;  %v1496_v58 = vpop.f32.mrf.mxu3 }
  0xf3   : > { %v1304_v38 = vadd.f32 %v1303_v7, %v1255_v14  ;;  %v2815_v14 = vld [vmem:[%s444_s14] sm:$0xff]  }
  0xf4   : > { %v2816_v7 = vunpack.c.l.bf16 %v2815_v14 }
  0xf5   : > { %v1497_v55 = vadd.f32 %v1496_v58, %v1304_v38  ;;  %v2817_v38 = vunpack.c.h.bf16 %v2815_v14 }
  0xf7   : > { %v1256_v60 = vpop.f32.mrf.mxu1  ;;  %v1547_v50 = vpop.f32.mrf.mxu0  ;;  %v3717_v0 = vadd.f32 %v1545_v9, %v1497_v55 }
  0xf8   : > { %v1257_v59 = vadd.f32 %v1256_v60, %v3659_v27 }
  0xfa   : > { %v1305_v32 = vpop.f32.mrf.mxu2  ;;  %v1498_v34 = vpop.f32.mrf.mxu3 }
  0xfb   : > { %v1306_v26 = vadd.f32 %v1305_v32, %v1257_v59  ;;  %v2939_v59 = vld [vmem:[%s3850_s0] ss:$0 sm:$0xff] }
  0xfc   : > { %v559_v32 = vmul.f32 %v2939_v59, %v2817_v38 }
  0xfd   : > { %v1499_v6 = vadd.f32 %v1498_v34, %v1306_v26 }
  0xff   : > { %v1259_v62 = vpop.f32.mrf.mxu1  ;;  %v1550_v20 = vpop.f32.mrf.mxu0  ;;  %1840 = vmatmul.bf16.gmra.mxu2 %v3214_v35  ;;  %v3726_v27 = vadd.f32 %v1547_v50, %v1499_v6  ;;  %1889 = vmatmul.bf16.gmra.mxu3 %v3578_v53  ;;  %v558_v50 = vmul.f32 %v2939_v59, %v2816_v7 }
 0x100   : > { %v1260_v48 = vadd.f32 %v1259_v62, %v3671_v16 }
 0x102   : > { %1598 = vmatmul.bf16.gmra.mxu1 %v3477_v21  ;;  %1938 = vmatmul.bf16.gmra.mxu0 %v3580_v37  ;;  %v1308_v10 = vpop.f32.mrf.mxu2  ;;  %v1501_v25 = vpop.f32.mrf.mxu3 }
 0x103   : > { %v1309_v22 = vadd.f32 %v1308_v10, %v1260_v48  ;;  %v565_v10 = vstv %s564_s11 }
 0x105   : > { %v1502_v57 = vadd.f32 %v1501_v25, %v1309_v22 }
 0x107   : > { %v1261_v16 = vpop.f32.mrf.mxu1  ;;  %v1552_v51 = vpop.f32.mrf.mxu0  ;;  %v3736_v35 = vadd.f32 %v1550_v20, %v1502_v57 }
 0x108   : > { %v1262_v46 = vadd.f32 %v1261_v16, %v3690_v29 }
 0x10a   : > { %v1310_v21 = vpop.f32.mrf.mxu2  ;;  %v1503_v30 = vpop.f32.mrf.mxu3 }
 0x10b   : > { %v1311_v53 = vadd.f32 %v1310_v21, %v1262_v46 }
 0x10d   : > { %v1504_v41 = vadd.f32 %v1503_v30, %v1311_v53 }
 0x10f   : > { %v1264_v40 = vpop.f32.mrf.mxu1  ;;  %v1555_v42 = vpop.f32.mrf.mxu0  ;;  %1845 = vmatmul.bf16.gmra.mxu2 %v3357_v28  ;;  %v3741_v15 = vadd.f32 %v1552_v51, %v1504_v41  ;;  %1894 = vmatmul.bf16.gmra.mxu3 %v3609_v1 }
 0x110   : > { %v1265_v29 = vadd.f32 %v1264_v40, %v3655_v54 }
 0x112   : > { %1603 = vmatmul.bf16.gmra.mxu1 %v3516_v63  ;;  %1943 = vmatmul.bf16.gmra.mxu0 %v3611_v13  ;;  %v1313_v43 = vpop.f32.mrf.mxu2  ;;  %v1506_v47 = vpop.f32.mrf.mxu3 }
 0x113   : > { %v1314_v2 = vadd.f32 %v1313_v43, %v1265_v29 }
 0x115   : > { %v1507_v31 = vadd.f32 %v1506_v47, %v1314_v2 }
 0x117   : > { %v1266_v63 = vpop.f32.mrf.mxu1  ;;  %v1557_v28 = vpop.f32.mrf.mxu0  ;;  %v3749_v9 = vadd.f32 %v1555_v42, %v1507_v31 }
 0x118   : > { %v1267_v1 = vadd.f32 %v1266_v63, %v3667_v11  ;;  %v2940_v11 = vld [vmem:[%s3851_s1] ss:$0 sm:$0xff] }
 0x119   : > { %v560_v6 = vadd.f32 %v2940_v11, %v558_v50  ;;  %v561_v48 = vadd.f32 %v2940_v11, %v559_v32 }
 0x11a   : > { %v1315_v58 = vpop.f32.mrf.mxu2  ;;  %v1508_v60 = vpop.f32.mrf.mxu3 }
 0x11b   : > { %v1316_v54 = vadd.f32 %v1315_v58, %v1267_v1  ;;  %v567_v57 = vmul.f32 %v565_v10, %v561_v48 }
 0x11d   : > { %v1509_v26 = vadd.f32 %v1508_v60, %v1316_v54  ;;  %v602_v53 = vrot.slane %v567_v57, 7  ;;  %v663_v41 = vrot.slane %v567_v57, 1 }
 0x11f   : > { %v1269_v55 = vpop.f32.mrf.mxu1  ;;  %v1560_v34 = vpop.f32.mrf.mxu0  ;;  %1850 = vmatmul.bf16.gmra.mxu2 %v3227_v49  ;;  %v3758_v62 = vadd.f32 %v1557_v28, %v1509_v26  ;;  %1899 = vmatmul.bf16.gmra.mxu3 %v3642_v36  ;;  %v566_v49 = vmul.f32 %v565_v10, %v560_v6 }
 0x120   : > { %v1270_v20 = vadd.f32 %v1269_v55, %v3686_v23 }
 0x121   : > { %v592_v21 = vrot.slane %v566_v49, 7  ;;  %v653_v40 = vrot.slane %v566_v49, 1  ;;  %v743_v55 = vpack.c.bf16 %v566_v49, %v566_v49 }
 0x122   : > { %1608 = vmatmul.bf16.gmra.mxu1 %v3580_v37  ;;  %1948 = vmatmul.bf16.gmra.mxu0 %v3644_v52  ;;  %v1318_v22 = vpop.f32.mrf.mxu2  ;;  %v1511_v37 = vpop.f32.mrf.mxu3 }
 0x123   : > { %v1319_v25 = vadd.f32 %v1318_v22, %v1270_v20  ;;  %v623_v2 = vsel %vm603_vm1, %v602_v53, %v592_v21  ;;  %v684_v31 = vsel %vm664_vm3, %v663_v41, %v653_v40  ;;  %v613_v14 = vsel %vm603_vm1, %v592_v21, %v602_v53 }
 0x124   : > { %v704_v7 = vmul.f32 %v3343_v17, %v684_v31  ;;  %v724_v54 = vpack.c.bf16 %v613_v14, %v613_v14 }
 0x125   : > { %v1512_v46 = vadd.f32 %v1511_v37, %v1319_v25 }
 0x127   : > { %v1271_v16 = vpop.f32.mrf.mxu1  ;;  %v1562_v51 = vpop.f32.mrf.mxu0  ;;  %v3766_v36 = vadd.f32 %v1560_v34, %v1512_v46  ;;  %v804_v34 = vunpack.c.l.b16 %v724_v54 }
 0x128   : > { %v1272_v30 = vadd.f32 %v1271_v16, %v3692_v5  ;;  %v642_v5 = vmul.f32 %v3094_v8, %v623_v2 }
 0x12a   : > { %v1320_v42 = vpop.f32.mrf.mxu2  ;;  %v1513_v23 = vpop.f32.mrf.mxu3  ;;  %v723_v8 = vpack.c.bf16 %v642_v5, %v642_v5 }
 0x12b   : > { %v1321_v29 = vadd.f32 %v1320_v42, %v1272_v30 }
 0x12c   : > { %v803_v26 = vunpack.c.l.b16 %v723_v8 }
 0x12d   : > { %v1514_v47 = vadd.f32 %v1513_v23, %v1321_v29 }
 0x12e   : > { %v814_v25 = vpack.c.b16 %v804_v34, %v803_v26 }
 0x12f   : > { %v1274_v43 = vpop.f32.mrf.mxu1  ;;  %v1565_v63 = vpop.f32.mrf.mxu0  ;;  %1855 = vmatmul.bf16.gmra.mxu2 %v3363_v39  ;;  %v3776_v28 = vadd.f32 %v1562_v51, %v1514_v47  ;;  %1904 = vmatmul.bf16.gmra.mxu3 %v3673_v12  ;;  %v744_v12 = vpack.c.bf16 %v567_v57, %v567_v57 }
 0x130   : > { %v1275_v38 = vadd.f32 %v1274_v43, %v3657_v56  ;;  %v863_v56 = vunpack.c.l.b16 %v743_v55 }
 0x131   : > { %v864_v11 = vunpack.c.l.b16 %v744_v12 }
 0x132   : > { %1613 = vmatmul.bf16.gmra.mxu1 %v3611_v13  ;;  %1953 = vmatmul.bf16.gmra.mxu0 %v3675_v18  ;;  %v674_v13 = vsel %vm664_vm3, %v653_v40, %v663_v41  ;;  %v1323_v1 = vpop.f32.mrf.mxu2  ;;  %v1516_v58 = vpop.f32.mrf.mxu3  ;;  %v764_v18 = vpack.c.bf16 %v704_v7, %v704_v7 }
 0x133   : > { %v1324_v39 = vadd.f32 %v1323_v1, %v1275_v38  ;;  %v763_v59 = vpack.c.bf16 %v674_v13, %v674_v13  ;;  %v874_v16 = vpack.c.b16 %v864_v11, %v863_v56 }
 0x134   : > { %v924_v6 = vunpack.c.l.b16 %v764_v18 }
 0x135   : > { %v1517_v50 = vadd.f32 %v1516_v58, %v1324_v39  ;;  %v923_v3 = vunpack.c.l.b16 %v763_v59 }
 0x137   : > { %v1276_v60 = vpop.f32.mrf.mxu1  ;;  %v1567_v32 = vpop.f32.mrf.mxu0  ;;  %v3786_v17 = vadd.f32 %v1565_v63, %v1517_v50  ;;  %v934_v49 = vpack.c.b16 %v924_v6, %v923_v3 }
 0x138   : > { %v1277_v48 = vadd.f32 %v1276_v60, %v3669_v33 }
 0x13a   : > { %v1325_v20 = vpop.f32.mrf.mxu2  ;;  %v1518_v22 = vpop.f32.mrf.mxu3 }
 0x13b   : > { %v1326_v10 = vadd.f32 %v1325_v20, %v1277_v48 }
 0x13d   : > { %v1519_v57 = vadd.f32 %v1518_v22, %v1326_v10 }
 0x13f   : > { %v1279_v37 = vpop.f32.mrf.mxu1  ;;  %v1570_v46 = vpop.f32.mrf.mxu0  ;;  %1860 = vmatmul.bf16.gmra.mxu2 %v814_v25  ;;  %v3790_v51 = vadd.f32 %v1567_v32, %v1519_v57  ;;  %1909 = vmatmul.bf16.gmra.mxu3 %v874_v16 }
 0x140   : > { %v1280_v21 = vadd.f32 %v1279_v37, %v3688_v24 }
 0x142   : > { %1618 = vmatmul.bf16.gmra.mxu1 %v3644_v52  ;;  %1958 = vmatmul.bf16.gmra.mxu0 %v934_v49  ;;  %v1328_v53 = vpop.f32.mrf.mxu2  ;;  %v1521_v30 = vpop.f32.mrf.mxu3 }
 0x143   : > { %v1329_v33 = vadd.f32 %v1328_v53, %v1280_v21 }
 0x145   : > { %v1522_v41 = vadd.f32 %v1521_v30, %v1329_v33 }
 0x147   : > { %v1281_v40 = vpop.f32.mrf.mxu1  ;;  %v1572_v42 = vpop.f32.mrf.mxu0  ;;  %v3793_v29 = vadd.f32 %v1570_v46, %v1522_v41 }
 0x148   : > { %v1282_v23 = vadd.f32 %v1281_v40, %v3694_v44 }
 0x14a   : > { %v1330_v43 = vpop.f32.mrf.mxu2  ;;  %v1523_v52 = vpop.f32.mrf.mxu3 }
 0x14b   : > { %v1331_v2 = vadd.f32 %v1330_v43, %v1282_v23 }
 0x14d   : > { %v1524_v63 = vadd.f32 %v1523_v52, %v1331_v2 }
 0x14f   : > { %v1584_v47 = vpop.f32.mrf.mxu1  ;;  %v1924_v31 = vpop.f32.mrf.mxu0  ;;  %v3796_v5 = vadd.f32 %v1572_v42, %v1524_v63 }
 0x150   : > { %v1585_v39 = vadd.f32 %v1584_v47, %v3699_v4 }
 0x152   : > { %v1826_v14 = vpop.f32.mrf.mxu2  ;;  %v1875_v24 = vpop.f32.mrf.mxu3 }
 0x153   : > { %v1876_v7 = vadd.f32 %v1875_v24, %v1826_v14 }
 0x155   : > { %v1925_v1 = vadd.f32 %v1924_v31, %v1876_v7 }
 0x157   : > { %v1586_v38 = vpop.f32.mrf.mxu1  ;;  %v1926_v13 = vpop.f32.mrf.mxu0  ;;  %v1964_v58 = vadd.f32 %v1925_v1, %v1585_v39 }
 0x158   : > { %v1587_v59 = vadd.f32 %v1586_v38, %v3703_v61 }
 0x159   : > { %v1980_v12 = vpack.c.bf16 %v1964_v58, %v1964_v58 }
 0x15a   : > { %v1828_v8 = vpop.f32.mrf.mxu2  ;;  %v1877_v44 = vpop.f32.mrf.mxu3 }
 0x15b   : > { %v1878_v54 = vadd.f32 %v1877_v44, %v1828_v8  ;;  %v2012_v32 = vunpack.c.l.bf16 %v1980_v12 }
 0x15d   : > { %v1927_v18 = vadd.f32 %v1926_v13, %v1878_v54  ;;  %v2049_v20 = vmul.f32 %v2012_v32, %v2012_v32 }
 0x15f   : > { %v1589_v60 = vpop.f32.mrf.mxu1  ;;  %v1929_v55 = vpop.f32.mrf.mxu0  ;;  %v1965_v50 = vadd.f32 %v1927_v18, %v1587_v59 }
 0x160   : > { %v1590_v61 = vadd.f32 %v1589_v60, %v3707_v45 }
 0x161   : > { %v1981_v4 = vpack.c.bf16 %v1965_v50, %v1965_v50  ;;  %v2821_v26 = vpack.c.bf16 %v1965_v50, %v1964_v58 }
 0x162   : > { %v1831_v34 = vpop.f32.mrf.mxu2  ;;  %v1880_v56 = vpop.f32.mrf.mxu3 }
 0x163   : > { %2822 = vst [vmem:[%s3805_s10] sm:$0xff] %v2821_v26   ;;  %v2013_v11 = vunpack.c.l.bf16 %v1981_v4  ;;  %v1881_v3 = vadd.f32 %v1880_v56, %v1831_v34 }
 0x165   : > { %v2028_v10 = vadd.f32 %v2013_v11, %v2012_v32  ;;  %v2050_v22 = vmul.f32 %v2013_v11, %v2013_v11  ;;  %v1930_v25 = vadd.f32 %v1929_v55, %v1881_v3 }
 0x167   : > { %v1591_v6 = vpop.f32.mrf.mxu1  ;;  %v1931_v48 = vpop.f32.mrf.mxu0  ;;  %v2065_v37 = vadd.f32 %v2050_v22, %v2049_v20  ;;  %v1966_v16 = vadd.f32 %v1930_v25, %v1590_v61 }
 0x168   : > { %v1592_v42 = vadd.f32 %v1591_v6, %v3712_v19 }
 0x169   : > { %v1982_v49 = vpack.c.bf16 %v1966_v16, %v1966_v16 }
 0x16a   : > { %v1833_v57 = vpop.f32.mrf.mxu2  ;;  %v1882_v46 = vpop.f32.mrf.mxu3 }
 0x16b   : > { %v2014_v21 = vunpack.c.l.bf16 %v1982_v49  ;;  %v1883_v53 = vadd.f32 %v1882_v46, %v1833_v57 }
 0x16d   : > { %v2029_v40 = vadd.f32 %v2028_v10, %v2014_v21  ;;  %v2051_v41 = vmul.f32 %v2014_v21, %v2014_v21  ;;  %v1932_v45 = vadd.f32 %v1931_v48, %v1883_v53 }
 0x16f   : > { %v1594_v33 = vpop.f32.mrf.mxu1  ;;  %v1934_v30 = vpop.f32.mrf.mxu0  ;;  %v2066_v23 = vadd.f32 %v2065_v37, %v2051_v41  ;;  %v1967_v43 = vadd.f32 %v1932_v45, %v1592_v42 }
 0x170   : > { %v1595_v1 = vadd.f32 %v1594_v33, %v3717_v0 }
 0x171   : > { %v1983_v2 = vpack.c.bf16 %v1967_v43, %v1967_v43  ;;  %v2826_v52 = vpack.c.bf16 %v1967_v43, %v1966_v16 }
 0x172   : > { %v1836_v47 = vpop.f32.mrf.mxu2  ;;  %v1885_v63 = vpop.f32.mrf.mxu3 }
 0x173   : > { %2865 = vst [vmem:[%s3805_s10 + $0x8] sm:$0xff] %v2826_v52   ;;  %v2015_v31 = vunpack.c.l.bf16 %v1983_v2  ;;  %v1886_v14 = vadd.f32 %v1885_v63, %v1836_v47 }
 0x175   : > { %v2030_v38 = vadd.f32 %v2029_v40, %v2015_v31  ;;  %v2052_v13 = vmul.f32 %v2015_v31, %v2015_v31  ;;  %v1935_v39 = vadd.f32 %v1934_v30, %v1886_v14 }
 0x177   : > { %v1596_v24 = vpop.f32.mrf.mxu1  ;;  %v1936_v7 = vpop.f32.mrf.mxu0  ;;  %v2067_v58 = vadd.f32 %v2066_v23, %v2052_v13  ;;  %v1968_v8 = vadd.f32 %v1935_v39, %v1595_v1 }
 0x178   : > { %v1597_v32 = vadd.f32 %v1596_v24, %v3726_v27 }
 0x179   : > { %v1984_v19 = vpack.c.bf16 %v1968_v8, %v1968_v8 }
 0x17a   : > { %v1838_v44 = vpop.f32.mrf.mxu2  ;;  %v1887_v54 = vpop.f32.mrf.mxu3 }
 0x17b   : > { %v2016_v60 = vunpack.c.l.bf16 %v1984_v19  ;;  %v1888_v55 = vadd.f32 %v1887_v54, %v1838_v44 }
 0x17d   : > { %v2031_v18 = vadd.f32 %v2030_v38, %v2016_v60  ;;  %v2053_v50 = vmul.f32 %v2016_v60, %v2016_v60  ;;  %v1937_v4 = vadd.f32 %v1936_v7, %v1888_v55 }
 0x17f   : > { %v1599_v12 = vpop.f32.mrf.mxu1  ;;  %v1939_v59 = vpop.f32.mrf.mxu0  ;;  %v2068_v26 = vadd.f32 %v2067_v58, %v2053_v50  ;;  %v1969_v34 = vadd.f32 %v1937_v4, %v1597_v32 }
 0x180   : > { %v1600_v25 = vadd.f32 %v1599_v12, %v3736_v35 }
 0x181   : > { %v1985_v56 = vpack.c.bf16 %v1969_v34, %v1969_v34  ;;  %v2831_v0 = vpack.c.bf16 %v1969_v34, %v1968_v8 }
 0x182   : > { %v1841_v11 = vpop.f32.mrf.mxu2  ;;  %v1890_v3 = vpop.f32.mrf.mxu3 }
 0x183   : > { %2866 = vst [vmem:[%s3805_s10 + $0x10] sm:$0xff] %v2831_v0   ;;  %v2017_v6 = vunpack.c.l.bf16 %v1985_v56  ;;  %v1891_v61 = vadd.f32 %v1890_v3, %v1841_v11 }
 0x185   : > { %v2032_v10 = vadd.f32 %v2031_v18, %v2017_v6  ;;  %v2054_v22 = vmul.f32 %v2017_v6, %v2017_v6  ;;  %v1940_v37 = vadd.f32 %v1939_v59, %v1891_v61 }
 0x187   : > { %v1601_v48 = vpop.f32.mrf.mxu1  ;;  %v1941_v20 = vpop.f32.mrf.mxu0  ;;  %v2069_v16 = vadd.f32 %v2068_v26, %v2054_v22  ;;  %v1970_v49 = vadd.f32 %v1940_v37, %v1600_v25 }
 0x188   : > { %v1602_v42 = vadd.f32 %v1601_v48, %v3741_v15 }
 0x189   : > { %v1986_v27 = vpack.c.bf16 %v1970_v49, %v1970_v49 }
 0x18a   : > { %v1843_v57 = vpop.f32.mrf.mxu2  ;;  %v1892_v46 = vpop.f32.mrf.mxu3 }
 0x18b   : > { %v2018_v21 = vunpack.c.l.bf16 %v1986_v27  ;;  %v1893_v53 = vadd.f32 %v1892_v46, %v1843_v57 }
 0x18d   : > { %v2033_v40 = vadd.f32 %v2032_v10, %v2018_v21  ;;  %v2055_v41 = vmul.f32 %v2018_v21, %v2018_v21  ;;  %v1942_v45 = vadd.f32 %v1941_v20, %v1893_v53 }
 0x18f   : > { %v1604_v33 = vpop.f32.mrf.mxu1  ;;  %v1944_v30 = vpop.f32.mrf.mxu0  ;;  %v2070_v23 = vadd.f32 %v2069_v16, %v2055_v41  ;;  %v1971_v43 = vadd.f32 %v1942_v45, %v1602_v42 }
 0x190   : > { %v1605_v13 = vadd.f32 %v1604_v33, %v3749_v9 }
 0x191   : > { %v1987_v2 = vpack.c.bf16 %v1971_v43, %v1971_v43  ;;  %v2836_v35 = vpack.c.bf16 %v1971_v43, %v1970_v49 }
 0x192   : > { %v1846_v52 = vpop.f32.mrf.mxu2  ;;  %v1895_v47 = vpop.f32.mrf.mxu3 }
 0x193   : > { %2867 = vst [vmem:[%s3805_s10 + $0x18] sm:$0xff] %v2836_v35   ;;  %v2019_v63 = vunpack.c.l.bf16 %v1987_v2  ;;  %v1896_v31 = vadd.f32 %v1895_v47, %v1846_v52 }
 0x195   : > { %v2034_v7 = vadd.f32 %v2033_v40, %v2019_v63  ;;  %v2056_v38 = vmul.f32 %v2019_v63, %v2019_v63  ;;  %v1945_v1 = vadd.f32 %v1944_v30, %v1896_v31 }
 0x197   : > { %v1606_v14 = vpop.f32.mrf.mxu1  ;;  %v1946_v24 = vpop.f32.mrf.mxu0  ;;  %v2071_v39 = vadd.f32 %v2070_v23, %v2056_v38  ;;  %v1972_v58 = vadd.f32 %v1945_v1, %v1605_v13 }
 0x198   : > { %v1607_v18 = vadd.f32 %v1606_v14, %v3758_v62 }
 0x199   : > { %v1988_v15 = vpack.c.bf16 %v1972_v58, %v1972_v58 }
 0x19a   : > { %v1848_v8 = vpop.f32.mrf.mxu2  ;;  %v1897_v19 = vpop.f32.mrf.mxu3 }
 0x19b   : > { %v2020_v44 = vunpack.c.l.bf16 %v1988_v15  ;;  %v1898_v54 = vadd.f32 %v1897_v19, %v1848_v8 }
 0x19d   : > { %v2035_v12 = vadd.f32 %v2034_v7, %v2020_v44  ;;  %v2057_v59 = vmul.f32 %v2020_v44, %v2020_v44  ;;  %v1947_v50 = vadd.f32 %v1946_v24, %v1898_v54 }
 0x19f   : > { %v1609_v60 = vpop.f32.mrf.mxu1  ;;  %v1949_v55 = vpop.f32.mrf.mxu0  ;;  %v2072_v32 = vadd.f32 %v2071_v39, %v2057_v59  ;;  %v1973_v4 = vadd.f32 %v1947_v50, %v1607_v18 }
 0x1a0   : > { %v1610_v20 = vadd.f32 %v1609_v60, %v3766_v36 }
 0x1a1   : > { %v1989_v26 = vpack.c.bf16 %v1973_v4, %v1973_v4  ;;  %v2841_v9 = vpack.c.bf16 %v1973_v4, %v1972_v58 }
 0x1a2   : > { %v1851_v34 = vpop.f32.mrf.mxu2  ;;  %v1900_v56 = vpop.f32.mrf.mxu3 }
 0x1a3   : > { %2868 = vst [vmem:[%s3805_s10 + $0x20] sm:$0xff] %v2841_v9   ;;  %v2021_v0 = vunpack.c.l.bf16 %v1989_v26  ;;  %v1901_v11 = vadd.f32 %v1900_v56, %v1851_v34 }
 0x1a5   : > { %v2036_v61 = vadd.f32 %v2035_v12, %v2021_v0  ;;  %v2058_v48 = vmul.f32 %v2021_v0, %v2021_v0  ;;  %v1950_v10 = vadd.f32 %v1949_v55, %v1901_v11 }
 0x1a7   : > { %v1611_v3 = vpop.f32.mrf.mxu1  ;;  %v1951_v6 = vpop.f32.mrf.mxu0  ;;  %v2073_v22 = vadd.f32 %v2072_v32, %v2058_v48  ;;  %v1974_v25 = vadd.f32 %v1950_v10, %v1610_v20 }
 0x1a8   : > { %v1612_v53 = vadd.f32 %v1611_v3, %v3776_v28 }
 0x1a9   : > { %v1990_v62 = vpack.c.bf16 %v1974_v25, %v1974_v25 }
 0x1aa   : > { %v1853_v37 = vpop.f32.mrf.mxu2  ;;  %v1902_v16 = vpop.f32.mrf.mxu3 }
 0x1ab   : > { %v2022_v49 = vunpack.c.l.bf16 %v1990_v62  ;;  %v1903_v27 = vadd.f32 %v1902_v16, %v1853_v37 }
 0x1ad   : > { %v2037_v46 = vadd.f32 %v2036_v61, %v2022_v49  ;;  %v2059_v21 = vmul.f32 %v2022_v49, %v2022_v49  ;;  %v1952_v33 = vadd.f32 %v1951_v6, %v1903_v27 }
 0x1af   : > { %v1614_v57 = vpop.f32.mrf.mxu1  ;;  %v1954_v30 = vpop.f32.mrf.mxu0  ;;  %v2074_v40 = vadd.f32 %v2073_v22, %v2059_v21  ;;  %v1975_v41 = vadd.f32 %v1952_v33, %v1612_v53 }
 0x1b0   : > { %v1615_v47 = vadd.f32 %v1614_v57, %v3786_v17 }
 0x1b1   : > { %v1991_v42 = vpack.c.bf16 %v1975_v41, %v1975_v41  ;;  %v2846_v36 = vpack.c.bf16 %v1975_v41, %v1974_v25 }
 0x1b2   : > { %v1856_v45 = vpop.f32.mrf.mxu2  ;;  %v1905_v23 = vpop.f32.mrf.mxu3 }
 0x1b3   : > { %2869 = vst [vmem:[%s3805_s10 + $0x28] sm:$0xff] %v2846_v36   ;;  %v2023_v43 = vunpack.c.l.bf16 %v1991_v42  ;;  %v1906_v2 = vadd.f32 %v1905_v23, %v1856_v45 }
 0x1b5   : > { %v2038_v35 = vadd.f32 %v2037_v46, %v2023_v43  ;;  %v2060_v52 = vmul.f32 %v2023_v43, %v2023_v43  ;;  %v1955_v63 = vadd.f32 %v1954_v30, %v1906_v2 }
 0x1b7   : > { %v1616_v31 = vpop.f32.mrf.mxu1  ;;  %v2075_v14 = vadd.f32 %v2074_v40, %v2060_v52  ;;  %v1976_v24 = vadd.f32 %v1955_v63, %v1615_v47  ;;  %v1956_v28 = vpop.f32.mrf.mxu0 }
 0x1b8   : > { %v1617_v8 = vadd.f32 %v1616_v31, %v3790_v51 }
 0x1b9   : > { %v1992_v7 = vpack.c.bf16 %v1976_v24, %v1976_v24 }
 0x1ba   : > { %v1858_v38 = vpop.f32.mrf.mxu2  ;;  %v1907_v13 = vpop.f32.mrf.mxu3 }
 0x1bb   : > { %v2024_v1 = vunpack.c.l.bf16 %v1992_v7  ;;  %v1908_v39 = vadd.f32 %v1907_v13, %v1858_v38 }
 0x1bd   : > { %v2039_v58 = vadd.f32 %v2038_v35, %v2024_v1  ;;  %v2061_v15 = vmul.f32 %v2024_v1, %v2024_v1  ;;  %v1957_v19 = vadd.f32 %v1956_v28, %v1908_v39 }
 0x1bf   : > { %v2076_v44 = vadd.f32 %v2075_v14, %v2061_v15  ;;  %v1977_v54 = vadd.f32 %v1957_v19, %v1617_v8  ;;  %v1619_v60 = vpop.f32.mrf.mxu1  ;;  %v1959_v59 = vpop.f32.mrf.mxu0 }
 0x1c0   : > { %v1620_v9 = vadd.f32 %v1619_v60, %v3793_v29 }
 0x1c1   : > { %v1993_v17 = vpack.c.bf16 %v1977_v54, %v1977_v54  ;;  %v2851_v55 = vpack.c.bf16 %v1977_v54, %v1976_v24 }
 0x1c2   : > { %v1861_v12 = vpop.f32.mrf.mxu2  ;;  %v1910_v18 = vpop.f32.mrf.mxu3 }
 0x1c3   : > { %2870 = vst [vmem:[%s3805_s10 + $0x30] sm:$0xff] %v2851_v55   ;;  %v2025_v50 = vunpack.c.l.bf16 %v1993_v17  ;;  %v1911_v32 = vadd.f32 %v1910_v18, %v1861_v12 }
 0x1c5   : > { %v2040_v4 = vadd.f32 %v2039_v58, %v2025_v50  ;;  %v2062_v26 = vmul.f32 %v2025_v50, %v2025_v50  ;;  %v1960_v34 = vadd.f32 %v1959_v59, %v1911_v32 }
 0x1c7   : > { %v2077_v56 = vadd.f32 %v2076_v44, %v2062_v26  ;;  %v1978_v0 = vadd.f32 %v1960_v34, %v1620_v9  ;;  %v1621_v3 = vpop.f32.mrf.mxu1  ;;  %v1961_v20 = vpop.f32.mrf.mxu0 }
 0x1c8   : > { %v1622_v25 = vadd.f32 %v1621_v3, %v3796_v5 }
 0x1c9   : > { %v1994_v51 = vpack.c.bf16 %v1978_v0, %v1978_v0 }
 0x1ca   : > { %v1863_v11 = vpop.f32.mrf.mxu2  ;;  %v1912_v6 = vpop.f32.mrf.mxu3 }
 0x1cb   : > { %v2026_v61 = vunpack.c.l.bf16 %v1994_v51  ;;  %v1913_v48 = vadd.f32 %v1912_v6, %v1863_v11 }
 0x1cd   : > { %v2041_v10 = vadd.f32 %v2040_v4, %v2026_v61  ;;  %v2063_v22 = vmul.f32 %v2026_v61, %v2026_v61  ;;  %v1962_v62 = vadd.f32 %v1961_v20, %v1913_v48 }
 0x1cf   : > { %v2078_v29 = vadd.f32 %v2077_v56, %v2063_v22  ;;  %v1979_v37 = vadd.f32 %v1962_v62, %v1622_v25 }
 0x1d1   : > { %v1995_v16 = vpack.c.bf16 %v1979_v37, %v1979_v37  ;;  %v2856_v49 = vpack.c.bf16 %v1979_v37, %v1978_v0 }
 0x1d3   : > { %2871 = vst [vmem:[%s3805_s10 + $0x38] sm:$0xff] %v2856_v49   ;;  %v2027_v27 = vunpack.c.l.bf16 %v1995_v16 }
 0x1d5   : > { %v2042_v57 = vadd.f32 %v2041_v10, %v2027_v27  ;;  %v2064_v46 = vmul.f32 %v2027_v27, %v2027_v27 }
 0x1d7   : > { %v2043_v21 = vrot.slane %v2042_v57, 4  ;;  %v2079_v53 = vadd.f32 %v2078_v29, %v2064_v46 }
 0x1d9   : > { %v2044_v33 = vadd.f32 %v2043_v21, %v2042_v57  ;;  %v2080_v30 = vrot.slane %v2079_v53, 4 }
 0x1db   : > { %v2045_v40 = vrot.slane %v2044_v33, 2  ;;  %v2081_v41 = vadd.f32 %v2080_v30, %v2079_v53 }
 0x1dd   : > { %v2046_v5 = vadd.f32 %v2045_v40, %v2044_v33  ;;  %v2082_v42 = vrot.slane %v2081_v41, 2 }
 0x1df   : > { %v2047_v36 = vrot.slane %v2046_v5, 1  ;;  %v2083_v45 = vadd.f32 %v2082_v42, %v2081_v41 }
 0x1e1   : > { %v2084_v23 = vrot.slane %v2083_v45, 1  ;;  %v2048_v43 = vadd.f32 %v2047_v36, %v2046_v5 }
 0x1e3   : > { %v2085_v2 = vadd.f32 %v2084_v23, %v2083_v45 }
 0x1e5   : > { %v2087_v35 = vsel %vm2086_vm4, %v2048_v43, %v2085_v2 }
 0x1e6   : > { %2088 = vst [vmem:[%s467_s23] sm:$0x3] %v2087_v35 }
 0x1e7 PF: > { %s18_s28 = sadd.s32 1, %s2979_s28   ;;  %s3858_s24 = smov %s2971_s26 }
 0x1e8   : > { %p15_p13 = scmp.ge.s32.totalorder %s18_s28, 6   ;;  %s3859_s25 = smov %s2975_s27 }
 0x1e9   : > { %s3860_s26 = smov %s3863_s29  ;;  %s3861_s27 = smov %s3867_s30 }
 0x1ea   :  { %17 = sbr.rel (!%p15_p13) target bundleno = 3 (0x3), region = 94 }

// kernel: unet_decoder_block.4
= control target key start
LH: loop header
LB: loop body
LE: loop exit
PB: predicated region body
PF: predicated region fallthrough
CT: control target
= control target key end

     0   :  { %s3042_s24 = smov 0   ;;  %s3044_s25 = smov 0   ;;  %s3866_s0 = inlined_call_operand.vmem [shape: f32[1,128], index: 0, kind: input, shape index: {}]   ;;  %s3867_s1 = inlined_call_operand.vmem [shape: f32[1,128], index: 1, kind: input, shape index: {}]   ;;  %s3868_s2 = inlined_call_operand.vmem [shape: bf16[2,16,16,128], index: 2, kind: input, shape index: {}, may-alias: {2,3,4}]   ;;  %s3869_s3 = inlined_call_operand.vmem [shape: bf16[2,16,16,128], index: 3, kind: input, shape index: {}, may-alias: {2,3,4}]   ;;  %s3870_s4 = inlined_call_operand.vmem [shape: bf16[2,16,16,128], index: 4, kind: input, shape index: {}, may-alias: {2,3,4}]   ;;  %s3871_s5 = inlined_call_operand.vmem [shape: bf16[3,384,128], index: 5, kind: input, shape index: {}]   ;;  %s3872_s6 = inlined_call_operand.vmem [shape: bf16[2,16,16,128], index: 6, kind: output, shape index: {0}]   ;;  %s3873_s7 = inlined_call_operand.vmem [shape: f32[2,2,2,128], index: 7, kind: output, shape index: {1}]  }
   0x1   :  { %s3046_s26 = smov 0   ;;  %s3048_s27 = smov 0  }
   0x2   :  { %s3050_s28 = smov 0  }
   0x3 LB: > { %s27_s29 = sadd.s32 1, %s2991_s26  ;;  %s30_s30 = sadd.s32 1, %s2995_s27  ;;  %s2999_s28 = sphi %s3050_s28, %s18_s28   ;;  %s2995_s27 = sphi %s3048_s27, %s3877_s27   ;;  %s2991_s26 = sphi %s3046_s26, %s3876_s26   ;;  %s2987_s25 = sphi %s3044_s25, %s3875_s25   ;;  %s2983_s24 = sphi %s3042_s24, %s3874_s24  }
   0x4   : > { %p28_p0 = scmp.ge.s32.totalorder %s27_s29, 2  ;;  %p2307_p1 = scmp.ge.s32.totalorder %s2999_s28, 1 }
   0x5   : > { %p328_p2 = scmp.lt.s32.totalorder %s2999_s28, 5 }
   0x6   : > { %s3879_s29 = smov (%p28_p0, %s27_s29), 0  ;;  %s3881_s30 = smov (!%p28_p0, %s30_s30), %s2995_s27 }
   0x7   : > { %p329_p3 = pnand %p2307_p1, %p328_p2  ;;  %p32_p4 = scmp.ge.s32.totalorder %s3881_s30, 2 }
   0x8   : > { %s3078_s10 = sshll.u32 (!%p329_p3), %s2983_s24, 3  ;;  %p405_p5 = scmp.lt.s32.totalorder (!%p329_p3), %s2987_s25, 1 }
   0x9   : > { %s3883_s30 = smov (%p32_p4, %s3881_s30), 0  ;;  %332 = sbr.rel (%p329_p3) target bundleno = 491 (0x1eb), region = 44 }
   0xa   : > { %p407_p6 = scmp.lt.s32.totalorder (!%p329_p3), %s3078_s10, 15  ;;  %s3147_s17 = sadd.s32 (!%p329_p3), 4294967295, %s3078_s10 }
   0xb   : > { %p417_p7 = scmp.gt.s32.totalorder (!%p329_p3), %s3147_s17, 0  ;;  %p2314_p8 = scmp.lt.s32.totalorder (!%p329_p3), %s3147_s17, 15 }
   0xc   : > { %p567_p9 = scmp.ge.s32.totalorder (!%p329_p3), %s3078_s10, 1  ;;  %p462_p12 = scmp.lt.s32.totalorder (!%p329_p3), %s2983_s24, 1 }
   0xe   : > { %v2757_v0 = vld [vmem:[%s3871_s5 + $0xf8] sm:$0xff]  ;;  %v588_v1 = vlaneseq  ;;  %v2756_v2 = vld [vmem:[%s3871_s5 + $0xf0] sm:$0xff]  ;;  %s3885_s25 = smov (!%p405_p5, %s2987_s25), 1  ;;  %v2755_v4 = vld [vmem:[%s3871_s5 + $0xe8] sm:$0xff]  ;;  %v3001_v7 = vmov 0.0   ;;  %s3891_s24 = smov (!%p462_p12, %s2983_s24), 1 }
   0xf   : > { %1206 = vmatpush.bf16.msra.mxu0 %v2757_v0  ;;  %2892 = vmatpush.bf16.msra.mxu1 %v2757_v0  ;;  %s408_s13 = scalar_select %p407_p6, %s3078_s10, 15  ;;  %v3110_v5 = vld [vmem:[%s3866_s0] ss:$0 sm:$0xff]  ;;  %v2753_v31 = vld [vmem:[%s3871_s5 + $0xd8] sm:$0xff]  ;;  %v2752_v48 = vld [vmem:[%s3871_s5 + $0xd0] sm:$0xff]  ;;  %vm2106_vm4 = vcmask 1040384  }
  0x10   : > { %v3086_v3 = vshrl.u32 %v588_v1, 7  ;;  %2893 = vmatpush.bf16.msra.mxu2 %v2757_v0  ;;  %2894 = vmatpush.bf16.msra.mxu3 %v2757_v0  ;;  %s3090_s14 = sshll.u32 %s3885_s25, 5  ;;  %v2754_v11 = vld [vmem:[%s3871_s5 + $0xe0] sm:$0xff]  ;;  %v2751_v1 = vld [vmem:[%s3871_s5 + $0xc8] sm:$0xff] }
  0x11   : > { %s2309_s15 = sshll.u32 %s408_s13, 1  ;;  %v3125_v14 = vld [vmem:[%s3867_s1] ss:$0 sm:$0xff] }
  0x12   : > { %s3096_s18 = sadd.s32 %s3090_s14, %s2309_s15  ;;  %vm591_vm0 = vcmp.ne.s32.totalorder %v3086_v3, 0  ;;  %vm623_vm1 = vcmp.lt.s32.totalorder %v3086_v3, 1  ;;  %vm684_vm2 = vcmp.lt.s32.totalorder %v3086_v3, 7 }
  0x13   : > { %1207 = vmatpush.bf16.msra.mxu0 %v2756_v2  ;;  %2895 = vmatpush.bf16.msra.mxu1 %v2756_v2  ;;  %s2311_s19 = sshll.u32 %s3096_s18, 2  ;;  %v3114_v8 = vsel %vm591_vm0, 1.0, %v3001_v7  ;;  %s2333_s18 = sshll.u32 %s3885_s25, 1 }
  0x14   : > { %2896 = vmatpush.bf16.msra.mxu2 %v2756_v2  ;;  %2897 = vmatpush.bf16.msra.mxu3 %v2756_v2  ;;  %s3105_s22 = scalar_lea.vmem %s3868_s2, %s2311_s19 }
  0x15   : > { %v2799_v6 = vld [vmem:[%s3105_s22] sm:$0xff]   ;;  %v2879_v9 = vld [vmem:[%s3105_s22 + $0x10] sm:$0xff]   ;;  %v3129_v22 = vld [vmem:[%s3105_s22 + $0x8] sm:$0xff]   ;;  %s418_s23 = scalar_select %p417_p7, %s3147_s17, 0 }
  0x16   : > { %v2881_v10 = vld [vmem:[%s3105_s22 + $0x20] sm:$0xff]   ;;  %v2800_v12 = vunpack.c.l.bf16 %v2799_v6  ;;  %v2801_v13 = vunpack.c.h.bf16 %v2799_v6  ;;  %v2808_v15 = vunpack.c.l.bf16 %v2879_v9  ;;  %v2809_v16 = vunpack.c.h.bf16 %v2879_v9  ;;  %v2883_v17 = vld [vmem:[%s3105_s22 + $0x30] sm:$0xff]   ;;  %s3738_s17 = sadd.s32 8, %s3078_s10 }
  0x17   : > { %1208 = vmatpush.bf16.msra.mxu0 %v2755_v4  ;;  %2898 = vmatpush.bf16.msra.mxu1 %v2755_v4  ;;  %v2816_v18 = vunpack.c.l.bf16 %v2881_v10  ;;  %v2817_v19 = vunpack.c.h.bf16 %v2881_v10  ;;  %v2824_v20 = vunpack.c.l.bf16 %v2883_v17  ;;  %v2825_v21 = vunpack.c.h.bf16 %v2883_v17  ;;  %s3887_s23 = smov (!%p2314_p8, %s418_s23), 15  ;;  %p434_p10 = scmp.lt.s32.totalorder %s3738_s17, 15 }
  0x18   : > { %2899 = vmatpush.bf16.msra.mxu2 %v2755_v4  ;;  %2900 = vmatpush.bf16.msra.mxu3 %v2755_v4  ;;  %v506_v23 = vmul.f32 %v3110_v5, %v2800_v12  ;;  %v507_v24 = vmul.f32 %v3110_v5, %v2801_v13  ;;  %v510_v25 = vmul.f32 %v3110_v5, %v2808_v15  ;;  %v2804_v35 = vunpack.c.l.bf16 %v3129_v22  ;;  %s2319_s20 = sshll.u32 %s3887_s23, 1  ;;  %p583_p11 = scmp.lt.s32.totalorder %s3738_s17, 16 }
  0x19   : > { %v511_v26 = vmul.f32 %v3110_v5, %v2809_v16  ;;  %v514_v27 = vmul.f32 %v3110_v5, %v2816_v18  ;;  %v515_v28 = vmul.f32 %v3110_v5, %v2817_v19  ;;  %v518_v29 = vmul.f32 %v3110_v5, %v2824_v20  ;;  %v2880_v19 = vld [vmem:[%s3105_s22 + $0x18] sm:$0xff]   ;;  %s3263_s15 = sadd.s32 %s2319_s20, %s3090_s14 }
  0x1a   : > { %v519_v30 = vmul.f32 %v3110_v5, %v2825_v21  ;;  %v525_v32 = vadd.f32 %v3125_v14, %v506_v23  ;;  %v526_v33 = vadd.f32 %v3125_v14, %v507_v24  ;;  %v529_v34 = vadd.f32 %v3125_v14, %v510_v25  ;;  %v2750_v24 = vld [vmem:[%s3871_s5 + $0xc0] sm:$0xff]  ;;  %s2321_s8 = sshll.u32 %s3263_s15, 2 }
  0x1b   : > { %1209 = vmatpush.bf16.msra.mxu0 %v2754_v11  ;;  %2901 = vmatpush.bf16.msra.mxu1 %v2754_v11  ;;  %v530_v36 = vadd.f32 %v3125_v14, %v511_v26  ;;  %v533_v37 = vadd.f32 %v3125_v14, %v514_v27  ;;  %v534_v38 = vadd.f32 %v3125_v14, %v515_v28  ;;  %v2805_v39 = vunpack.c.h.bf16 %v3129_v22  ;;  %s427_s15 = scalar_lea.vmem %s3869_s3, %s2321_s8 }
  0x1c   : > { %2902 = vmatpush.bf16.msra.mxu2 %v2754_v11  ;;  %2903 = vmatpush.bf16.msra.mxu3 %v2754_v11  ;;  %v3153_v40 = vmax.f32 %v525_v32, 0.0  ;;  %v3155_v41 = vmax.f32 %v526_v33, 0.0  ;;  %v3157_v42 = vmax.f32 %v529_v34, 0.0  ;;  %v537_v43 = vadd.f32 %v3125_v14, %v518_v29  ;;  %v2882_v29 = vld [vmem:[%s3105_s22 + $0x28] sm:$0xff]   ;;  %s3365_s8 = scalar_select %p567_p9, 1.0, 0.0 }
  0x1d   : > { %v3160_v44 = vmax.f32 %v530_v36, 0.0  ;;  %v3162_v45 = vmax.f32 %v533_v37, 0.0  ;;  %v3164_v46 = vmax.f32 %v534_v38, 0.0  ;;  %v538_v47 = vadd.f32 %v3125_v14, %v519_v30  ;;  %v2773_v37 = vld [vmem:[%s3871_s5 + $0x178] sm:$0xff]  ;;  %s435_s20 = scalar_select %p434_p10, %s3738_s17, 15 }
  0x1e   : > { %v604_v49 = vrot.slane %v3153_v40, 7  ;;  %v614_v50 = vrot.slane %v3155_v41, 7  ;;  %v606_v51 = vrot.slane %v3157_v42, 7  ;;  %v3174_v52 = vmax.f32 %v537_v43, 0.0  ;;  %v2733_v38 = vld [vmem:[%s3871_s5 + $0x38] sm:$0xff] }
  0x1f   : > { %1210 = vmatpush.bf16.msra.mxu0 %v2753_v31  ;;  %2904 = vmatpush.bf16.msra.mxu1 %v2753_v31  ;;  %v616_v53 = vrot.slane %v3160_v44, 7  ;;  %v608_v54 = vrot.slane %v3162_v45, 7  ;;  %v618_v55 = vrot.slane %v3164_v46, 7  ;;  %v3179_v56 = vmax.f32 %v538_v47, 0.0  ;;  %s3889_s20 = smov (!%p434_p10, %s435_s20), 15 }
  0x20   : > { %2905 = vmatpush.bf16.msra.mxu2 %v2753_v31  ;;  %2906 = vmatpush.bf16.msra.mxu3 %v2753_v31  ;;  %v625_v57 = vsel %vm623_vm1, %v604_v49, %v614_v50  ;;  %v635_v58 = vsel %vm623_vm1, %v614_v50, %v604_v49  ;;  %v610_v59 = vrot.slane %v3174_v52, 7  ;;  %v508_v60 = vmul.f32 %v3110_v5, %v2804_v35  ;;  %v2884_v50 = vld [vmem:[%s3105_s22 + $0x38] sm:$0xff]   ;;  %s2326_s10 = sshll.u32 %s3889_s20, 1  ;;  %s3821_s20 = scalar_lea.vmem %s3872_s6, %s2311_s19 }
  0x21   : > { %v646_v61 = vmul.f32 %v3114_v8, %v635_v58  ;;  %v728_v62 = vpack.c.bf16 %v625_v57, %v625_v57  ;;  %v627_v63 = vsel %vm623_vm1, %v606_v51, %v616_v53  ;;  %v637_v0 = vsel %vm623_vm1, %v616_v53, %v606_v51  ;;  %v2765_v57 = vld [vmem:[%s3871_s5 + $0x138] sm:$0xff]  ;;  %s442_s21 = sadd.s32 %s2326_s10, %s3090_s14  ;;  %s465_s19 = sadd.s32 %s2333_s18, %s3891_s24 }
  0x22   : > { %v650_v2 = vmul.f32 %v3114_v8, %v637_v0  ;;  %v732_v4 = vpack.c.bf16 %v627_v63, %v627_v63  ;;  %v629_v6 = vsel %vm623_vm1, %v608_v54, %v618_v55  ;;  %v620_v9 = vrot.slane %v3179_v56, 7  ;;  %v2741_v58 = vld [vmem:[%s3871_s5 + $0x78] sm:$0xff]  ;;  %v2772_v0 = vld [vmem:[%s3871_s5 + $0x170] sm:$0xff]  ;;  %s2328_s9 = sshll.u32 %s442_s21, 2  ;;  %s2334_s10 = sshll.u32 %s465_s19, 1 }
  0x23   : > { %1211 = vmatpush.bf16.msra.mxu0 %v2752_v48  ;;  %2907 = vmatpush.bf16.msra.mxu1 %v2752_v48  ;;  %v727_v10 = vpack.c.bf16 %v646_v61, %v646_v61  ;;  %v808_v11 = vunpack.c.l.b16 %v728_v62  ;;  %v639_v12 = vsel %vm623_vm1, %v618_v55, %v608_v54  ;;  %v736_v13 = vpack.c.bf16 %v629_v6, %v629_v6  ;;  %s444_s22 = scalar_lea.vmem %s3870_s4, %s2328_s9 }
  0x24   : > { %2908 = vmatpush.bf16.msra.mxu2 %v2752_v48  ;;  %2909 = vmatpush.bf16.msra.mxu3 %v2752_v48  ;;  %v731_v15 = vpack.c.bf16 %v650_v2, %v650_v2  ;;  %v812_v16 = vunpack.c.l.b16 %v732_v4  ;;  %v654_v17 = vmul.f32 %v3114_v8, %v639_v12  ;;  %v631_v18 = vsel %vm623_vm1, %v610_v59, %v620_v9  ;;  %s584_s16 = scalar_select %p583_p11, 1.0, 0.0 }
  0x25   : > { %v807_v20 = vunpack.c.l.b16 %v727_v10  ;;  %v816_v21 = vunpack.c.l.b16 %v736_v13  ;;  %v641_v22 = vsel %vm623_vm1, %v620_v9, %v610_v59  ;;  %v740_v23 = vpack.c.bf16 %v631_v18, %v631_v18  ;;  %v2740_v18 = vld [vmem:[%s3871_s5 + $0x70] sm:$0xff] }
  0x26   : > { %v811_v25 = vunpack.c.l.b16 %v731_v15  ;;  %v735_v26 = vpack.c.bf16 %v654_v17, %v654_v17  ;;  %v658_v27 = vmul.f32 %v3114_v8, %v641_v22  ;;  %v509_v28 = vmul.f32 %v3110_v5, %v2805_v39  ;;  %v2764_v17 = vld [vmem:[%s3871_s5 + $0x130] sm:$0xff] }
  0x27   : > { %1212 = vmatpush.bf16.msra.mxu0 %v2751_v1  ;;  %2910 = vmatpush.bf16.msra.mxu1 %v2751_v1  ;;  %v3221_v30 = vpack.c.b16 %v808_v11, %v807_v20  ;;  %v820_v31 = vunpack.c.l.b16 %v740_v23  ;;  %v527_v32 = vadd.f32 %v3125_v14, %v508_v60  ;;  %v2812_v33 = vunpack.c.l.bf16 %v2880_v19  ;;  %v2771_v23 = vld [vmem:[%s3871_s5 + $0x168] sm:$0xff] }
  0x28   : > { %2911 = vmatpush.bf16.msra.mxu2 %v2751_v1  ;;  %2912 = vmatpush.bf16.msra.mxu3 %v2751_v1  ;;  %v3224_v34 = vpack.c.b16 %v812_v16, %v811_v25  ;;  %v815_v35 = vunpack.c.l.b16 %v735_v26  ;;  %v739_v36 = vpack.c.bf16 %v658_v27, %v658_v27  ;;  %v528_v39 = vadd.f32 %v3125_v14, %v509_v28  ;;  %v2732_v1 = vld [vmem:[%s3871_s5 + $0x30] sm:$0xff] }
  0x29   : > { %v3233_v43 = vmax.f32 %v527_v32, 0.0  ;;  %v2813_v47 = vunpack.c.h.bf16 %v2880_v19  ;;  %v512_v48 = vmul.f32 %v3110_v5, %v2812_v33  ;;  %v2820_v49 = vunpack.c.l.bf16 %v2882_v29 }
  0x2a   : > { %v3238_v51 = vpack.c.b16 %v816_v21, %v815_v35  ;;  %v819_v53 = vunpack.c.l.b16 %v739_v36  ;;  %v3240_v54 = vmax.f32 %v528_v39, 0.0  ;;  %v2821_v55 = vunpack.c.h.bf16 %v2882_v29  ;;  %v2739_v39 = vld [vmem:[%s3871_s5 + $0x68] sm:$0xff] }
  0x2b   : > { %1213 = vmatpush.bf16.msra.mxu0 %v2750_v24  ;;  %2913 = vmatpush.bf16.msra.mxu1 %v2750_v24  ;;  %v605_v59 = vrot.slane %v3233_v43, 7  ;;  %v513_v60 = vmul.f32 %v3110_v5, %v2813_v47  ;;  %v531_v61 = vadd.f32 %v3125_v14, %v512_v48  ;;  %v516_v62 = vmul.f32 %v3110_v5, %v2820_v49 }
  0x2c   : > { %2914 = vmatpush.bf16.msra.mxu2 %v2750_v24  ;;  %2915 = vmatpush.bf16.msra.mxu3 %v2750_v24  ;;  %v3252_v63 = vpack.c.b16 %v820_v31, %v819_v53  ;;  %v615_v2 = vrot.slane %v3240_v54, 7  ;;  %v517_v4 = vmul.f32 %v3110_v5, %v2821_v55  ;;  %v2828_v6 = vunpack.c.l.bf16 %v2884_v50  ;;  %v2731_v24 = vld [vmem:[%s3871_s5 + $0x28] sm:$0xff]  ;;  %v2730_v53 = vld [vmem:[%s3871_s5 + $0x20] sm:$0xff] }
  0x2d   : > { %v532_v9 = vadd.f32 %v3125_v14, %v513_v60  ;;  %v3268_v10 = vmax.f32 %v531_v61, 0.0  ;;  %v535_v11 = vadd.f32 %v3125_v14, %v516_v62  ;;  %v2829_v12 = vunpack.c.h.bf16 %v2884_v50  ;;  %v2770_v50 = vld [vmem:[%s3871_s5 + $0x160] sm:$0xff] }
  0x2e   : > { %1214 = vmatmul.bf16.vlgmr.msra.gmra.mxu0 %v3221_v30  ;;  %1224 = vmatmul.bf16.vlgmr.msra.gmra.mxu1 %v3224_v34  ;;  %v626_v13 = vsel %vm623_vm1, %v605_v59, %v615_v2  ;;  %v636_v15 = vsel %vm623_vm1, %v615_v2, %v605_v59  ;;  %v536_v16 = vadd.f32 %v3125_v14, %v517_v4  ;;  %v590_v29 = vadd.s32 8, %v3086_v3 }
  0x2f   : > { %1234 = vmatmul.bf16.vlgmr.msra.gmra.mxu2 %v3238_v51  ;;  %1244 = vmatmul.bf16.vlgmr.msra.gmra.mxu3 %v3252_v63  ;;  %v648_v19 = vmul.f32 %v3114_v8, %v636_v15  ;;  %v730_v20 = vpack.c.bf16 %v626_v13, %v626_v13  ;;  %v3285_v21 = vmax.f32 %v532_v9, 0.0  ;;  %v607_v22 = vrot.slane %v3268_v10, 7 }
  0x30   : > { %1304 = vmatpush.bf16.msrb.mxu2 %v2773_v37  ;;  %1497 = vmatpush.bf16.msrb.mxu3 %v2733_v38  ;;  %v3295_v25 = vmax.f32 %v535_v11, 0.0  ;;  %v3297_v26 = vmax.f32 %v536_v16, 0.0  ;;  %v520_v27 = vmul.f32 %v3110_v5, %v2828_v6  ;;  %v521_v28 = vmul.f32 %v3110_v5, %v2829_v12  ;;  %v2763_v38 = vld [vmem:[%s3871_s5 + $0x128] sm:$0xff]  ;;  %v2762_v11 = vld [vmem:[%s3871_s5 + $0x120] sm:$0xff] }
  0x31   : > { %1255 = vmatpush.bf16.msrb.mxu1 %v2765_v57  ;;  %1546 = vmatpush.bf16.msrb.mxu0 %v2741_v58  ;;  %v729_v31 = vpack.c.bf16 %v648_v19, %v648_v19  ;;  %v617_v32 = vrot.slane %v3285_v21, 7  ;;  %v810_v47 = vunpack.c.l.b16 %v730_v20  ;;  %vm598_vm3 = vcmp.ne.s32.totalorder %v590_v29, 15  ;;  %v2738_v12 = vld [vmem:[%s3871_s5 + $0x60] sm:$0xff]  ;;  %v2769_v19 = vld [vmem:[%s3871_s5 + $0x158] sm:$0xff] }
  0x32   : > { %v609_v33 = vrot.slane %v3295_v25, 7  ;;  %v619_v35 = vrot.slane %v3297_v26, 7  ;;  %v539_v36 = vadd.f32 %v3125_v14, %v520_v27  ;;  %v540_v37 = vadd.f32 %v3125_v14, %v521_v28  ;;  %v2729_v20 = vld [vmem:[%s3871_s5 + $0x18] sm:$0xff] }
  0x33   : > { %v628_v48 = vsel %vm623_vm1, %v607_v22, %v617_v32  ;;  %v638_v49 = vsel %vm623_vm1, %v617_v32, %v607_v22  ;;  %v809_v60 = vunpack.c.l.b16 %v729_v31  ;;  %v665_v16 = vrot.slane %v3153_v40, 1 }
  0x34   : > { %1305 = vmatpush.bf16.msrb.mxu2 %v2772_v0  ;;  %1498 = vmatpush.bf16.msrb.mxu3 %v2732_v1  ;;  %v652_v55 = vmul.f32 %v3114_v8, %v638_v49  ;;  %v734_v57 = vpack.c.bf16 %v628_v48, %v628_v48  ;;  %v630_v58 = vsel %vm623_vm1, %v609_v33, %v619_v35  ;;  %v3330_v59 = vmax.f32 %v539_v36, 0.0  ;;  %v2831_v1 = vld [vmem:[%s427_s15] sm:$0xff]  }
  0x35   : > { %1256 = vmatpush.bf16.msrb.mxu1 %v2764_v17  ;;  %1547 = vmatpush.bf16.msrb.mxu0 %v2740_v18  ;;  %v640_v61 = vsel %vm623_vm1, %v619_v35, %v609_v33  ;;  %v738_v62 = vpack.c.bf16 %v630_v58, %v630_v58  ;;  %v3334_v0 = vmax.f32 %v540_v37, 0.0  ;;  %v675_v22 = vrot.slane %v3155_v41, 1 }
  0x36   : > { %v733_v2 = vpack.c.bf16 %v652_v55, %v652_v55  ;;  %v814_v4 = vunpack.c.l.b16 %v734_v57  ;;  %v656_v6 = vmul.f32 %v3114_v8, %v640_v61  ;;  %v611_v9 = vrot.slane %v3330_v59, 7 }
  0x37   : > { %v818_v13 = vunpack.c.l.b16 %v738_v62  ;;  %v621_v15 = vrot.slane %v3334_v0, 7  ;;  %v2833_v31 = vunpack.c.h.bf16 %v2831_v1  ;;  %v3369_v37 = vsel %vm598_vm3, 1.0, %v3001_v7  ;;  %v2760_v62 = vld [vmem:[%s3871_s5 + $0x110] sm:$0xff] }
  0x38   : > { %1306 = vmatpush.bf16.msrb.mxu2 %v2771_v23  ;;  %1499 = vmatpush.bf16.msrb.mxu3 %v2731_v24  ;;  %v813_v17 = vunpack.c.l.b16 %v733_v2  ;;  %v737_v18 = vpack.c.bf16 %v656_v6, %v656_v6  ;;  %v2832_v23 = vunpack.c.l.bf16 %v2831_v1  ;;  %v3354_v24 = vpack.c.b16 %v810_v47, %v809_v60  ;;  %v2736_v1 = vld [vmem:[%s3871_s5 + $0x50] sm:$0xff] }
  0x39   : > { %1257 = vmatpush.bf16.msrb.mxu1 %v2763_v38  ;;  %1548 = vmatpush.bf16.msrb.mxu0 %v2739_v39  ;;  %v632_v27 = vsel %vm623_vm1, %v611_v9, %v621_v15  ;;  %v642_v28 = vsel %vm623_vm1, %v621_v15, %v611_v9  ;;  %v2761_v38 = vld [vmem:[%s3871_s5 + $0x118] sm:$0xff]  ;;  %v696_v47 = vsel %vm684_vm2, %v675_v22, %v665_v16  ;;  %v569_v61 = vstv %s3365_s8  ;;  %v2767_v9 = vld [vmem:[%s3871_s5 + $0x148] sm:$0xff]  ;;  %s467_s8 = scalar_lea.vmem %s3873_s7, %s2334_s10 }
  0x3a   : > { %v3360_v32 = vpack.c.b16 %v814_v4, %v813_v17  ;;  %v817_v33 = vunpack.c.l.b16 %v737_v18  ;;  %v660_v35 = vmul.f32 %v3114_v8, %v642_v28  ;;  %v742_v36 = vpack.c.bf16 %v632_v27, %v632_v27  ;;  %v2737_v39 = vld [vmem:[%s3871_s5 + $0x58] sm:$0xff]  ;;  %v2759_v18 = vld [vmem:[%s3871_s5 + $0x108] sm:$0xff]  ;;  %v2726_v27 = vld [vmem:[%s3871_s5] sm:$0xff] }
  0x3b   : > { %v561_v48 = vmul.f32 %v3110_v5, %v2832_v23  ;;  %v562_v55 = vmul.f32 %v3110_v5, %v2833_v31  ;;  %v708_v60 = vmul.f32 %v3369_v37, %v696_v47  ;;  %v686_v5 = vsel %vm684_vm2, %v665_v16, %v675_v22  ;;  %v2766_v23 = vld [vmem:[%s3871_s5 + $0x140] sm:$0xff]  ;;  %v2789_v47 = vld [vmem:[%s3871_s5 + $0x1f8] sm:$0xff] }
  0x3c   : > { %1307 = vmatpush.bf16.msrb.mxu2 %v2770_v50  ;;  %1500 = vmatpush.bf16.msrb.mxu3 %v2730_v53  ;;  %v3380_v49 = vpack.c.b16 %v818_v13, %v817_v33  ;;  %v741_v7 = vpack.c.bf16 %v660_v35, %v660_v35  ;;  %v822_v29 = vunpack.c.l.b16 %v742_v36  ;;  %v2768_v50 = vld [vmem:[%s3871_s5 + $0x150] sm:$0xff]  ;;  %v748_v13 = vpack.c.bf16 %v3155_v41, %v3155_v41 }
  0x3d   : > { %1258 = vmatpush.bf16.msrb.mxu1 %v2762_v11  ;;  %1549 = vmatpush.bf16.msrb.mxu0 %v2738_v12  ;;  %v2728_v53 = vld [vmem:[%s3871_s5 + $0x10] sm:$0xff]  ;;  %v563_v57 = vadd.f32 %v3125_v14, %v561_v48  ;;  %v564_v2 = vadd.f32 %v3125_v14, %v562_v55  ;;  %v2727_v11 = vld [vmem:[%s3871_s5 + $0x8] sm:$0xff]  ;;  %v747_v12 = vpack.c.bf16 %v3153_v40, %v3153_v40  ;;  %v666_v33 = vrot.slane %v3233_v43, 1 }
  0x3e   : > { %1219 = vmatmul.bf16.gmra.mxu0 %v3354_v24  ;;  %1229 = vmatmul.bf16.gmra.mxu1 %v3360_v32  ;;  %v821_v58 = vunpack.c.l.b16 %v741_v7  ;;  %v767_v16 = vpack.c.bf16 %v686_v5, %v686_v5  ;;  %v768_v17 = vpack.c.bf16 %v708_v60, %v708_v60  ;;  %v2735_v40 = vld [vmem:[%s3871_s5 + $0x48] sm:$0xff]  ;;  %v751_v22 = vpack.c.bf16 %v3157_v42, %v3157_v42 }
  0x3f   : > { %1239 = vmatmul.bf16.gmra.mxu2 %v3380_v49  ;;  %v565_v4 = vmax.f32 %v563_v57, 0.0  ;;  %v566_v14 = vmax.f32 %v564_v2, 0.0  ;;  %v867_v28 = vunpack.c.l.b16 %v747_v12  ;;  %v868_v31 = vunpack.c.l.b16 %v748_v13  ;;  %v2758_v57 = vld [vmem:[%s3871_s5 + $0x100] sm:$0xff]  ;;  %v2780_v13 = vld [vmem:[%s3871_s5 + $0x1b0] sm:$0xff] }
  0x40   : > { %1308 = vmatpush.bf16.msrb.mxu2 %v2769_v19  ;;  %1501 = vmatpush.bf16.msrb.mxu3 %v2729_v20  ;;  %v3404_v6 = vpack.c.b16 %v822_v29, %v821_v58  ;;  %v752_v35 = vpack.c.bf16 %v3160_v44, %v3160_v44  ;;  %v676_v48 = vrot.slane %v3240_v54, 1  ;;  %v871_v7 = vunpack.c.l.b16 %v751_v22  ;;  %v2734_v58 = vld [vmem:[%s3871_s5 + $0x40] sm:$0xff] }
  0x41   : > { %1259 = vmatpush.bf16.msrb.mxu1 %v2761_v38  ;;  %1550 = vmatpush.bf16.msrb.mxu0 %v2737_v39  ;;  %v3416_v15 = vmul.f32 %v569_v61, %v565_v4  ;;  %v3425_v19 = vmul.f32 %v569_v61, %v566_v14  ;;  %v2781_v39 = vld [vmem:[%s3871_s5 + $0x1b8] sm:$0xff]  ;;  %v927_v29 = vunpack.c.l.b16 %v767_v16  ;;  %v3470_v12 = vpack.c.b16 %v868_v31, %v867_v28  ;;  %v2788_v14 = vld [vmem:[%s3871_s5 + $0x1f0] sm:$0xff] }
  0x42   : > { %1249 = vmatmul.bf16.gmra.mxu3 %v3404_v6  ;;  %v872_v55 = vunpack.c.l.b16 %v752_v35  ;;  %v2749_v4 = vld [vmem:[%s3871_s5 + $0xb8] sm:$0xff]  ;;  %v2796_v28 = vld [vmem:[%s3871_s5 + $0x230] sm:$0xff] }
  0x43   : > { %v603_v41 = vrot.slane %v3416_v15, 7  ;;  %v745_v20 = vpack.c.bf16 %v3416_v15, %v3416_v15  ;;  %v613_v36 = vrot.slane %v3425_v19, 7  ;;  %v746_v38 = vpack.c.bf16 %v3425_v19, %v3425_v19 }
  0x44   : > { %1309 = vmatpush.bf16.msrb.mxu2 %v2768_v50  ;;  %1502 = vmatpush.bf16.msrb.mxu3 %v2728_v53  ;;  %v928_v50 = vunpack.c.l.b16 %v768_v17  ;;  %v3480_v16 = vpack.c.b16 %v872_v55, %v871_v7 }
  0x45   : > { %1260 = vmatpush.bf16.msrb.mxu1 %v2760_v62  ;;  %1551 = vmatpush.bf16.msrb.mxu0 %v2736_v1  ;;  %v865_v53 = vunpack.c.l.b16 %v745_v20  ;;  %v624_v60 = vsel %vm623_vm1, %v603_v41, %v613_v36  ;;  %v634_v61 = vsel %vm623_vm1, %v613_v36, %v603_v41  ;;  %v866_v62 = vunpack.c.l.b16 %v746_v38 }
  0x46   : > { %v667_v1 = vrot.slane %v3157_v42, 1  ;;  %v644_v5 = vmul.f32 %v3114_v8, %v634_v61  ;;  %v726_v2 = vpack.c.bf16 %v624_v60, %v624_v60  ;;  %v697_v42 = vsel %vm684_vm2, %v676_v48, %v666_v33  ;;  %v2795_v60 = vld [vmem:[%s3871_s5 + $0x228] sm:$0xff] }
  0x47   : > { %v3482_v17 = vpack.c.b16 %v928_v50, %v927_v29  ;;  %v885_v41 = vpack.c.b16 %v866_v62, %v865_v53  ;;  %v710_v38 = vmul.f32 %v3369_v37, %v697_v42  ;;  %v749_v29 = vpack.c.bf16 %v3233_v43, %v3233_v43  ;;  %v2747_v43 = vld [vmem:[%s3871_s5 + $0xa8] sm:$0xff] }
  0x48   : > { %1310 = vmatpush.bf16.msrb.mxu2 %v2767_v9  ;;  %1503 = vmatpush.bf16.msrb.mxu3 %v2727_v11  ;;  %v2797_v9 = vld [vmem:[%s3871_s5 + $0x238] sm:$0xff]  ;;  %v677_v11 = vrot.slane %v3160_v44, 1  ;;  %v725_v44 = vpack.c.bf16 %v644_v5, %v644_v5  ;;  %v750_v50 = vpack.c.bf16 %v3240_v54, %v3240_v54  ;;  %v753_v54 = vpack.c.bf16 %v3268_v10, %v3268_v10 }
  0x49   : > { %1261 = vmatpush.bf16.msrb.mxu1 %v2759_v18  ;;  %1552 = vmatpush.bf16.msrb.mxu0 %v2735_v40  ;;  %v806_v18 = vunpack.c.l.b16 %v726_v2  ;;  %v678_v42 = vrot.slane %v3285_v21, 1 }
  0x4a   : > { %v698_v40 = vsel %vm684_vm2, %v677_v11, %v667_v1  ;;  %v688_v20 = vsel %vm684_vm2, %v667_v1, %v677_v11  ;;  %v873_v61 = vunpack.c.l.b16 %v753_v54  ;;  %v869_v1 = vunpack.c.l.b16 %v749_v29  ;;  %v2744_v54 = vld [vmem:[%s3871_s5 + $0x90] sm:$0xff] }
  0x4b   : > { %v712_v22 = vmul.f32 %v3369_v37, %v698_v40  ;;  %v771_v31 = vpack.c.bf16 %v688_v20, %v688_v20  ;;  %v870_v5 = vunpack.c.l.b16 %v750_v50  ;;  %v668_v11 = vrot.slane %v3268_v10, 1 }
  0x4c   : > { %1311 = vmatpush.bf16.msrb.mxu2 %v2766_v23  ;;  %1504 = vmatpush.bf16.msrb.mxu3 %v2726_v27  ;;  %v805_v23 = vunpack.c.l.b16 %v725_v44  ;;  %v2748_v27 = vld [vmem:[%s3871_s5 + $0xb0] sm:$0xff]  ;;  %v755_v50 = vpack.c.bf16 %v3162_v45, %v3162_v45 }
  0x4d   : > { %1262 = vmatpush.bf16.msrb.mxu1 %v2758_v57  ;;  %1553 = vmatpush.bf16.msrb.mxu0 %v2734_v58  ;;  %v772_v35 = vpack.c.bf16 %v712_v22, %v712_v22  ;;  %v770_v57 = vpack.c.bf16 %v710_v38, %v710_v38  ;;  %v2779_v58 = vld [vmem:[%s3871_s5 + $0x1a8] sm:$0xff]  ;;  %v689_v40 = vsel %vm684_vm2, %v668_v11, %v678_v42  ;;  %v669_v38 = vrot.slane %v3162_v45, 1  ;;  %v2792_v45 = vld [vmem:[%s3871_s5 + $0x210] sm:$0xff] }
  0x4e   : > { %v825_v36 = vpack.c.b16 %v806_v18, %v805_v23  ;;  %v2778_v23 = vld [vmem:[%s3871_s5 + $0x1a0] sm:$0xff] }
  0x4f   : > { %1312 = vmatmul.bf16.vlgmr.msrb.gmra.mxu2 %v3482_v17  ;;  %v932_v7 = vunpack.c.l.b16 %v772_v35  ;;  %v2745_v35 = vld [vmem:[%s3871_s5 + $0x98] sm:$0xff] }
  0x50   : > { %1837 = vmatpush.bf16.msra.mxu2 %v2781_v39  ;;  %1886 = vmatpush.bf16.msra.mxu3 %v2789_v47  ;;  %v931_v39 = vunpack.c.l.b16 %v771_v31  ;;  %v687_v47 = vsel %vm684_vm2, %v666_v33, %v676_v48  ;;  %v2787_v33 = vld [vmem:[%s3871_s5 + $0x1e8] sm:$0xff]  ;;  %v754_v48 = vpack.c.bf16 %v3285_v21, %v3285_v21  ;;  %v2785_v31 = vld [vmem:[%s3871_s5 + $0x1d8] sm:$0xff] }
  0x51   : > { %1595 = vmatpush.bf16.msra.mxu1 %v2749_v4  ;;  %1935 = vmatpush.bf16.msra.mxu0 %v2797_v9  ;;  %v769_v55 = vpack.c.bf16 %v687_v47, %v687_v47  ;;  %v930_v4 = vunpack.c.l.b16 %v770_v57 }
  0x52   : > { %1263 = vmatmul.bf16.vlgmr.msrb.gmra.mxu1 %v3470_v12  ;;  %1554 = vmatmul.bf16.vlgmr.msrb.gmra.mxu0 %v885_v41  ;;  %v3504_v53 = vpack.c.b16 %v932_v7, %v931_v39  ;;  %v874_v62 = vunpack.c.l.b16 %v754_v48  ;;  %v773_v41 = vpack.c.bf16 %v689_v40, %v689_v40  ;;  %v679_v39 = vrot.slane %v3164_v46, 1 }
  0x53   : > { %1505 = vmatmul.bf16.vlgmr.msrb.gmra.mxu3 %v825_v36  ;;  %v929_v2 = vunpack.c.l.b16 %v769_v55  ;;  %v2793_v36 = vld [vmem:[%s3871_s5 + $0x218] sm:$0xff]  ;;  %v756_v55 = vpack.c.bf16 %v3164_v46, %v3164_v46  ;;  %v875_v46 = vunpack.c.l.b16 %v755_v50 }
  0x54   : > { %1838 = vmatpush.bf16.msra.mxu2 %v2780_v13  ;;  %1887 = vmatpush.bf16.msra.mxu3 %v2788_v14  ;;  %v3522_v9 = vpack.c.b16 %v874_v62, %v873_v61  ;;  %v699_v13 = vsel %vm684_vm2, %v678_v42, %v668_v11  ;;  %v3528_v14 = vpack.c.b16 %v870_v5, %v869_v1  ;;  %v933_v10 = vunpack.c.l.b16 %v773_v41 }
  0x55   : > { %1596 = vmatpush.bf16.msra.mxu1 %v2748_v27  ;;  %1936 = vmatpush.bf16.msra.mxu0 %v2796_v28  ;;  %v3530_v44 = vpack.c.b16 %v930_v4, %v929_v2  ;;  %v714_v18 = vmul.f32 %v3369_v37, %v699_v13  ;;  %v2786_v27 = vld [vmem:[%s3871_s5 + $0x1e0] sm:$0xff]  ;;  %v700_v47 = vsel %vm684_vm2, %v679_v39, %v669_v38  ;;  %v876_v48 = vunpack.c.l.b16 %v756_v55 }
  0x56   : > { %v2746_v28 = vld [vmem:[%s3871_s5 + $0xa0] sm:$0xff]  ;;  %v716_v7 = vmul.f32 %v3369_v37, %v700_v47  ;;  %v690_v29 = vsel %vm684_vm2, %v669_v38, %v679_v39  ;;  %v670_v62 = vrot.slane %v3295_v25, 1  ;;  %v680_v1 = vrot.slane %v3297_v26, 1 }
  0x57   : > { %v774_v20 = vpack.c.bf16 %v714_v18, %v714_v18  ;;  %v775_v57 = vpack.c.bf16 %v690_v29, %v690_v29  ;;  %v3598_v5 = vpack.c.b16 %v876_v48, %v875_v46  ;;  %v757_v13 = vpack.c.bf16 %v3295_v25, %v3295_v25  ;;  %v2791_v25 = vld [vmem:[%s3871_s5 + $0x208] sm:$0xff]  ;;  %v2774_v55 = vld [vmem:[%s3871_s5 + $0x180] sm:$0xff] }
  0x58   : > { %1839 = vmatpush.bf16.msra.mxu2 %v2779_v58  ;;  %1888 = vmatpush.bf16.msra.mxu3 %v2787_v33  ;;  %v776_v58 = vpack.c.bf16 %v716_v7, %v716_v7  ;;  %v2776_v33 = vld [vmem:[%s3871_s5 + $0x190] sm:$0xff]  ;;  %v701_v4 = vsel %vm684_vm2, %v680_v1, %v670_v62  ;;  %v691_v42 = vsel %vm684_vm2, %v670_v62, %v680_v1  ;;  %v682_v46 = vrot.slane %v3334_v0, 1 }
  0x59   : > { %1597 = vmatpush.bf16.msra.mxu1 %v2747_v43  ;;  %1937 = vmatpush.bf16.msra.mxu0 %v2795_v60  ;;  %v934_v21 = vunpack.c.l.b16 %v774_v20  ;;  %v2784_v43 = vld [vmem:[%s3871_s5 + $0x1d0] sm:$0xff]  ;;  %v935_v60 = vunpack.c.l.b16 %v775_v57  ;;  %v718_v11 = vmul.f32 %v3369_v37, %v701_v4  ;;  %v758_v18 = vpack.c.bf16 %v3297_v26, %v3297_v26  ;;  %v2775_v20 = vld [vmem:[%s3871_s5 + $0x188] sm:$0xff]  ;;  %v2782_v57 = vld [vmem:[%s3871_s5 + $0x1c0] sm:$0xff] }
  0x5a   : > { %v936_v61 = vunpack.c.l.b16 %v776_v58  ;;  %v777_v40 = vpack.c.bf16 %v691_v42, %v691_v42  ;;  %v877_v26 = vunpack.c.l.b16 %v757_v13  ;;  %v759_v47 = vpack.c.bf16 %v3174_v52, %v3174_v52  ;;  %v2742_v58 = vld [vmem:[%s3871_s5 + $0x80] sm:$0xff] }
  0x5b   : > { %v3538_v22 = vpack.c.b16 %v934_v21, %v933_v10  ;;  %v778_v41 = vpack.c.bf16 %v718_v11, %v718_v11  ;;  %v2783_v10 = vld [vmem:[%s3871_s5 + $0x1c8] sm:$0xff]  ;;  %v760_v7 = vpack.c.bf16 %v3179_v56, %v3179_v56 }
  0x5c   : > { %1840 = vmatpush.bf16.msra.mxu2 %v2778_v23  ;;  %1889 = vmatpush.bf16.msra.mxu3 %v2786_v27  ;;  %v3600_v2 = vpack.c.b16 %v936_v61, %v935_v60  ;;  %v2743_v21 = vld [vmem:[%s3871_s5 + $0x88] sm:$0xff]  ;;  %v878_v23 = vunpack.c.l.b16 %v758_v18  ;;  %v937_v27 = vunpack.c.l.b16 %v777_v40 }
  0x5d   : > { %1598 = vmatpush.bf16.msra.mxu1 %v2746_v28  ;;  %v938_v28 = vunpack.c.l.b16 %v778_v41  ;;  %v761_v41 = vpack.c.bf16 %v3330_v59, %v3330_v59 }
  0x5f   : > { %1317 = vmatmul.bf16.gmra.mxu2 %v3530_v44 }
  0x60   : > { %1890 = vmatpush.bf16.msra.mxu3 %v2785_v31  ;;  %v3629_v31 = vpack.c.b16 %v878_v23, %v877_v26 }
  0x61   : > { %1599 = vmatpush.bf16.msra.mxu1 %v2745_v35  ;;  %v3631_v35 = vpack.c.b16 %v938_v28, %v937_v27  ;;  %v664_v28 = vrot.slane %v3416_v15, 1 }
  0x62   : > { %1268 = vmatmul.bf16.gmra.mxu1 %v3528_v14  ;;  %1559 = vmatmul.bf16.gmra.mxu0 %v3470_v12  ;;  %v2794_v12 = vld [vmem:[%s3871_s5 + $0x220] sm:$0xff] }
  0x63   : > { %1510 = vmatmul.bf16.gmra.mxu3 %v3221_v30  ;;  %1938 = vmatpush.bf16.msra.mxu0 %v2794_v12  ;;  %v2777_v30 = vld [vmem:[%s3871_s5 + $0x198] sm:$0xff]  ;;  %v671_v12 = vrot.slane %v3174_v52, 1  ;;  %v2790_v52 = vld [vmem:[%s3871_s5 + $0x200] sm:$0xff] }
  0x64   : > { %1841 = vmatpush.bf16.msra.mxu2 %v2777_v30  ;;  %1891 = vmatpush.bf16.msra.mxu3 %v2784_v43  ;;  %v681_v30 = vrot.slane %v3179_v56, 1  ;;  %v879_v56 = vunpack.c.l.b16 %v759_v47 }
  0x65   : > { %1600 = vmatpush.bf16.msra.mxu1 %v2744_v54 }
  0x66   : > { %v692_v39 = vsel %vm684_vm2, %v671_v12, %v681_v30 }
  0x67   : > { %1939 = vmatpush.bf16.msra.mxu0 %v2793_v36  ;;  %v702_v36 = vsel %vm684_vm2, %v681_v30, %v671_v12  ;;  %v779_v29 = vpack.c.bf16 %v692_v39, %v692_v39  ;;  %v674_v12 = vrot.slane %v3425_v19, 1 }
  0x68   : > { %1842 = vmatpush.bf16.msra.mxu2 %v2776_v33  ;;  %1892 = vmatpush.bf16.msra.mxu3 %v2783_v10  ;;  %v720_v38 = vmul.f32 %v3369_v37, %v702_v36  ;;  %v880_v33 = vunpack.c.l.b16 %v760_v7 }
  0x69   : > { %1601 = vmatpush.bf16.msra.mxu1 %v2743_v21  ;;  %v939_v43 = vunpack.c.l.b16 %v779_v29  ;;  %v695_v47 = vsel %vm684_vm2, %v674_v12, %v664_v28  ;;  %v685_v19 = vsel %vm684_vm2, %v664_v28, %v674_v12 }
  0x6a   : > { %v780_v50 = vpack.c.bf16 %v720_v38, %v720_v38  ;;  %v3662_v61 = vpack.c.b16 %v880_v33, %v879_v56  ;;  %v706_v15 = vmul.f32 %v3369_v37, %v695_v47 }
  0x6b   : > { %1940 = vmatpush.bf16.msra.mxu0 %v2792_v45  ;;  %v672_v45 = vrot.slane %v3330_v59, 1 }
  0x6c   : > { %1843 = vmatpush.bf16.msra.mxu2 %v2775_v20  ;;  %1893 = vmatpush.bf16.msra.mxu3 %v2782_v57  ;;  %v940_v54 = vunpack.c.l.b16 %v780_v50  ;;  %v762_v20 = vpack.c.bf16 %v3334_v0, %v3334_v0  ;;  %v766_v57 = vpack.c.bf16 %v706_v15, %v706_v15 }
  0x6d   : > { %1602 = vmatpush.bf16.msra.mxu1 %v2742_v58  ;;  %v703_v1 = vsel %vm684_vm2, %v682_v46, %v672_v45  ;;  %v693_v11 = vsel %vm684_vm2, %v672_v45, %v682_v46 }
  0x6e   : > { %v3664_v62 = vpack.c.b16 %v940_v54, %v939_v43  ;;  %v722_v4 = vmul.f32 %v3369_v37, %v703_v1  ;;  %v781_v10 = vpack.c.bf16 %v693_v11, %v693_v11  ;;  %v882_v26 = vunpack.c.l.b16 %v762_v20 }
  0x6f   : > { %1322 = vmatmul.bf16.gmra.mxu2 %v3504_v53  ;;  %1941 = vmatpush.bf16.msra.mxu0 %v2791_v25  ;;  %v881_v25 = vunpack.c.l.b16 %v761_v41  ;;  %v926_v56 = vunpack.c.l.b16 %v766_v57 }
  0x70   : > { %1844 = vmatpush.bf16.msra.mxu2 %v2774_v55  ;;  %v782_v21 = vpack.c.bf16 %v722_v4, %v722_v4  ;;  %v941_v23 = vunpack.c.l.b16 %v781_v10  ;;  %v765_v55 = vpack.c.bf16 %v685_v19, %v685_v19 }
  0x71   : > { %v3691_v39 = vpack.c.b16 %v882_v26, %v881_v25 }
  0x72   : > { %1273 = vmatmul.bf16.gmra.mxu1 %v3480_v16  ;;  %1564 = vmatmul.bf16.gmra.mxu0 %v3528_v14  ;;  %v942_v27 = vunpack.c.l.b16 %v782_v21 }
  0x73   : > { %1515 = vmatmul.bf16.gmra.mxu3 %v3354_v24  ;;  %1942 = vmatpush.bf16.msra.mxu0 %v2790_v52  ;;  %v925_v52 = vunpack.c.l.b16 %v765_v55 }
  0x74   : > { %v3693_v59 = vpack.c.b16 %v942_v27, %v941_v23 }
  0x75   : > { %v945_v43 = vpack.c.b16 %v926_v56, %v925_v52 }
  0x7f   : > { %1327 = vmatmul.bf16.gmra.mxu2 %v3538_v22 }
  0x82   : > { %1278 = vmatmul.bf16.gmra.mxu1 %v3522_v9  ;;  %1569 = vmatmul.bf16.gmra.mxu0 %v3480_v16 }
  0x83   : > { %1520 = vmatmul.bf16.gmra.mxu3 %v3224_v34 }
  0x8f   : > { %1332 = vmatmul.bf16.gmra.mxu2 %v3600_v2 }
  0x92   : > { %1283 = vmatmul.bf16.gmra.mxu1 %v3598_v5  ;;  %1574 = vmatmul.bf16.gmra.mxu0 %v3522_v9 }
  0x93   : > { %1525 = vmatmul.bf16.gmra.mxu3 %v3360_v32 }
  0x9f   : > { %1337 = vmatmul.bf16.gmra.mxu2 %v3631_v35 }
  0xa2   : > { %1288 = vmatmul.bf16.gmra.mxu1 %v3629_v31  ;;  %1579 = vmatmul.bf16.gmra.mxu0 %v3598_v5 }
  0xa3   : > { %1530 = vmatmul.bf16.gmra.mxu3 %v3238_v51 }
  0xab   : > { %v1215_v48 = vpop.f32.mrf.mxu0  ;;  %v3660_v60 = vpop.f32.mrf.mxu1 }
  0xaf   : > { %1342 = vmatmul.bf16.gmra.mxu2 %v3664_v62 }
  0xb2   : > { %1293 = vmatmul.bf16.gmra.mxu1 %v3662_v61  ;;  %1584 = vmatmul.bf16.gmra.mxu0 %v3629_v31  ;;  %v3674_v42 = vpop.f32.mrf.mxu2  ;;  %v3676_v13 = vpop.f32.mrf.mxu3 }
  0xb3   : > { %1535 = vmatmul.bf16.gmra.mxu3 %v3380_v49  ;;  %v1217_v18 = vpop.f32.mrf.mxu0  ;;  %v3679_v40 = vpop.f32.mrf.mxu1 }
  0xba   : > { %v3687_v30 = vpop.f32.mrf.mxu2  ;;  %v3695_v0 = vpop.f32.mrf.mxu3 }
  0xbb   : > { %v1220_v36 = vpop.f32.mrf.mxu0  ;;  %v3689_v38 = vpop.f32.mrf.mxu1 }
  0xbf   : > { %1347 = vmatmul.bf16.gmra.mxu2 %v3693_v59 }
  0xc2   : > { %1298 = vmatmul.bf16.gmra.mxu1 %v3691_v39  ;;  %1589 = vmatmul.bf16.gmra.mxu0 %v3662_v61  ;;  %v3705_v7 = vpop.f32.mrf.mxu2 }
  0xc3   : > { %1540 = vmatmul.bf16.gmra.mxu3 %v3252_v63  ;;  %v1222_v29 = vpop.f32.mrf.mxu0  ;;  %v3708_v50 = vpop.f32.mrf.mxu1 }
  0xc5   : > { %v3710_v58 = vpop.f32.mrf.mxu3 }
  0xca   : > { %v3712_v33 = vpop.f32.mrf.mxu2 }
  0xcd   : > { %v3714_v1 = vpop.f32.mrf.mxu3 }
  0xcf   : > { %v1264_v54 = vpop.f32.mrf.mxu1  ;;  %v1555_v46 = vpop.f32.mrf.mxu0  ;;  %1845 = vmatmul.bf16.vlgmr.msra.gmra.mxu2 %v3354_v24 }
  0xd0   : > { %v1265_v45 = vadd.f32 %v1264_v54, %v1215_v48 }
  0xd2   : > { %1603 = vmatmul.bf16.vlgmr.msra.gmra.mxu1 %v945_v43  ;;  %1943 = vmatmul.bf16.vlgmr.msra.gmra.mxu0 %v3530_v44  ;;  %v1313_v4 = vpop.f32.mrf.mxu2 }
  0xd3   : > { %1894 = vmatmul.bf16.vlgmr.msra.gmra.mxu3 %v3528_v14  ;;  %v1314_v11 = vadd.f32 %v1313_v4, %v1265_v45 }
  0xd6   : > { %v1506_v21 = vpop.f32.mrf.mxu3 }
  0xd7   : > { %v1266_v41 = vpop.f32.mrf.mxu1  ;;  %v1557_v10 = vpop.f32.mrf.mxu0  ;;  %v1507_v25 = vadd.f32 %v1506_v21, %v1314_v11 }
  0xd8   : > { %v1267_v20 = vadd.f32 %v1266_v41, %v1217_v18 }
  0xd9   : > { %v3719_v26 = vadd.f32 %v1555_v46, %v1507_v25 }
  0xda   : > { %v1315_v48 = vpop.f32.mrf.mxu2 }
  0xdb   : > { %v1316_v23 = vadd.f32 %v1315_v48, %v1267_v20 }
  0xde   : > { %v1508_v47 = vpop.f32.mrf.mxu3 }
  0xdf   : > { %v1269_v27 = vpop.f32.mrf.mxu1  ;;  %v1560_v12 = vpop.f32.mrf.mxu0  ;;  %v1509_v24 = vadd.f32 %v1508_v47, %v1316_v23  ;;  %1850 = vmatmul.bf16.gmra.mxu2 %v3224_v34 }
  0xe0   : > { %v1270_v28 = vadd.f32 %v1269_v27, %v1220_v36 }
  0xe1   : > { %v3724_v14 = vadd.f32 %v1557_v10, %v1509_v24 }
  0xe2   : > { %1608 = vmatmul.bf16.gmra.mxu1 %v3482_v17  ;;  %1948 = vmatmul.bf16.gmra.mxu0 %v3504_v53  ;;  %v1318_v18 = vpop.f32.mrf.mxu2 }
  0xe3   : > { %1899 = vmatmul.bf16.gmra.mxu3 %v3480_v16  ;;  %v1319_v15 = vadd.f32 %v1318_v18, %v1270_v28 }
  0xe6   : > { %v1511_v52 = vpop.f32.mrf.mxu3 }
  0xe7   : > { %v1271_v19 = vpop.f32.mrf.mxu1  ;;  %v1562_v57 = vpop.f32.mrf.mxu0  ;;  %v1512_v36 = vadd.f32 %v1511_v52, %v1319_v15 }
  0xe8   : > { %v1272_v55 = vadd.f32 %v1271_v19, %v1222_v29 }
  0xe9   : > { %v3727_v56 = vadd.f32 %v1560_v12, %v1512_v36 }
  0xea   : > { %v1320_v43 = vpop.f32.mrf.mxu2 }
  0xeb   : > { %v1321_v54 = vadd.f32 %v1320_v43, %v1272_v55  ;;  %v2835_v43 = vld [vmem:[%s444_s22] sm:$0xff]  }
  0xee   : > { %v1513_v46 = vpop.f32.mrf.mxu3 }
  0xef   : > { %v1274_v17 = vpop.f32.mrf.mxu1  ;;  %v1565_v45 = vpop.f32.mrf.mxu0  ;;  %v1514_v4 = vadd.f32 %v1513_v46, %v1321_v54  ;;  %1855 = vmatmul.bf16.gmra.mxu2 %v3360_v32  ;;  %v2836_v46 = vunpack.c.l.bf16 %v2835_v43 }
  0xf0   : > { %v1275_v34 = vadd.f32 %v1274_v17, %v3660_v60 }
  0xf1   : > { %v3733_v16 = vadd.f32 %v1562_v57, %v1514_v4  ;;  %v2837_v4 = vunpack.c.h.bf16 %v2835_v43 }
  0xf2   : > { %1613 = vmatmul.bf16.gmra.mxu1 %v3530_v44  ;;  %1953 = vmatmul.bf16.gmra.mxu0 %v3538_v22  ;;  %v1323_v29 = vpop.f32.mrf.mxu2 }
  0xf3   : > { %1904 = vmatmul.bf16.gmra.mxu3 %v3522_v9  ;;  %v1324_v11 = vadd.f32 %v1323_v29, %v1275_v34 }
  0xf6   : > { %v1516_v60 = vpop.f32.mrf.mxu3 }
  0xf7   : > { %v1276_v41 = vpop.f32.mrf.mxu1  ;;  %v1567_v10 = vpop.f32.mrf.mxu0  ;;  %v1517_v44 = vadd.f32 %v1516_v60, %v1324_v11 }
  0xf8   : > { %v1277_v20 = vadd.f32 %v1276_v41, %v3679_v40 }
  0xf9   : > { %v3741_v32 = vadd.f32 %v1565_v45, %v1517_v44 }
  0xfa   : > { %v1325_v21 = vpop.f32.mrf.mxu2 }
  0xfb   : > { %v1326_v25 = vadd.f32 %v1325_v21, %v1277_v20  ;;  %v2960_v21 = vld [vmem:[%s3867_s1] ss:$0 sm:$0xff] }
  0xfe   : > { %v1518_v27 = vpop.f32.mrf.mxu3 }
  0xff   : > { %v1279_v48 = vpop.f32.mrf.mxu1  ;;  %v1570_v9 = vpop.f32.mrf.mxu0  ;;  %v1519_v40 = vadd.f32 %v1518_v27, %v1326_v25  ;;  %1860 = vmatmul.bf16.gmra.mxu2 %v3238_v51 }
 0x100   : > { %v1280_v23 = vadd.f32 %v1279_v48, %v3689_v38 }
 0x101   : > { %v3748_v28 = vadd.f32 %v1567_v10, %v1519_v40 }
 0x102   : > { %1618 = vmatmul.bf16.gmra.mxu1 %v3504_v53  ;;  %1958 = vmatmul.bf16.gmra.mxu0 %v3600_v2  ;;  %v1328_v12 = vpop.f32.mrf.mxu2 }
 0x103   : > { %1909 = vmatmul.bf16.gmra.mxu3 %v3598_v5  ;;  %v1329_v47 = vadd.f32 %v1328_v12, %v1280_v23 }
 0x106   : > { %v1521_v15 = vpop.f32.mrf.mxu3 }
 0x107   : > { %v1281_v24 = vpop.f32.mrf.mxu1  ;;  %v1572_v18 = vpop.f32.mrf.mxu0  ;;  %v1522_v19 = vadd.f32 %v1521_v15, %v1329_v47  ;;  %v585_v47 = vstv %s584_s16 }
 0x108   : > { %v1282_v38 = vadd.f32 %v1281_v24, %v3708_v50 }
 0x109   : > { %v3753_v53 = vadd.f32 %v1570_v9, %v1522_v19 }
 0x10a   : > { %v1330_v51 = vpop.f32.mrf.mxu2 }
 0x10b   : > { %v1331_v55 = vadd.f32 %v1330_v51, %v1282_v38 }
 0x10e   : > { %v1523_v36 = vpop.f32.mrf.mxu3 }
 0x10f   : > { %v1284_v57 = vpop.f32.mrf.mxu1  ;;  %v1575_v52 = vpop.f32.mrf.mxu0  ;;  %v1524_v5 = vadd.f32 %v1523_v36, %v1331_v55  ;;  %1865 = vmatmul.bf16.gmra.mxu2 %v3380_v49  ;;  %v2959_v49 = vld [vmem:[%s3866_s0] ss:$0 sm:$0xff] }
 0x110   : > { %v1285_v50 = vadd.f32 %v1284_v57, %v3674_v42  ;;  %v576_v41 = vmul.f32 %v2959_v49, %v2836_v46  ;;  %v577_v42 = vmul.f32 %v2959_v49, %v2837_v4 }
 0x111   : > { %v3762_v54 = vadd.f32 %v1572_v18, %v1524_v5 }
 0x112   : > { %1623 = vmatmul.bf16.gmra.mxu1 %v3538_v22  ;;  %1963 = vmatmul.bf16.gmra.mxu0 %v3631_v35  ;;  %v1333_v17 = vpop.f32.mrf.mxu2  ;;  %v578_v25 = vadd.f32 %v2960_v21, %v576_v41  ;;  %v579_v48 = vadd.f32 %v2960_v21, %v577_v42 }
 0x113   : > { %1914 = vmatmul.bf16.gmra.mxu3 %v3629_v31  ;;  %v1334_v34 = vadd.f32 %v1333_v17, %v1285_v50 }
 0x114   : > { %v581_v40 = vmax.f32 %v579_v48, 0.0 }
 0x116   : > { %v1526_v11 = vpop.f32.mrf.mxu3  ;;  %v587_v51 = vmul.f32 %v585_v47, %v581_v40 }
 0x117   : > { %v1286_v45 = vpop.f32.mrf.mxu1  ;;  %v1577_v29 = vpop.f32.mrf.mxu0  ;;  %v1527_v22 = vadd.f32 %v1526_v11, %v1334_v34 }
 0x118   : > { %v1287_v20 = vadd.f32 %v1286_v45, %v3687_v30  ;;  %v580_v30 = vmax.f32 %v578_v25, 0.0  ;;  %v683_v50 = vrot.slane %v587_v51, 1 }
 0x119   : > { %v3770_v10 = vadd.f32 %v1575_v52, %v1527_v22  ;;  %v622_v52 = vrot.slane %v587_v51, 7 }
 0x11a   : > { %v1335_v60 = vpop.f32.mrf.mxu2  ;;  %v586_v19 = vmul.f32 %v585_v47, %v580_v30 }
 0x11b   : > { %v1336_v31 = vadd.f32 %v1335_v60, %v1287_v20 }
 0x11c   : > { %v673_v5 = vrot.slane %v586_v19, 1  ;;  %v763_v25 = vpack.c.bf16 %v586_v19, %v586_v19 }
 0x11e   : > { %v1528_v9 = vpop.f32.mrf.mxu3  ;;  %v704_v46 = vsel %vm684_vm2, %v683_v50, %v673_v5  ;;  %v694_v41 = vsel %vm684_vm2, %v673_v5, %v683_v50  ;;  %v883_v47 = vunpack.c.l.b16 %v763_v25 }
 0x11f   : > { %v1289_v44 = vpop.f32.mrf.mxu1  ;;  %v1580_v23 = vpop.f32.mrf.mxu0  ;;  %v1529_v27 = vadd.f32 %v1528_v9, %v1336_v31  ;;  %1870 = vmatmul.bf16.gmra.mxu2 %v3252_v63  ;;  %v612_v63 = vrot.slane %v586_v19, 7  ;;  %v724_v22 = vmul.f32 %v3369_v37, %v704_v46 }
 0x120   : > { %v1290_v12 = vadd.f32 %v1289_v44, %v3705_v7 }
 0x121   : > { %v3779_v24 = vadd.f32 %v1577_v29, %v1529_v27  ;;  %v633_v11 = vsel %vm623_vm1, %v612_v63, %v622_v52  ;;  %v784_v31 = vpack.c.bf16 %v724_v22, %v724_v22 }
 0x122   : > { %1628 = vmatmul.bf16.gmra.mxu1 %v3600_v2  ;;  %1968 = vmatmul.bf16.gmra.mxu0 %v3664_v62  ;;  %v1338_v38 = vpop.f32.mrf.mxu2 }
 0x123   : > { %1919 = vmatmul.bf16.gmra.mxu3 %v3662_v61  ;;  %v1339_v18 = vadd.f32 %v1338_v38, %v1290_v12  ;;  %v643_v61 = vsel %vm623_vm1, %v622_v52, %v612_v63  ;;  %v944_v9 = vunpack.c.l.b16 %v784_v31 }
 0x126   : > { %v1531_v2 = vpop.f32.mrf.mxu3 }
 0x127   : > { %v1291_v15 = vpop.f32.mrf.mxu1  ;;  %v1582_v55 = vpop.f32.mrf.mxu0  ;;  %v1532_v57 = vadd.f32 %v1531_v2, %v1339_v18 }
 0x128   : > { %v1292_v36 = vadd.f32 %v1291_v15, %v3712_v33  ;;  %v662_v33 = vmul.f32 %v3114_v8, %v643_v61  ;;  %v744_v8 = vpack.c.bf16 %v633_v11, %v633_v11 }
 0x129   : > { %v3783_v7 = vadd.f32 %v1580_v23, %v1532_v57  ;;  %v764_v23 = vpack.c.bf16 %v587_v51, %v587_v51 }
 0x12a   : > { %v1340_v43 = vpop.f32.mrf.mxu2 }
 0x12b   : > { %v1341_v17 = vadd.f32 %v1340_v43, %v1292_v36  ;;  %v884_v38 = vunpack.c.l.b16 %v764_v23 }
 0x12d   : > { %v894_v51 = vpack.c.b16 %v884_v38, %v883_v47 }
 0x12e   : > { %v1533_v4 = vpop.f32.mrf.mxu3 }
 0x12f   : > { %v1294_v34 = vpop.f32.mrf.mxu1  ;;  %v1585_v45 = vpop.f32.mrf.mxu0  ;;  %v1534_v29 = vadd.f32 %v1533_v4, %v1341_v17  ;;  %1875 = vmatmul.bf16.gmra.mxu2 %v3404_v6 }
 0x130   : > { %v1295_v49 = vadd.f32 %v1294_v34, %v3676_v13  ;;  %v824_v13 = vunpack.c.l.b16 %v744_v8 }
 0x131   : > { %v3799_v42 = vadd.f32 %v1582_v55, %v1534_v29 }
 0x132   : > { %1633 = vmatmul.bf16.gmra.mxu1 %v3631_v35  ;;  %1973 = vmatmul.bf16.gmra.mxu0 %v3693_v59  ;;  %v1343_v20 = vpop.f32.mrf.mxu2  ;;  %v743_v35 = vpack.c.bf16 %v662_v33, %v662_v33  ;;  %v783_v59 = vpack.c.bf16 %v694_v41, %v694_v41 }
 0x133   : > { %1924 = vmatmul.bf16.gmra.mxu3 %v3691_v39  ;;  %v1344_v6 = vadd.f32 %v1343_v20, %v1295_v49 }
 0x134   : > { %v823_v48 = vunpack.c.l.b16 %v743_v35  ;;  %v943_v3 = vunpack.c.l.b16 %v783_v59 }
 0x136   : > { %v1536_v21 = vpop.f32.mrf.mxu3  ;;  %v834_v12 = vpack.c.b16 %v824_v13, %v823_v48  ;;  %v954_v15 = vpack.c.b16 %v944_v9, %v943_v3 }
 0x137   : > { %v1296_v60 = vpop.f32.mrf.mxu1  ;;  %v1587_v44 = vpop.f32.mrf.mxu0  ;;  %v1537_v37 = vadd.f32 %v1536_v21, %v1344_v6 }
 0x138   : > { %v1297_v27 = vadd.f32 %v1296_v60, %v3695_v0 }
 0x139   : > { %v3803_v30 = vadd.f32 %v1585_v45, %v1537_v37 }
 0x13a   : > { %v1345_v39 = vpop.f32.mrf.mxu2 }
 0x13b   : > { %v1346_v40 = vadd.f32 %v1345_v39, %v1297_v27 }
 0x13e   : > { %v1538_v2 = vpop.f32.mrf.mxu3 }
 0x13f   : > { %v1299_v18 = vpop.f32.mrf.mxu1  ;;  %v1590_v55 = vpop.f32.mrf.mxu0  ;;  %v1539_v19 = vadd.f32 %v1538_v2, %v1346_v40  ;;  %1880 = vmatmul.bf16.gmra.mxu2 %v834_v12 }
 0x140   : > { %v1300_v57 = vadd.f32 %v1299_v18, %v3710_v58 }
 0x141   : > { %v3807_v0 = vadd.f32 %v1587_v44, %v1539_v19 }
 0x142   : > { %1638 = vmatmul.bf16.gmra.mxu1 %v3664_v62  ;;  %1978 = vmatmul.bf16.gmra.mxu0 %v954_v15  ;;  %v1348_v63 = vpop.f32.mrf.mxu2 }
 0x143   : > { %1929 = vmatmul.bf16.gmra.mxu3 %v894_v51  ;;  %v1349_v52 = vadd.f32 %v1348_v63, %v1300_v57 }
 0x146   : > { %v1541_v50 = vpop.f32.mrf.mxu3 }
 0x147   : > { %v1301_v36 = vpop.f32.mrf.mxu1  ;;  %v1592_v5 = vpop.f32.mrf.mxu0  ;;  %v1542_v43 = vadd.f32 %v1541_v50, %v1349_v52 }
 0x148   : > { %v1302_v17 = vadd.f32 %v1301_v36, %v3714_v1 }
 0x149   : > { %v3810_v34 = vadd.f32 %v1590_v55, %v1542_v43 }
 0x14a   : > { %v1350_v61 = vpop.f32.mrf.mxu2 }
 0x14b   : > { %v1351_v62 = vadd.f32 %v1350_v61, %v1302_v17 }
 0x14e   : > { %v1543_v4 = vpop.f32.mrf.mxu3 }
 0x14f   : > { %v1604_v45 = vpop.f32.mrf.mxu1  ;;  %v1944_v46 = vpop.f32.mrf.mxu0  ;;  %v1544_v29 = vadd.f32 %v1543_v4, %v1351_v62 }
 0x150   : > { %v1605_v1 = vadd.f32 %v1604_v45, %v3719_v26 }
 0x151   : > { %v3812_v58 = vadd.f32 %v1592_v5, %v1544_v29 }
 0x152   : > { %v1846_v33 = vpop.f32.mrf.mxu2 }
 0x156   : > { %v1895_v49 = vpop.f32.mrf.mxu3 }
 0x157   : > { %v1606_v11 = vpop.f32.mrf.mxu1  ;;  %v1946_v22 = vpop.f32.mrf.mxu0  ;;  %v1896_v41 = vadd.f32 %v1895_v49, %v1846_v33 }
 0x158   : > { %v1607_v21 = vadd.f32 %v1606_v11, %v3724_v14 }
 0x159   : > { %v1945_v20 = vadd.f32 %v1944_v46, %v1896_v41 }
 0x15a   : > { %v1848_v6 = vpop.f32.mrf.mxu2 }
 0x15b   : > { %v1984_v8 = vadd.f32 %v1945_v20, %v1605_v1 }
 0x15d   : > { %v2000_v44 = vpack.c.bf16 %v1984_v8, %v1984_v8 }
 0x15e   : > { %v1897_v59 = vpop.f32.mrf.mxu3 }
 0x15f   : > { %v1609_v35 = vpop.f32.mrf.mxu1  ;;  %v1949_v60 = vpop.f32.mrf.mxu0  ;;  %v1898_v31 = vadd.f32 %v1897_v59, %v1848_v6  ;;  %v2032_v26 = vunpack.c.l.bf16 %v2000_v44 }
 0x160   : > { %v1610_v14 = vadd.f32 %v1609_v35, %v3727_v56 }
 0x161   : > { %v1947_v25 = vadd.f32 %v1946_v22, %v1898_v31  ;;  %v2069_v12 = vmul.f32 %v2032_v26, %v2032_v26 }
 0x162   : > { %v1851_v37 = vpop.f32.mrf.mxu2 }
 0x163   : > { %v1985_v48 = vadd.f32 %v1947_v25, %v1607_v21 }
 0x165   : > { %v2001_v23 = vpack.c.bf16 %v1985_v48, %v1985_v48  ;;  %v2841_v3 = vpack.c.bf16 %v1985_v48, %v1984_v8 }
 0x166   : > { %v1900_v27 = vpop.f32.mrf.mxu3 }
 0x167   : > { %v1611_v13 = vpop.f32.mrf.mxu1  ;;  %v1951_v9 = vpop.f32.mrf.mxu0  ;;  %2842 = vst [vmem:[%s3821_s20] sm:$0xff] %v2841_v3   ;;  %v2033_v39 = vunpack.c.l.bf16 %v2001_v23  ;;  %v1901_v40 = vadd.f32 %v1900_v27, %v1851_v37 }
 0x168   : > { %v1612_v43 = vadd.f32 %v1611_v13, %v3733_v16 }
 0x169   : > { %v2048_v47 = vadd.f32 %v2033_v39, %v2032_v26  ;;  %v2070_v38 = vmul.f32 %v2033_v39, %v2033_v39  ;;  %v1950_v18 = vadd.f32 %v1949_v60, %v1901_v40 }
 0x16a   : > { %v1853_v15 = vpop.f32.mrf.mxu2 }
 0x16b   : > { %v2085_v55 = vadd.f32 %v2070_v38, %v2069_v12  ;;  %v1986_v2 = vadd.f32 %v1950_v18, %v1610_v14 }
 0x16d   : > { %v2002_v51 = vpack.c.bf16 %v1986_v2, %v1986_v2 }
 0x16e   : > { %v1902_v63 = vpop.f32.mrf.mxu3 }
 0x16f   : > { %v1614_v19 = vpop.f32.mrf.mxu1  ;;  %v1954_v57 = vpop.f32.mrf.mxu0  ;;  %v2034_v52 = vunpack.c.l.bf16 %v2002_v51  ;;  %v1903_v36 = vadd.f32 %v1902_v63, %v1853_v15 }
 0x170   : > { %v1615_v20 = vadd.f32 %v1614_v19, %v3741_v32 }
 0x171   : > { %v2049_v5 = vadd.f32 %v2048_v47, %v2034_v52  ;;  %v2071_v50 = vmul.f32 %v2034_v52, %v2034_v52  ;;  %v1952_v17 = vadd.f32 %v1951_v9, %v1903_v36 }
 0x172   : > { %v1856_v56 = vpop.f32.mrf.mxu2 }
 0x173   : > { %v2086_v61 = vadd.f32 %v2085_v55, %v2071_v50  ;;  %v1987_v62 = vadd.f32 %v1952_v17, %v1612_v43 }
 0x175   : > { %v2003_v46 = vpack.c.bf16 %v1987_v62, %v1987_v62  ;;  %v2846_v4 = vpack.c.bf16 %v1987_v62, %v1986_v2 }
 0x176   : > { %v1905_v33 = vpop.f32.mrf.mxu3 }
 0x177   : > { %v1616_v45 = vpop.f32.mrf.mxu1  ;;  %v1956_v29 = vpop.f32.mrf.mxu0  ;;  %2885 = vst [vmem:[%s3821_s20 + $0x8] sm:$0xff] %v2846_v4   ;;  %v2035_v11 = vunpack.c.l.bf16 %v2003_v46  ;;  %v1906_v22 = vadd.f32 %v1905_v33, %v1856_v56 }
 0x178   : > { %v1617_v48 = vadd.f32 %v1616_v45, %v3748_v28 }
 0x179   : > { %v2050_v49 = vadd.f32 %v2049_v5, %v2035_v11  ;;  %v2072_v41 = vmul.f32 %v2035_v11, %v2035_v11  ;;  %v1955_v6 = vadd.f32 %v1954_v57, %v1906_v22 }
 0x17a   : > { %v1858_v1 = vpop.f32.mrf.mxu2 }
 0x17b   : > { %v2087_v35 = vadd.f32 %v2086_v61, %v2072_v41  ;;  %v1988_v16 = vadd.f32 %v1955_v6, %v1615_v20 }
 0x17d   : > { %v2004_v60 = vpack.c.bf16 %v1988_v16, %v1988_v16 }
 0x17e   : > { %v1907_v31 = vpop.f32.mrf.mxu3 }
 0x17f   : > { %v1619_v8 = vpop.f32.mrf.mxu1  ;;  %v1959_v59 = vpop.f32.mrf.mxu0  ;;  %v2036_v44 = vunpack.c.l.bf16 %v2004_v60  ;;  %v1908_v21 = vadd.f32 %v1907_v31, %v1858_v1 }
 0x180   : > { %v1620_v18 = vadd.f32 %v1619_v8, %v3753_v53 }
 0x181   : > { %v2051_v25 = vadd.f32 %v2050_v49, %v2036_v44  ;;  %v2073_v37 = vmul.f32 %v2036_v44, %v2036_v44  ;;  %v1957_v13 = vadd.f32 %v1956_v29, %v1908_v21 }
 0x182   : > { %v1861_v26 = vpop.f32.mrf.mxu2 }
 0x183   : > { %v2088_v23 = vadd.f32 %v2087_v35, %v2073_v37  ;;  %v1989_v3 = vadd.f32 %v1957_v13, %v1617_v48 }
 0x185   : > { %v2005_v9 = vpack.c.bf16 %v1989_v3, %v1989_v3  ;;  %v2851_v27 = vpack.c.bf16 %v1989_v3, %v1988_v16 }
 0x186   : > { %v1910_v40 = vpop.f32.mrf.mxu3 }
 0x187   : > { %v1621_v32 = vpop.f32.mrf.mxu1  ;;  %v1961_v39 = vpop.f32.mrf.mxu0  ;;  %2886 = vst [vmem:[%s3821_s20 + $0x10] sm:$0xff] %v2851_v27   ;;  %v2037_v14 = vunpack.c.l.bf16 %v2005_v9  ;;  %v1911_v12 = vadd.f32 %v1910_v40, %v1861_v26 }
 0x188   : > { %v1622_v43 = vadd.f32 %v1621_v32, %v3762_v54 }
 0x189   : > { %v2052_v47 = vadd.f32 %v2051_v25, %v2037_v14  ;;  %v2074_v38 = vmul.f32 %v2037_v14, %v2037_v14  ;;  %v1960_v15 = vadd.f32 %v1959_v59, %v1911_v12 }
 0x18a   : > { %v1863_v55 = vpop.f32.mrf.mxu2 }
 0x18b   : > { %v2089_v2 = vadd.f32 %v2088_v23, %v2074_v38  ;;  %v1990_v28 = vadd.f32 %v1960_v15, %v1620_v18 }
 0x18d   : > { %v2006_v51 = vpack.c.bf16 %v1990_v28, %v1990_v28 }
 0x18e   : > { %v1912_v63 = vpop.f32.mrf.mxu3 }
 0x18f   : > { %v1624_v19 = vpop.f32.mrf.mxu1  ;;  %v1964_v57 = vpop.f32.mrf.mxu0  ;;  %v2038_v52 = vunpack.c.l.bf16 %v2006_v51  ;;  %v1913_v36 = vadd.f32 %v1912_v63, %v1863_v55 }
 0x190   : > { %v1625_v41 = vadd.f32 %v1624_v19, %v3770_v10 }
 0x191   : > { %v2053_v5 = vadd.f32 %v2052_v47, %v2038_v52  ;;  %v2075_v50 = vmul.f32 %v2038_v52, %v2038_v52  ;;  %v1962_v17 = vadd.f32 %v1961_v39, %v1913_v36 }
 0x192   : > { %v1866_v56 = vpop.f32.mrf.mxu2 }
 0x193   : > { %v2090_v61 = vadd.f32 %v2089_v2, %v2075_v50  ;;  %v1991_v62 = vadd.f32 %v1962_v17, %v1622_v43 }
 0x195   : > { %v2007_v45 = vpack.c.bf16 %v1991_v62, %v1991_v62  ;;  %v2856_v46 = vpack.c.bf16 %v1991_v62, %v1990_v28 }
 0x196   : > { %v1915_v29 = vpop.f32.mrf.mxu3 }
 0x197   : > { %v1626_v53 = vpop.f32.mrf.mxu1  ;;  %v1966_v4 = vpop.f32.mrf.mxu0  ;;  %2887 = vst [vmem:[%s3821_s20 + $0x18] sm:$0xff] %v2856_v46   ;;  %v2039_v33 = vunpack.c.l.bf16 %v2007_v45  ;;  %v1916_v11 = vadd.f32 %v1915_v29, %v1866_v56 }
 0x198   : > { %v1627_v25 = vadd.f32 %v1626_v53, %v3779_v24 }
 0x199   : > { %v2054_v22 = vadd.f32 %v2053_v5, %v2039_v33  ;;  %v2076_v49 = vmul.f32 %v2039_v33, %v2039_v33  ;;  %v1965_v20 = vadd.f32 %v1964_v57, %v1916_v11 }
 0x19a   : > { %v1868_v6 = vpop.f32.mrf.mxu2 }
 0x19b   : > { %v2091_v1 = vadd.f32 %v2090_v61, %v2076_v49  ;;  %v1992_v54 = vadd.f32 %v1965_v20, %v1625_v41 }
 0x19d   : > { %v2008_v16 = vpack.c.bf16 %v1992_v54, %v1992_v54 }
 0x19e   : > { %v1917_v8 = vpop.f32.mrf.mxu3 }
 0x19f   : > { %v1629_v35 = vpop.f32.mrf.mxu1  ;;  %v1969_v60 = vpop.f32.mrf.mxu0  ;;  %v2040_v59 = vunpack.c.l.bf16 %v2008_v16  ;;  %v1918_v31 = vadd.f32 %v1917_v8, %v1868_v6 }
 0x1a0   : > { %v1630_v12 = vadd.f32 %v1629_v35, %v3783_v7 }
 0x1a1   : > { %v2055_v44 = vadd.f32 %v2054_v22, %v2040_v59  ;;  %v2077_v21 = vmul.f32 %v2040_v59, %v2040_v59  ;;  %v1967_v37 = vadd.f32 %v1966_v4, %v1918_v31 }
 0x1a2   : > { %v1871_v48 = vpop.f32.mrf.mxu2 }
 0x1a3   : > { %v2092_v13 = vadd.f32 %v2091_v1, %v2077_v21  ;;  %v1993_v26 = vadd.f32 %v1967_v37, %v1627_v25 }
 0x1a5   : > { %v2009_v10 = vpack.c.bf16 %v1993_v26, %v1993_v26  ;;  %v2861_v23 = vpack.c.bf16 %v1993_v26, %v1992_v54 }
 0x1a6   : > { %v1920_v3 = vpop.f32.mrf.mxu3 }
 0x1a7   : > { %v1631_v32 = vpop.f32.mrf.mxu1  ;;  %2888 = vst [vmem:[%s3821_s20 + $0x20] sm:$0xff] %v2861_v23   ;;  %v2041_v9 = vunpack.c.l.bf16 %v2009_v10  ;;  %v1921_v27 = vadd.f32 %v1920_v3, %v1871_v48  ;;  %v1971_v39 = vpop.f32.mrf.mxu0 }
 0x1a8   : > { %v1632_v63 = vadd.f32 %v1631_v32, %v3799_v42 }
 0x1a9   : > { %v2056_v40 = vadd.f32 %v2055_v44, %v2041_v9  ;;  %v2078_v14 = vmul.f32 %v2041_v9, %v2041_v9  ;;  %v1970_v47 = vadd.f32 %v1969_v60, %v1921_v27 }
 0x1aa   : > { %v1873_v38 = vpop.f32.mrf.mxu2 }
 0x1ab   : > { %v2093_v18 = vadd.f32 %v2092_v13, %v2078_v14  ;;  %v1994_v24 = vadd.f32 %v1970_v47, %v1630_v12 }
 0x1ad   : > { %v2010_v15 = vpack.c.bf16 %v1994_v24, %v1994_v24 }
 0x1ae   : > { %v1922_v55 = vpop.f32.mrf.mxu3 }
 0x1af   : > { %v2042_v2 = vunpack.c.l.bf16 %v2010_v15  ;;  %v1923_v28 = vadd.f32 %v1922_v55, %v1873_v38  ;;  %v1634_v19 = vpop.f32.mrf.mxu1  ;;  %v1974_v36 = vpop.f32.mrf.mxu0 }
 0x1b0   : > { %v1635_v46 = vadd.f32 %v1634_v19, %v3803_v30 }
 0x1b1   : > { %v2057_v51 = vadd.f32 %v2056_v40, %v2042_v2  ;;  %v2079_v57 = vmul.f32 %v2042_v2, %v2042_v2  ;;  %v1972_v52 = vadd.f32 %v1971_v39, %v1923_v28 }
 0x1b2   : > { %v1876_v5 = vpop.f32.mrf.mxu2 }
 0x1b3   : > { %v2094_v50 = vadd.f32 %v2093_v18, %v2079_v57  ;;  %v1995_v43 = vadd.f32 %v1972_v52, %v1632_v63 }
 0x1b5   : > { %v2011_v7 = vpack.c.bf16 %v1995_v43, %v1995_v43  ;;  %v2866_v17 = vpack.c.bf16 %v1995_v43, %v1994_v24 }
 0x1b6   : > { %v1925_v56 = vpop.f32.mrf.mxu3 }
 0x1b7   : > { %2889 = vst [vmem:[%s3821_s20 + $0x28] sm:$0xff] %v2866_v17   ;;  %v2043_v61 = vunpack.c.l.bf16 %v2011_v7  ;;  %v1926_v62 = vadd.f32 %v1925_v56, %v1876_v5  ;;  %v1636_v29 = vpop.f32.mrf.mxu1  ;;  %v1976_v22 = vpop.f32.mrf.mxu0 }
 0x1b8   : > { %v1637_v35 = vadd.f32 %v1636_v29, %v3807_v0 }
 0x1b9   : > { %v2058_v53 = vadd.f32 %v2057_v51, %v2043_v61  ;;  %v2080_v45 = vmul.f32 %v2043_v61, %v2043_v61  ;;  %v1975_v4 = vadd.f32 %v1974_v36, %v1926_v62 }
 0x1ba   : > { %v1878_v33 = vpop.f32.mrf.mxu2 }
 0x1bb   : > { %v2095_v11 = vadd.f32 %v2094_v50, %v2080_v45  ;;  %v1996_v42 = vadd.f32 %v1975_v4, %v1635_v46 }
 0x1bd   : > { %v2012_v49 = vpack.c.bf16 %v1996_v42, %v1996_v42 }
 0x1be   : > { %v1927_v41 = vpop.f32.mrf.mxu3 }
 0x1bf   : > { %v2044_v20 = vunpack.c.l.bf16 %v2012_v49  ;;  %v1928_v6 = vadd.f32 %v1927_v41, %v1878_v33  ;;  %v1639_v30 = vpop.f32.mrf.mxu1  ;;  %v1979_v21 = vpop.f32.mrf.mxu0 }
 0x1c0   : > { %v1640_v10 = vadd.f32 %v1639_v30, %v3810_v34 }
 0x1c1   : > { %v2059_v1 = vadd.f32 %v2058_v53, %v2044_v20  ;;  %v2081_v54 = vmul.f32 %v2044_v20, %v2044_v20  ;;  %v1977_v16 = vadd.f32 %v1976_v22, %v1928_v6 }
 0x1c2   : > { %v1881_v8 = vpop.f32.mrf.mxu2 }
 0x1c3   : > { %v2096_v60 = vadd.f32 %v2095_v11, %v2081_v54  ;;  %v1997_v59 = vadd.f32 %v1977_v16, %v1637_v35 }
 0x1c5   : > { %v2013_v31 = vpack.c.bf16 %v1997_v59, %v1997_v59  ;;  %v2871_v44 = vpack.c.bf16 %v1997_v59, %v1996_v42 }
 0x1c6   : > { %v1930_v25 = vpop.f32.mrf.mxu3 }
 0x1c7   : > { %2890 = vst [vmem:[%s3821_s20 + $0x30] sm:$0xff] %v2871_v44   ;;  %v2045_v37 = vunpack.c.l.bf16 %v2013_v31  ;;  %v1931_v48 = vadd.f32 %v1930_v25, %v1881_v8  ;;  %v1641_v27 = vpop.f32.mrf.mxu1  ;;  %v1981_v12 = vpop.f32.mrf.mxu0 }
 0x1c8   : > { %v1642_v18 = vadd.f32 %v1641_v27, %v3812_v58 }
 0x1c9   : > { %v2060_v13 = vadd.f32 %v2059_v1, %v2045_v37  ;;  %v2082_v26 = vmul.f32 %v2045_v37, %v2045_v37  ;;  %v1980_v23 = vadd.f32 %v1979_v21, %v1931_v48 }
 0x1ca   : > { %v1883_v0 = vpop.f32.mrf.mxu2 }
 0x1cb   : > { %v2097_v3 = vadd.f32 %v2096_v60, %v2082_v26  ;;  %v1998_v32 = vadd.f32 %v1980_v23, %v1640_v10 }
 0x1cd   : > { %v2014_v9 = vpack.c.bf16 %v1998_v32, %v1998_v32 }
 0x1ce   : > { %v1932_v39 = vpop.f32.mrf.mxu3 }
 0x1cf   : > { %v2046_v40 = vunpack.c.l.bf16 %v2014_v9  ;;  %v1933_v14 = vadd.f32 %v1932_v39, %v1883_v0 }
 0x1d1   : > { %v2061_v47 = vadd.f32 %v2060_v13, %v2046_v40  ;;  %v2083_v38 = vmul.f32 %v2046_v40, %v2046_v40  ;;  %v1982_v24 = vadd.f32 %v1981_v12, %v1933_v14 }
 0x1d3   : > { %v2098_v34 = vadd.f32 %v2097_v3, %v2083_v38  ;;  %v1999_v15 = vadd.f32 %v1982_v24, %v1642_v18 }
 0x1d5   : > { %v2015_v55 = vpack.c.bf16 %v1999_v15, %v1999_v15  ;;  %v2876_v2 = vpack.c.bf16 %v1999_v15, %v1998_v32 }
 0x1d7   : > { %2891 = vst [vmem:[%s3821_s20 + $0x38] sm:$0xff] %v2876_v2   ;;  %v2047_v28 = vunpack.c.l.bf16 %v2015_v55 }
 0x1d9   : > { %v2062_v19 = vadd.f32 %v2061_v47, %v2047_v28  ;;  %v2084_v51 = vmul.f32 %v2047_v28, %v2047_v28 }
 0x1db   : > { %v2063_v57 = vrot.slane %v2062_v19, 4  ;;  %v2099_v63 = vadd.f32 %v2098_v34, %v2084_v51 }
 0x1dd   : > { %v2064_v52 = vadd.f32 %v2063_v57, %v2062_v19  ;;  %v2100_v36 = vrot.slane %v2099_v63, 4 }
 0x1df   : > { %v2065_v5 = vrot.slane %v2064_v52, 2  ;;  %v2101_v50 = vadd.f32 %v2100_v36, %v2099_v63 }
 0x1e1   : > { %v2066_v58 = vadd.f32 %v2065_v5, %v2064_v52  ;;  %v2102_v43 = vrot.slane %v2101_v50, 2 }
 0x1e3   : > { %v2067_v7 = vrot.slane %v2066_v58, 1  ;;  %v2103_v17 = vadd.f32 %v2102_v43, %v2101_v50 }
 0x1e5   : > { %v2104_v56 = vrot.slane %v2103_v17, 1  ;;  %v2068_v61 = vadd.f32 %v2067_v7, %v2066_v58 }
 0x1e7   : > { %v2105_v62 = vadd.f32 %v2104_v56, %v2103_v17 }
 0x1e9   : > { %v2107_v53 = vsel %vm2106_vm4, %v2068_v61, %v2105_v62 }
 0x1ea   : > { %2108 = vst [vmem:[%s467_s8] sm:$0x3] %v2107_v53 }
 0x1eb PF: > { %s18_s28 = sadd.s32 1, %s2999_s28   ;;  %s3874_s24 = smov %s2991_s26 }
 0x1ec   : > { %p15_p13 = scmp.ge.s32.totalorder %s18_s28, 6   ;;  %s3875_s25 = smov %s2995_s27 }
 0x1ed   : > { %s3876_s26 = smov %s3879_s29  ;;  %s3877_s27 = smov %s3883_s30 }
 0x1ee   :  { %17 = sbr.rel (!%p15_p13) target bundleno = 3 (0x3), region = 94 }

</bundles_post_ra>
